<compile_context>
chip_gen: v7x
topology: tpu7x:2x2x1
jax: 0.10.0
libtpu: 0.0.40
codegen_flags: <defaults>
</compile_context>

<pallas_src>
import math
from functools import partial

import numpy as np
import jax
import jax.numpy as jnp
from jax import lax
from jax.experimental import pallas as pl
from jax.experimental.pallas import tpu as pltpu


# ------------------------------------------------------------------ kernel ---

def _fused_decoder_kernel(tab_ref, se_ref, mem_ref, wd_ref, wkv_ref, wff2_ref,
                          vecs_ref, proj_ref, o_ref,
                          *, batch, nhead, num_layers, subj_len, seq_len,
                          d_model, dim_ff):
    B, H, D, F = batch, nhead, d_model, dim_ff
    Dh = D // H
    Lt = subj_len + seq_len
    NT = B * Lt                      # batch-stacked target rows   (r = b*Lt + t)
    NR = H * NT                      # head-replicated rows        (r = h*NT + b*Lt + t)
    M = mem_ref.shape[0]             # B * S_mem, native order     (r = s*B + b)
    NS = B * subj_len
    S_mem = M // B
    scale = 1.0 / math.sqrt(Dh)
    f32, bf16, i32 = jnp.float32, jnp.bfloat16, jnp.int32

    # ---- in-kernel index patterns (no mask operands; no vector integer div) ----
    def sub_iota(n):                 # (n, 1) iota along sublanes
        return lax.broadcasted_iota(i32, (n, 1), 0)

    def lane_iota(n):                # (1, n) iota along lanes
        return lax.broadcasted_iota(i32, (1, n), 1)

    def sub_blocks(blocks):          # (sum(n), 1) constant blocks along sublanes
        return jnp.concatenate([jnp.full((n, 1), v, i32) for n, v in blocks], axis=0)

    def lane_blocks(blocks):         # (1, sum(n)) constant blocks along lanes
        return jnp.concatenate([jnp.full((1, n), v, i32) for n, v in blocks], axis=1)

    b_tgt = sub_blocks([(Lt, b) for b in range(B)])                  # (NT,1) batch of row
    t_tgt = jnp.concatenate([sub_iota(Lt)] * B, axis=0)              # (NT,1) seq position
    b_rep = jnp.concatenate([b_tgt] * H, axis=0)                     # (NR,1)
    h_rep = sub_blocks([(NT, h) for h in range(H)])                  # (NR,1) head of row

    head_of_chan = lane_blocks([(Dh, h) for h in range(H)])          # (1,D)
    b_col_self = lane_blocks([(Lt, b) for b in range(B)])            # (1,NT)
    b_col_mem = jnp.concatenate([lane_iota(B)] * S_mem, axis=1)      # (1,M)  (= col % B)
    pos_col_rep = jnp.concatenate([lane_iota(NT)] * H, axis=1)       # (1,NR) (= row % NT)

    rowmask = (h_rep == head_of_chan).astype(f32)                    # (NR,D) head channels
    summat = (sub_iota(NT) == pos_col_rep).astype(f32)               # (NT,NR) fold heads back
    self_ok = b_rep == b_col_self                                    # (NR,NT) same-batch mask
    cross_ok = b_rep == b_col_mem                                    # (NR,M)  same-batch mask

    def layer_norm(y, g, b, eps=1e-5):
        mu = jnp.mean(y, axis=-1, keepdims=True)
        var = jnp.mean((y - mu) ** 2, axis=-1, keepdims=True)
        return (y - mu) * lax.rsqrt(var + eps) * g + b

    def mha(q, k, v, ok):
        # all (batch, head) pairs in one pass
        q_rows = jnp.concatenate([q] * H, axis=0) * rowmask          # (NR,D)
        s = lax.dot_general(q_rows.astype(bf16), k.astype(bf16),
                            dimension_numbers=(((1,), (1,)), ((), ())),
                            preferred_element_type=f32) * scale       # (NR, kv_rows)
        s = jnp.where(ok, s, -1e30)
        s = s - jnp.max(s, axis=-1, keepdims=True)
        p = jnp.exp(s)
        p = p * pl.reciprocal(jnp.sum(p, axis=-1, keepdims=True), approx=True)
        og = jnp.dot(p.astype(bf16), v.astype(bf16),
                     preferred_element_type=f32) * rowmask            # (NR,D)
        return jnp.dot(summat, og, preferred_element_type=f32)        # (NT,D)

    # ---- x0 = [subject_embedding ; Linear(zeros)=bias] + PE, built in-kernel ----
    tab = tab_ref[...]                                               # (Lt,D) PE (+emb bias)
    base = jnp.concatenate([tab] * B, axis=0)                        # (NT,D)
    b_col_se = lane_blocks([(subj_len, b) for b in range(B)])        # (1,NS)
    t_col_se = jnp.concatenate([lane_iota(subj_len)] * B, axis=1)    # (1,NS)
    scat = ((b_tgt == b_col_se) & (t_tgt == t_col_se)).astype(f32)   # (NT,NS)
    x = base + jnp.dot(scat, se_ref[...], preferred_element_type=f32)  # (NT,D)

    # ---- loop-invariant cross-attention K/V projection (all layers at once) ----
    mem = mem_ref[...]                                               # (M,D) f32
    kv_all = jnp.dot(mem.astype(bf16), wkv_ref[...],
                     preferred_element_type=f32)                     # (M, L*2D)

    for l in range(num_layers):                                      # static unroll
        Wd = wd_ref[l]                                               # (D, 6D+F) bf16 slab

        def vrow(r, w=D, l=l):                                       # (1,w) bias / LN row
            return vecs_ref[l, r:r + 1, :w]

        # ---- self attention (fused QKV projection) ----
        qkv = jnp.dot(x.astype(bf16), Wd[:, :3 * D],
                      preferred_element_type=f32) + vrow(0, 3 * D)
        a = mha(qkv[:, :D], qkv[:, D:2 * D], qkv[:, 2 * D:], self_ok)
        a = jnp.dot(a.astype(bf16), Wd[:, 3 * D:4 * D],
                    preferred_element_type=f32) + vrow(1)
        x = layer_norm(x + a, vrow(7), vrow(8))

        # ---- cross attention (K/V hoisted above the loop) ----
        qc = jnp.dot(x.astype(bf16), Wd[:, 4 * D:5 * D],
                     preferred_element_type=f32) + vrow(2)
        kv = kv_all[:, l * 2 * D:(l + 1) * 2 * D] + vrow(3, 2 * D)
        a = mha(qc, kv[:, :D], kv[:, D:], cross_ok)
        a = jnp.dot(a.astype(bf16), Wd[:, 5 * D:6 * D],
                    preferred_element_type=f32) + vrow(4)
        x = layer_norm(x + a, vrow(9), vrow(10))

        # ---- feed forward (ReLU) ----
        h = jnp.maximum(
            jnp.dot(x.astype(bf16), Wd[:, 6 * D:6 * D + F],
                    preferred_element_type=f32) + vrow(5, F), 0.0)
        f = jnp.dot(h.astype(bf16), wff2_ref[l], preferred_element_type=f32) + vrow(6)
        x = layer_norm(x + f, vrow(11), vrow(12))

    # ---- output[:, -seq_len:, :] @ proj_w + proj_b (lane-dense write) ----
    y = jnp.concatenate(
        [x[b * Lt + subj_len:(b + 1) * Lt, :] for b in range(B)], axis=0)   # (B*seq, D)
    o_ref[...] = (jnp.dot(y, proj_ref[0:D, :], preferred_element_type=f32)
                  + proj_ref[D:D + 1, :])


# --------------------------------------------------------------------- glue --

def sinusoidal_pe_np(length, d_model):
    pos = np.arange(length, dtype=np.float32)[:, None]
    div = np.exp(np.arange(0, d_model, 2, dtype=np.float32)
                 * (-math.log(10000.0) / d_model))
    pe = np.zeros((length, d_model), np.float32)
    pe[:, 0::2] = np.sin(pos * div)
    pe[:, 1::2] = np.cos(pos * div)
    return pe


def init_params(key, *, output_dim, latent_dim, nhead, num_layers, dim_feedforward,
                seq_length, subj_len):
    """Parameters packed ONCE into the fused-kernel layout (bf16 weight slabs)."""
    D, F = latent_dim, dim_feedforward
    Lt = subj_len + seq_length
    P = ((output_dim + 127) // 128) * 128
    Vw = max(3 * D, 2 * D, F)

    keys = jax.random.split(key, 4 + num_layers)

    def w(k, shape, scale=0.05):
        return scale * jax.random.normal(k, shape, jnp.float32)

    emb_b = w(keys[1], (D,))                 # embedding weight unused: Linear input is zeros
    proj_w = w(keys[2], (D, output_dim))
    proj_b = w(keys[3], (output_dim,))

    wd, wkv, wff2, vecs = [], [], [], []
    for i in range(num_layers):
        lk = jax.random.split(keys[4 + i], 10)
        sa_qkv = jnp.concatenate([w(lk[0], (D, D)), w(lk[1], (D, D)), w(lk[2], (D, D))], 1)
        ca_kv = jnp.concatenate([w(lk[5], (D, D)), w(lk[6], (D, D))], 1)
        # per-layer (D, 6D+F) slab: [sa_qkv | sa_out | ca_q | ca_out | ff1]
        wd.append(jnp.concatenate([sa_qkv, w(lk[3], (D, D)), w(lk[4], (D, D)),
                                   w(lk[7], (D, D)), w(lk[8], (D, F))], axis=1))
        wkv.append(ca_kv)
        wff2.append(w(lk[9], (F, D)))

        def padv(v):
            return jnp.pad(v, (0, Vw - v.shape[0]))
        rows = [
            padv(jnp.zeros((3 * D,))),                    # 0 : sa qkv bias
            padv(jnp.zeros((D,))),                        # 1 : sa out bias
            padv(jnp.zeros((D,))),                        # 2 : ca q bias
            padv(jnp.zeros((2 * D,))),                    # 3 : ca kv bias
            padv(jnp.zeros((F,)))[:Vw] * 0 + padv(jnp.zeros((D,))),  # placeholder row 4 (ca out bias)
            padv(jnp.zeros((F,))),                        # 5 : ff1 bias
            padv(jnp.zeros((D,))),                        # 6 : ff2 bias
            padv(jnp.ones((D,))), padv(jnp.zeros((D,))),  # 7,8  : norm1 g,b
            padv(jnp.ones((D,))), padv(jnp.zeros((D,))),  # 9,10 : norm2 g,b
            padv(jnp.ones((D,))), padv(jnp.zeros((D,))),  # 11,12: norm3 g,b
        ]
        vecs.append(jnp.stack(rows, axis=0))              # (13, Vw)

    # emb_bias + sinusoidal PE folded into one (Lt, D) table (subject rows: PE only)
    tab = jnp.asarray(sinusoidal_pe_np(Lt, D))
    tab = tab.at[subj_len:, :].add(emb_b)

    # output projection packed once: rows 0..D-1 = W (lane-padded to P), row D = bias
    proj = jnp.zeros((D + 1, P), jnp.float32)
    proj = proj.at[:D, :output_dim].set(proj_w)
    proj = proj.at[D, :output_dim].set(proj_b)

    return {
        'tab': tab,                                               # (Lt, D)       f32
        'wd': jnp.stack(wd).astype(jnp.bfloat16),                 # (L, D, 6D+F)  bf16
        'wkv': jnp.concatenate(wkv, axis=1).astype(jnp.bfloat16),  # (D, L*2D)    bf16
        'wff2': jnp.stack(wff2).astype(jnp.bfloat16),             # (L, F, D)     bf16
        'vecs': jnp.stack(vecs),                                  # (L, 13, Vw)   f32
        'proj': proj,                                             # (D+1, P)      f32
    }


def decoder_forward(params, memory, subject_embedding, *, seq_length, output_dim, nhead):
    """single_step_decode: memory (S_mem, B, D), subject_embedding (B, subj_len, D)."""
    S_mem, B, D = memory.shape
    subj_len = subject_embedding.shape[1]
    L = params['wd'].shape[0]
    F = params['wff2'].shape[1]
    P = params['proj'].shape[1]

    # Only free (bitcast) reshapes on the hot path: memory keeps its native
    # (S_mem, B, D) row order; the kernel's batch masks account for it.
    mem_flat = memory.reshape(S_mem * B, D)
    se_flat = subject_embedding.reshape(B * subj_len, D)

    operands = (params['tab'], se_flat, mem_flat, params['wd'], params['wkv'],
                params['wff2'], params['vecs'], params['proj'])

    def full_spec(a):
        n = a.ndim
        return pl.BlockSpec(a.shape, lambda i, n=n: (0,) * n)

    kernel = partial(_fused_decoder_kernel, batch=B, nhead=nhead, num_layers=L,
                     subj_len=subj_len, seq_len=seq_length, d_model=D, dim_ff=F)

    out = pl.pallas_call(
        kernel,
        grid=(1,),                                    # single launch: batch folded into rows
        in_specs=[full_spec(a) for a in operands],
        out_specs=pl.BlockSpec((B * seq_length, P), lambda i: (0, 0)),
        out_shape=jax.ShapeDtypeStruct((B * seq_length, P), jnp.float32),
        compiler_params=pltpu.CompilerParams(dimension_semantics=("arbitrary",)),
    )(*operands)

    return out[:, :output_dim].reshape(B, seq_length, output_dim)


# --------------------------------------------------------------------- main --

if __name__ == "__main__":
    output_dim = 6
    latent_dim = 32
    nhead = 4
    num_decoder_layers = 2
    dim_feedforward = 64
    seq_length = 8
    B, S_mem, subj_len = 2, 5, 1

    key = jax.random.PRNGKey(0)
    kp, km, ks = jax.random.split(key, 3)

    params = init_params(kp, output_dim=output_dim, latent_dim=latent_dim,
                         nhead=nhead, num_layers=num_decoder_layers,
                         dim_feedforward=dim_feedforward,
                         seq_length=seq_length, subj_len=subj_len)
    memory = jax.random.normal(km, (S_mem, B, latent_dim), jnp.float32)
    subject_embedding = jax.random.normal(ks, (B, subj_len, latent_dim), jnp.float32)

    out = decoder_forward(params, memory, subject_embedding,
                          seq_length=seq_length, output_dim=output_dim, nhead=nhead)
    out = jax.block_until_ready(out)
    assert out.shape == (B, seq_length, output_dim), out.shape
    assert bool(jnp.all(jnp.isfinite(out)))
    print("KERNEL_OK")
</pallas_src>

<mosaic_0001>
module attributes {stable_mosaic.version = 11 : i64} {
  func.func @_fused_decoder_kernel(%arg0: i32, %arg1: memref<9x32xf32, #tpu.memory_space<vmem>>, %arg2: memref<2x32xf32, #tpu.memory_space<vmem>>, %arg3: memref<10x32xf32, #tpu.memory_space<vmem>>, %arg4: memref<2x32x256xbf16, #tpu.memory_space<vmem>>, %arg5: memref<32x128xbf16, #tpu.memory_space<vmem>>, %arg6: memref<2x64x32xbf16, #tpu.memory_space<vmem>>, %arg7: memref<2x13x96xf32, #tpu.memory_space<vmem>>, %arg8: memref<33x128xf32, #tpu.memory_space<vmem>>, %arg9: memref<16x128xf32, #tpu.memory_space<vmem>>) attributes {dimension_semantics = [#tpu.dimension_semantics<arbitrary>], iteration_bounds = array<i64: 1>, scalar_prefetch = 0 : i64, scratch_operands = 0 : i64, tpu.core_type = #tpu.core_type<tc>, window_params = [{pipeline_mode = #tpu.pipeline_mode<synchronous>, transform_indices = @transform_0, window_bounds = array<i64: 9, 32>}, {pipeline_mode = #tpu.pipeline_mode<synchronous>, transform_indices = @transform_1, window_bounds = array<i64: 2, 32>}, {pipeline_mode = #tpu.pipeline_mode<synchronous>, transform_indices = @transform_2, window_bounds = array<i64: 10, 32>}, {pipeline_mode = #tpu.pipeline_mode<synchronous>, transform_indices = @transform_3, window_bounds = array<i64: 2, 32, 256>}, {pipeline_mode = #tpu.pipeline_mode<synchronous>, transform_indices = @transform_4, window_bounds = array<i64: 32, 128>}, {pipeline_mode = #tpu.pipeline_mode<synchronous>, transform_indices = @transform_5, window_bounds = array<i64: 2, 64, 32>}, {pipeline_mode = #tpu.pipeline_mode<synchronous>, transform_indices = @transform_6, window_bounds = array<i64: 2, 13, 96>}, {pipeline_mode = #tpu.pipeline_mode<synchronous>, transform_indices = @transform_7, window_bounds = array<i64: 33, 128>}, {pipeline_mode = #tpu.pipeline_mode<synchronous>, transform_indices = @transform_8, window_bounds = array<i64: 16, 128>}]} {
    %c0_i32 = arith.constant 0 : i32
    %0 = vector.broadcast %c0_i32 : i32 to vector<9x1xi32>
    %c1_i32 = arith.constant 1 : i32
    %1 = vector.broadcast %c1_i32 : i32 to vector<9x1xi32>
    %2 = tpu.concatenate %0, %1 in 0 : vector<9x1xi32>, vector<9x1xi32> -> vector<18x1xi32>
    %3 = tpu.iota {dimensions = array<i32: 0>} : vector<9x1xi32>
    %4 = tpu.concatenate %3, %3 in 0 : vector<9x1xi32>, vector<9x1xi32> -> vector<18x1xi32>
    %5 = tpu.concatenate %2, %2, %2, %2 in 0 : vector<18x1xi32>, vector<18x1xi32>, vector<18x1xi32>, vector<18x1xi32> -> vector<72x1xi32>
    %c0_i32_0 = arith.constant 0 : i32
    %6 = vector.broadcast %c0_i32_0 : i32 to vector<18x1xi32>
    %c1_i32_1 = arith.constant 1 : i32
    %7 = vector.broadcast %c1_i32_1 : i32 to vector<18x1xi32>
    %c2_i32 = arith.constant 2 : i32
    %8 = vector.broadcast %c2_i32 : i32 to vector<18x1xi32>
    %c3_i32 = arith.constant 3 : i32
    %9 = vector.broadcast %c3_i32 : i32 to vector<18x1xi32>
    %10 = tpu.concatenate %6, %7, %8, %9 in 0 : vector<18x1xi32>, vector<18x1xi32>, vector<18x1xi32>, vector<18x1xi32> -> vector<72x1xi32>
    %c0_i32_2 = arith.constant 0 : i32
    %11 = vector.broadcast %c0_i32_2 : i32 to vector<1x8xi32>
    %c1_i32_3 = arith.constant 1 : i32
    %12 = vector.broadcast %c1_i32_3 : i32 to vector<1x8xi32>
    %c2_i32_4 = arith.constant 2 : i32
    %13 = vector.broadcast %c2_i32_4 : i32 to vector<1x8xi32>
    %c3_i32_5 = arith.constant 3 : i32
    %14 = vector.broadcast %c3_i32_5 : i32 to vector<1x8xi32>
    %15 = tpu.concatenate %11, %12, %13, %14 in 1 : vector<1x8xi32>, vector<1x8xi32>, vector<1x8xi32>, vector<1x8xi32> -> vector<1x32xi32>
    %c0_i32_6 = arith.constant 0 : i32
    %16 = vector.broadcast %c0_i32_6 : i32 to vector<1x9xi32>
    %c1_i32_7 = arith.constant 1 : i32
    %17 = vector.broadcast %c1_i32_7 : i32 to vector<1x9xi32>
    %18 = tpu.concatenate %16, %17 in 1 : vector<1x9xi32>, vector<1x9xi32> -> vector<1x18xi32>
    %19 = tpu.iota {dimensions = array<i32: 1>} : vector<1x2xi32>
    %20 = tpu.concatenate %19, %19, %19, %19, %19 in 1 : vector<1x2xi32>, vector<1x2xi32>, vector<1x2xi32>, vector<1x2xi32>, vector<1x2xi32> -> vector<1x10xi32>
    %21 = tpu.iota {dimensions = array<i32: 1>} : vector<1x18xi32>
    %22 = tpu.concatenate %21, %21, %21, %21 in 1 : vector<1x18xi32>, vector<1x18xi32>, vector<1x18xi32>, vector<1x18xi32> -> vector<1x72xi32>
    %23 = vector.broadcast %10 : vector<72x1xi32> to vector<72x32xi32>
    %24 = vector.broadcast %15 : vector<1x32xi32> to vector<72x32xi32>
    %25 = arith.cmpi eq, %23, %24 : vector<72x32xi32>
    %26 = arith.extui %25 : vector<72x32xi1> to vector<72x32xi32>
    %27 = arith.sitofp %26 : vector<72x32xi32> to vector<72x32xf32>
    %28 = tpu.iota {dimensions = array<i32: 0>} : vector<18x1xi32>
    %29 = vector.broadcast %28 : vector<18x1xi32> to vector<18x72xi32>
    %30 = vector.broadcast %22 : vector<1x72xi32> to vector<18x72xi32>
    %31 = arith.cmpi eq, %29, %30 : vector<18x72xi32>
    %32 = arith.extui %31 : vector<18x72xi1> to vector<18x72xi32>
    %33 = arith.sitofp %32 : vector<18x72xi32> to vector<18x72xf32>
    %34 = vector.broadcast %5 : vector<72x1xi32> to vector<72x18xi32>
    %35 = vector.broadcast %18 : vector<1x18xi32> to vector<72x18xi32>
    %36 = arith.cmpi eq, %34, %35 : vector<72x18xi32>
    %37 = vector.broadcast %5 : vector<72x1xi32> to vector<72x10xi32>
    %38 = vector.broadcast %20 : vector<1x10xi32> to vector<72x10xi32>
    %39 = arith.cmpi eq, %37, %38 : vector<72x10xi32>
    %c0 = arith.constant 0 : index
    %c0_8 = arith.constant 0 : index
    %40 = vector.load %arg1[%c0, %c0_8] : memref<9x32xf32, #tpu.memory_space<vmem>>, vector<9x32xf32>
    %41 = tpu.concatenate %40, %40 in 0 : vector<9x32xf32>, vector<9x32xf32> -> vector<18x32xf32>
    %c0_i32_9 = arith.constant 0 : i32
    %42 = vector.broadcast %c0_i32_9 : i32 to vector<1x1xi32>
    %c1_i32_10 = arith.constant 1 : i32
    %43 = vector.broadcast %c1_i32_10 : i32 to vector<1x1xi32>
    %44 = tpu.concatenate %42, %43 in 1 : vector<1x1xi32>, vector<1x1xi32> -> vector<1x2xi32>
    %45 = tpu.iota {dimensions = array<i32: 1>} : vector<1x1xi32>
    %46 = tpu.concatenate %45, %45 in 1 : vector<1x1xi32>, vector<1x1xi32> -> vector<1x2xi32>
    %47 = vector.broadcast %2 : vector<18x1xi32> to vector<18x2xi32>
    %48 = vector.broadcast %44 : vector<1x2xi32> to vector<18x2xi32>
    %49 = arith.cmpi eq, %47, %48 : vector<18x2xi32>
    %50 = vector.broadcast %4 : vector<18x1xi32> to vector<18x2xi32>
    %51 = vector.broadcast %46 : vector<1x2xi32> to vector<18x2xi32>
    %52 = arith.cmpi eq, %50, %51 : vector<18x2xi32>
    %53 = arith.andi %49, %52 : vector<18x2xi1>
    %54 = arith.extui %53 : vector<18x2xi1> to vector<18x2xi32>
    %55 = arith.sitofp %54 : vector<18x2xi32> to vector<18x2xf32>
    %c0_11 = arith.constant 0 : index
    %c0_12 = arith.constant 0 : index
    %56 = vector.load %arg2[%c0_11, %c0_12] : memref<2x32xf32, #tpu.memory_space<vmem>>, vector<2x32xf32>
    %cst = arith.constant dense<0.000000e+00> : vector<18x32xf32>
    %57 = tpu.matmul %55, %56, %cst {dimension_numbers = #tpu.dot_dimension_numbers<[1], [0], [0], [1], [0, 0, 1, 1], [], []>} : vector<18x2xf32>, vector<2x32xf32>, vector<18x32xf32> -> vector<18x32xf32>
    %58 = arith.addf %41, %57 : vector<18x32xf32>
    %c0_13 = arith.constant 0 : index
    %c0_14 = arith.constant 0 : index
    %59 = vector.load %arg3[%c0_13, %c0_14] : memref<10x32xf32, #tpu.memory_space<vmem>>, vector<10x32xf32>
    %60 = arith.truncf %59 : vector<10x32xf32> to vector<10x32xbf16>
    %c0_15 = arith.constant 0 : index
    %c0_16 = arith.constant 0 : index
    %61 = vector.load %arg5[%c0_15, %c0_16] : memref<32x128xbf16, #tpu.memory_space<vmem>>, vector<32x128xbf16>
    %cst_17 = arith.constant dense<0.000000e+00> : vector<10x128xf32>
    %62 = tpu.matmul %60, %61, %cst_17 {dimension_numbers = #tpu.dot_dimension_numbers<[1], [0], [0], [1], [0, 0, 1, 1], [], []>} : vector<10x32xbf16>, vector<32x128xbf16>, vector<10x128xf32> -> vector<10x128xf32>
    %c0_18 = arith.constant 0 : index
    %c0_19 = arith.constant 0 : index
    %c0_20 = arith.constant 0 : index
    %63 = vector.load %arg4[%c0_18, %c0_19, %c0_20] : memref<2x32x256xbf16, #tpu.memory_space<vmem>>, vector<1x32x256xbf16>
    %64 = vector.shape_cast %63 : vector<1x32x256xbf16> to vector<32x256xbf16>
    %65 = arith.truncf %58 : vector<18x32xf32> to vector<18x32xbf16>
    %66 = vector.extract_strided_slice %64 {offsets = [0, 0], sizes = [32, 96], strides = [1, 1]} : vector<32x256xbf16> to vector<32x96xbf16>
    %cst_21 = arith.constant dense<0.000000e+00> : vector<18x96xf32>
    %67 = tpu.matmul %65, %66, %cst_21 {dimension_numbers = #tpu.dot_dimension_numbers<[1], [0], [0], [1], [0, 0, 1, 1], [], []>} : vector<18x32xbf16>, vector<32x96xbf16>, vector<18x96xf32> -> vector<18x96xf32>
    %c0_22 = arith.constant 0 : index
    %c0_23 = arith.constant 0 : index
    %c0_24 = arith.constant 0 : index
    %68 = vector.load %arg7[%c0_22, %c0_23, %c0_24] : memref<2x13x96xf32, #tpu.memory_space<vmem>>, vector<1x1x96xf32>
    %69 = vector.shape_cast %68 : vector<1x1x96xf32> to vector<1x96xf32>
    %70 = vector.broadcast %69 : vector<1x96xf32> to vector<18x96xf32>
    %71 = arith.addf %67, %70 : vector<18x96xf32>
    %72 = vector.extract_strided_slice %71 {offsets = [0, 0], sizes = [18, 32], strides = [1, 1]} : vector<18x96xf32> to vector<18x32xf32>
    %73 = vector.extract_strided_slice %71 {offsets = [0, 32], sizes = [18, 32], strides = [1, 1]} : vector<18x96xf32> to vector<18x32xf32>
    %74 = vector.extract_strided_slice %71 {offsets = [0, 64], sizes = [18, 32], strides = [1, 1]} : vector<18x96xf32> to vector<18x32xf32>
    %75 = tpu.concatenate %72, %72, %72, %72 in 0 : vector<18x32xf32>, vector<18x32xf32>, vector<18x32xf32>, vector<18x32xf32> -> vector<72x32xf32>
    %76 = arith.mulf %75, %27 : vector<72x32xf32>
    %77 = arith.truncf %76 : vector<72x32xf32> to vector<72x32xbf16>
    %78 = arith.truncf %73 : vector<18x32xf32> to vector<18x32xbf16>
    %cst_25 = arith.constant dense<0.000000e+00> : vector<72x18xf32>
    %79 = tpu.matmul %77, %78, %cst_25 {dimension_numbers = #tpu.dot_dimension_numbers<[1], [1], [0], [0], [0, 0, 1, 0], [], []>} : vector<72x32xbf16>, vector<18x32xbf16>, vector<72x18xf32> -> vector<72x18xf32>
    %cst_26 = arith.constant 0.353553385 : f32
    %80 = vector.broadcast %cst_26 : f32 to vector<72x18xf32>
    %81 = arith.mulf %79, %80 : vector<72x18xf32>
    %cst_27 = arith.constant -1.000000e+30 : f32
    %82 = vector.broadcast %cst_27 : f32 to vector<72x18xf32>
    %83 = arith.select %36, %81, %82 : vector<72x18xi1>, vector<72x18xf32>
    %cst_28 = arith.constant dense<0xFF800000> : vector<72xf32>
    %84 = vector.multi_reduction <maximumf>, %83, %cst_28 [1] : vector<72x18xf32> to vector<72xf32>
    %85 = vector.shape_cast %84 : vector<72xf32> to vector<72x1xf32>
    %86 = vector.broadcast %85 : vector<72x1xf32> to vector<72x18xf32>
    %87 = arith.subf %83, %86 : vector<72x18xf32>
    %88 = math.exp %87 : vector<72x18xf32>
    %cst_29 = arith.constant dense<0.000000e+00> : vector<72xf32>
    %89 = vector.multi_reduction <add>, %88, %cst_29 [1] : vector<72x18xf32> to vector<72xf32>
    %90 = vector.shape_cast %89 : vector<72xf32> to vector<72x1xf32>
    %91 = tpu.reciprocal %90 {approx = true} : vector<72x1xf32> -> vector<72x1xf32>
    %92 = vector.broadcast %91 : vector<72x1xf32> to vector<72x18xf32>
    %93 = arith.mulf %88, %92 : vector<72x18xf32>
    %94 = arith.truncf %93 : vector<72x18xf32> to vector<72x18xbf16>
    %95 = arith.truncf %74 : vector<18x32xf32> to vector<18x32xbf16>
    %cst_30 = arith.constant dense<0.000000e+00> : vector<72x32xf32>
    %96 = tpu.matmul %94, %95, %cst_30 {dimension_numbers = #tpu.dot_dimension_numbers<[1], [0], [0], [1], [0, 0, 1, 1], [], []>} : vector<72x18xbf16>, vector<18x32xbf16>, vector<72x32xf32> -> vector<72x32xf32>
    %97 = arith.mulf %96, %27 : vector<72x32xf32>
    %cst_31 = arith.constant dense<0.000000e+00> : vector<18x32xf32>
    %98 = tpu.matmul %33, %97, %cst_31 {dimension_numbers = #tpu.dot_dimension_numbers<[1], [0], [0], [1], [0, 0, 1, 1], [], []>} : vector<18x72xf32>, vector<72x32xf32>, vector<18x32xf32> -> vector<18x32xf32>
    %99 = arith.truncf %98 : vector<18x32xf32> to vector<18x32xbf16>
    %100 = vector.extract_strided_slice %64 {offsets = [0, 96], sizes = [32, 32], strides = [1, 1]} : vector<32x256xbf16> to vector<32x32xbf16>
    %cst_32 = arith.constant dense<0.000000e+00> : vector<18x32xf32>
    %101 = tpu.matmul %99, %100, %cst_32 {dimension_numbers = #tpu.dot_dimension_numbers<[1], [0], [0], [1], [0, 0, 1, 1], [], []>} : vector<18x32xbf16>, vector<32x32xbf16>, vector<18x32xf32> -> vector<18x32xf32>
    %c0_33 = arith.constant 0 : index
    %c1 = arith.constant 1 : index
    %c0_34 = arith.constant 0 : index
    %102 = vector.load %arg7[%c0_33, %c1, %c0_34] : memref<2x13x96xf32, #tpu.memory_space<vmem>>, vector<1x1x32xf32>
    %103 = vector.shape_cast %102 : vector<1x1x32xf32> to vector<1x32xf32>
    %104 = vector.broadcast %103 : vector<1x32xf32> to vector<18x32xf32>
    %105 = arith.addf %101, %104 : vector<18x32xf32>
    %106 = arith.addf %58, %105 : vector<18x32xf32>
    %c0_35 = arith.constant 0 : index
    %c7 = arith.constant 7 : index
    %c0_36 = arith.constant 0 : index
    %107 = vector.load %arg7[%c0_35, %c7, %c0_36] : memref<2x13x96xf32, #tpu.memory_space<vmem>>, vector<1x1x32xf32>
    %108 = vector.shape_cast %107 : vector<1x1x32xf32> to vector<1x32xf32>
    %c0_37 = arith.constant 0 : index
    %c8 = arith.constant 8 : index
    %c0_38 = arith.constant 0 : index
    %109 = vector.load %arg7[%c0_37, %c8, %c0_38] : memref<2x13x96xf32, #tpu.memory_space<vmem>>, vector<1x1x32xf32>
    %110 = vector.shape_cast %109 : vector<1x1x32xf32> to vector<1x32xf32>
    %cst_39 = arith.constant dense<0.000000e+00> : vector<18xf32>
    %111 = vector.multi_reduction <add>, %106, %cst_39 [1] : vector<18x32xf32> to vector<18xf32>
    %112 = vector.shape_cast %111 : vector<18xf32> to vector<18x1xf32>
    %cst_40 = arith.constant 3.200000e+01 : f32
    %113 = vector.broadcast %cst_40 : f32 to vector<18x1xf32>
    %114 = arith.divf %112, %113 : vector<18x1xf32>
    %115 = vector.broadcast %114 : vector<18x1xf32> to vector<18x32xf32>
    %116 = arith.subf %106, %115 : vector<18x32xf32>
    %117 = arith.mulf %116, %116 : vector<18x32xf32>
    %cst_41 = arith.constant dense<0.000000e+00> : vector<18xf32>
    %118 = vector.multi_reduction <add>, %117, %cst_41 [1] : vector<18x32xf32> to vector<18xf32>
    %119 = vector.shape_cast %118 : vector<18xf32> to vector<18x1xf32>
    %cst_42 = arith.constant 3.200000e+01 : f32
    %120 = vector.broadcast %cst_42 : f32 to vector<18x1xf32>
    %121 = arith.divf %119, %120 : vector<18x1xf32>
    %122 = vector.broadcast %114 : vector<18x1xf32> to vector<18x32xf32>
    %123 = arith.subf %106, %122 : vector<18x32xf32>
    %cst_43 = arith.constant 9.99999974E-6 : f32
    %124 = vector.broadcast %cst_43 : f32 to vector<18x1xf32>
    %125 = arith.addf %121, %124 : vector<18x1xf32>
    %126 = math.rsqrt %125 : vector<18x1xf32>
    %127 = vector.broadcast %126 : vector<18x1xf32> to vector<18x32xf32>
    %128 = arith.mulf %123, %127 : vector<18x32xf32>
    %129 = vector.broadcast %108 : vector<1x32xf32> to vector<18x32xf32>
    %130 = arith.mulf %128, %129 : vector<18x32xf32>
    %131 = vector.broadcast %110 : vector<1x32xf32> to vector<18x32xf32>
    %132 = arith.addf %130, %131 : vector<18x32xf32>
    %133 = arith.truncf %132 : vector<18x32xf32> to vector<18x32xbf16>
    %134 = vector.extract_strided_slice %64 {offsets = [0, 128], sizes = [32, 32], strides = [1, 1]} : vector<32x256xbf16> to vector<32x32xbf16>
    %cst_44 = arith.constant dense<0.000000e+00> : vector<18x32xf32>
    %135 = tpu.matmul %133, %134, %cst_44 {dimension_numbers = #tpu.dot_dimension_numbers<[1], [0], [0], [1], [0, 0, 1, 1], [], []>} : vector<18x32xbf16>, vector<32x32xbf16>, vector<18x32xf32> -> vector<18x32xf32>
    %c0_45 = arith.constant 0 : index
    %c2 = arith.constant 2 : index
    %c0_46 = arith.constant 0 : index
    %136 = vector.load %arg7[%c0_45, %c2, %c0_46] : memref<2x13x96xf32, #tpu.memory_space<vmem>>, vector<1x1x32xf32>
    %137 = vector.shape_cast %136 : vector<1x1x32xf32> to vector<1x32xf32>
    %138 = vector.broadcast %137 : vector<1x32xf32> to vector<18x32xf32>
    %139 = arith.addf %135, %138 : vector<18x32xf32>
    %140 = vector.extract_strided_slice %62 {offsets = [0, 0], sizes = [10, 64], strides = [1, 1]} : vector<10x128xf32> to vector<10x64xf32>
    %c0_47 = arith.constant 0 : index
    %c3 = arith.constant 3 : index
    %c0_48 = arith.constant 0 : index
    %141 = vector.load %arg7[%c0_47, %c3, %c0_48] : memref<2x13x96xf32, #tpu.memory_space<vmem>>, vector<1x1x64xf32>
    %142 = vector.shape_cast %141 : vector<1x1x64xf32> to vector<1x64xf32>
    %143 = vector.broadcast %142 : vector<1x64xf32> to vector<10x64xf32>
    %144 = arith.addf %140, %143 : vector<10x64xf32>
    %145 = vector.extract_strided_slice %144 {offsets = [0, 0], sizes = [10, 32], strides = [1, 1]} : vector<10x64xf32> to vector<10x32xf32>
    %146 = vector.extract_strided_slice %144 {offsets = [0, 32], sizes = [10, 32], strides = [1, 1]} : vector<10x64xf32> to vector<10x32xf32>
    %147 = tpu.concatenate %139, %139, %139, %139 in 0 : vector<18x32xf32>, vector<18x32xf32>, vector<18x32xf32>, vector<18x32xf32> -> vector<72x32xf32>
    %148 = arith.mulf %147, %27 : vector<72x32xf32>
    %149 = arith.truncf %148 : vector<72x32xf32> to vector<72x32xbf16>
    %150 = arith.truncf %145 : vector<10x32xf32> to vector<10x32xbf16>
    %cst_49 = arith.constant dense<0.000000e+00> : vector<72x10xf32>
    %151 = tpu.matmul %149, %150, %cst_49 {dimension_numbers = #tpu.dot_dimension_numbers<[1], [1], [0], [0], [0, 0, 1, 0], [], []>} : vector<72x32xbf16>, vector<10x32xbf16>, vector<72x10xf32> -> vector<72x10xf32>
    %cst_50 = arith.constant 0.353553385 : f32
    %152 = vector.broadcast %cst_50 : f32 to vector<72x10xf32>
    %153 = arith.mulf %151, %152 : vector<72x10xf32>
    %cst_51 = arith.constant -1.000000e+30 : f32
    %154 = vector.broadcast %cst_51 : f32 to vector<72x10xf32>
    %155 = arith.select %39, %153, %154 : vector<72x10xi1>, vector<72x10xf32>
    %cst_52 = arith.constant dense<0xFF800000> : vector<72xf32>
    %156 = vector.multi_reduction <maximumf>, %155, %cst_52 [1] : vector<72x10xf32> to vector<72xf32>
    %157 = vector.shape_cast %156 : vector<72xf32> to vector<72x1xf32>
    %158 = vector.broadcast %157 : vector<72x1xf32> to vector<72x10xf32>
    %159 = arith.subf %155, %158 : vector<72x10xf32>
    %160 = math.exp %159 : vector<72x10xf32>
    %cst_53 = arith.constant dense<0.000000e+00> : vector<72xf32>
    %161 = vector.multi_reduction <add>, %160, %cst_53 [1] : vector<72x10xf32> to vector<72xf32>
    %162 = vector.shape_cast %161 : vector<72xf32> to vector<72x1xf32>
    %163 = tpu.reciprocal %162 {approx = true} : vector<72x1xf32> -> vector<72x1xf32>
    %164 = vector.broadcast %163 : vector<72x1xf32> to vector<72x10xf32>
    %165 = arith.mulf %160, %164 : vector<72x10xf32>
    %166 = arith.truncf %165 : vector<72x10xf32> to vector<72x10xbf16>
    %167 = arith.truncf %146 : vector<10x32xf32> to vector<10x32xbf16>
    %cst_54 = arith.constant dense<0.000000e+00> : vector<72x32xf32>
    %168 = tpu.matmul %166, %167, %cst_54 {dimension_numbers = #tpu.dot_dimension_numbers<[1], [0], [0], [1], [0, 0, 1, 1], [], []>} : vector<72x10xbf16>, vector<10x32xbf16>, vector<72x32xf32> -> vector<72x32xf32>
    %169 = arith.mulf %168, %27 : vector<72x32xf32>
    %cst_55 = arith.constant dense<0.000000e+00> : vector<18x32xf32>
    %170 = tpu.matmul %33, %169, %cst_55 {dimension_numbers = #tpu.dot_dimension_numbers<[1], [0], [0], [1], [0, 0, 1, 1], [], []>} : vector<18x72xf32>, vector<72x32xf32>, vector<18x32xf32> -> vector<18x32xf32>
    %171 = arith.truncf %170 : vector<18x32xf32> to vector<18x32xbf16>
    %172 = vector.extract_strided_slice %64 {offsets = [0, 160], sizes = [32, 32], strides = [1, 1]} : vector<32x256xbf16> to vector<32x32xbf16>
    %cst_56 = arith.constant dense<0.000000e+00> : vector<18x32xf32>
    %173 = tpu.matmul %171, %172, %cst_56 {dimension_numbers = #tpu.dot_dimension_numbers<[1], [0], [0], [1], [0, 0, 1, 1], [], []>} : vector<18x32xbf16>, vector<32x32xbf16>, vector<18x32xf32> -> vector<18x32xf32>
    %c0_57 = arith.constant 0 : index
    %c4 = arith.constant 4 : index
    %c0_58 = arith.constant 0 : index
    %174 = vector.load %arg7[%c0_57, %c4, %c0_58] : memref<2x13x96xf32, #tpu.memory_space<vmem>>, vector<1x1x32xf32>
    %175 = vector.shape_cast %174 : vector<1x1x32xf32> to vector<1x32xf32>
    %176 = vector.broadcast %175 : vector<1x32xf32> to vector<18x32xf32>
    %177 = arith.addf %173, %176 : vector<18x32xf32>
    %178 = arith.addf %132, %177 : vector<18x32xf32>
    %c0_59 = arith.constant 0 : index
    %c9 = arith.constant 9 : index
    %c0_60 = arith.constant 0 : index
    %179 = vector.load %arg7[%c0_59, %c9, %c0_60] : memref<2x13x96xf32, #tpu.memory_space<vmem>>, vector<1x1x32xf32>
    %180 = vector.shape_cast %179 : vector<1x1x32xf32> to vector<1x32xf32>
    %c0_61 = arith.constant 0 : index
    %c10 = arith.constant 10 : index
    %c0_62 = arith.constant 0 : index
    %181 = vector.load %arg7[%c0_61, %c10, %c0_62] : memref<2x13x96xf32, #tpu.memory_space<vmem>>, vector<1x1x32xf32>
    %182 = vector.shape_cast %181 : vector<1x1x32xf32> to vector<1x32xf32>
    %cst_63 = arith.constant dense<0.000000e+00> : vector<18xf32>
    %183 = vector.multi_reduction <add>, %178, %cst_63 [1] : vector<18x32xf32> to vector<18xf32>
    %184 = vector.shape_cast %183 : vector<18xf32> to vector<18x1xf32>
    %cst_64 = arith.constant 3.200000e+01 : f32
    %185 = vector.broadcast %cst_64 : f32 to vector<18x1xf32>
    %186 = arith.divf %184, %185 : vector<18x1xf32>
    %187 = vector.broadcast %186 : vector<18x1xf32> to vector<18x32xf32>
    %188 = arith.subf %178, %187 : vector<18x32xf32>
    %189 = arith.mulf %188, %188 : vector<18x32xf32>
    %cst_65 = arith.constant dense<0.000000e+00> : vector<18xf32>
    %190 = vector.multi_reduction <add>, %189, %cst_65 [1] : vector<18x32xf32> to vector<18xf32>
    %191 = vector.shape_cast %190 : vector<18xf32> to vector<18x1xf32>
    %cst_66 = arith.constant 3.200000e+01 : f32
    %192 = vector.broadcast %cst_66 : f32 to vector<18x1xf32>
    %193 = arith.divf %191, %192 : vector<18x1xf32>
    %194 = vector.broadcast %186 : vector<18x1xf32> to vector<18x32xf32>
    %195 = arith.subf %178, %194 : vector<18x32xf32>
    %cst_67 = arith.constant 9.99999974E-6 : f32
    %196 = vector.broadcast %cst_67 : f32 to vector<18x1xf32>
    %197 = arith.addf %193, %196 : vector<18x1xf32>
    %198 = math.rsqrt %197 : vector<18x1xf32>
    %199 = vector.broadcast %198 : vector<18x1xf32> to vector<18x32xf32>
    %200 = arith.mulf %195, %199 : vector<18x32xf32>
    %201 = vector.broadcast %180 : vector<1x32xf32> to vector<18x32xf32>
    %202 = arith.mulf %200, %201 : vector<18x32xf32>
    %203 = vector.broadcast %182 : vector<1x32xf32> to vector<18x32xf32>
    %204 = arith.addf %202, %203 : vector<18x32xf32>
    %205 = arith.truncf %204 : vector<18x32xf32> to vector<18x32xbf16>
    %206 = vector.extract_strided_slice %64 {offsets = [0, 192], sizes = [32, 64], strides = [1, 1]} : vector<32x256xbf16> to vector<32x64xbf16>
    %cst_68 = arith.constant dense<0.000000e+00> : vector<18x64xf32>
    %207 = tpu.matmul %205, %206, %cst_68 {dimension_numbers = #tpu.dot_dimension_numbers<[1], [0], [0], [1], [0, 0, 1, 1], [], []>} : vector<18x32xbf16>, vector<32x64xbf16>, vector<18x64xf32> -> vector<18x64xf32>
    %c0_69 = arith.constant 0 : index
    %c5 = arith.constant 5 : index
    %c0_70 = arith.constant 0 : index
    %208 = vector.load %arg7[%c0_69, %c5, %c0_70] : memref<2x13x96xf32, #tpu.memory_space<vmem>>, vector<1x1x64xf32>
    %209 = vector.shape_cast %208 : vector<1x1x64xf32> to vector<1x64xf32>
    %210 = vector.broadcast %209 : vector<1x64xf32> to vector<18x64xf32>
    %211 = arith.addf %207, %210 : vector<18x64xf32>
    %cst_71 = arith.constant 0.000000e+00 : f32
    %212 = vector.broadcast %cst_71 : f32 to vector<18x64xf32>
    %213 = arith.maximumf %211, %212 : vector<18x64xf32>
    %214 = arith.truncf %213 : vector<18x64xf32> to vector<18x64xbf16>
    %c0_72 = arith.constant 0 : index
    %c0_73 = arith.constant 0 : index
    %c0_74 = arith.constant 0 : index
    %215 = vector.load %arg6[%c0_72, %c0_73, %c0_74] : memref<2x64x32xbf16, #tpu.memory_space<vmem>>, vector<1x64x32xbf16>
    %216 = vector.shape_cast %215 : vector<1x64x32xbf16> to vector<64x32xbf16>
    %cst_75 = arith.constant dense<0.000000e+00> : vector<18x32xf32>
    %217 = tpu.matmul %214, %216, %cst_75 {dimension_numbers = #tpu.dot_dimension_numbers<[1], [0], [0], [1], [0, 0, 1, 1], [], []>} : vector<18x64xbf16>, vector<64x32xbf16>, vector<18x32xf32> -> vector<18x32xf32>
    %c0_76 = arith.constant 0 : index
    %c6 = arith.constant 6 : index
    %c0_77 = arith.constant 0 : index
    %218 = vector.load %arg7[%c0_76, %c6, %c0_77] : memref<2x13x96xf32, #tpu.memory_space<vmem>>, vector<1x1x32xf32>
    %219 = vector.shape_cast %218 : vector<1x1x32xf32> to vector<1x32xf32>
    %220 = vector.broadcast %219 : vector<1x32xf32> to vector<18x32xf32>
    %221 = arith.addf %217, %220 : vector<18x32xf32>
    %222 = arith.addf %204, %221 : vector<18x32xf32>
    %c0_78 = arith.constant 0 : index
    %c11 = arith.constant 11 : index
    %c0_79 = arith.constant 0 : index
    %223 = vector.load %arg7[%c0_78, %c11, %c0_79] : memref<2x13x96xf32, #tpu.memory_space<vmem>>, vector<1x1x32xf32>
    %224 = vector.shape_cast %223 : vector<1x1x32xf32> to vector<1x32xf32>
    %c0_80 = arith.constant 0 : index
    %c12 = arith.constant 12 : index
    %c0_81 = arith.constant 0 : index
    %225 = vector.load %arg7[%c0_80, %c12, %c0_81] : memref<2x13x96xf32, #tpu.memory_space<vmem>>, vector<1x1x32xf32>
    %226 = vector.shape_cast %225 : vector<1x1x32xf32> to vector<1x32xf32>
    %cst_82 = arith.constant dense<0.000000e+00> : vector<18xf32>
    %227 = vector.multi_reduction <add>, %222, %cst_82 [1] : vector<18x32xf32> to vector<18xf32>
    %228 = vector.shape_cast %227 : vector<18xf32> to vector<18x1xf32>
    %cst_83 = arith.constant 3.200000e+01 : f32
    %229 = vector.broadcast %cst_83 : f32 to vector<18x1xf32>
    %230 = arith.divf %228, %229 : vector<18x1xf32>
    %231 = vector.broadcast %230 : vector<18x1xf32> to vector<18x32xf32>
    %232 = arith.subf %222, %231 : vector<18x32xf32>
    %233 = arith.mulf %232, %232 : vector<18x32xf32>
    %cst_84 = arith.constant dense<0.000000e+00> : vector<18xf32>
    %234 = vector.multi_reduction <add>, %233, %cst_84 [1] : vector<18x32xf32> to vector<18xf32>
    %235 = vector.shape_cast %234 : vector<18xf32> to vector<18x1xf32>
    %cst_85 = arith.constant 3.200000e+01 : f32
    %236 = vector.broadcast %cst_85 : f32 to vector<18x1xf32>
    %237 = arith.divf %235, %236 : vector<18x1xf32>
    %238 = vector.broadcast %230 : vector<18x1xf32> to vector<18x32xf32>
    %239 = arith.subf %222, %238 : vector<18x32xf32>
    %cst_86 = arith.constant 9.99999974E-6 : f32
    %240 = vector.broadcast %cst_86 : f32 to vector<18x1xf32>
    %241 = arith.addf %237, %240 : vector<18x1xf32>
    %242 = math.rsqrt %241 : vector<18x1xf32>
    %243 = vector.broadcast %242 : vector<18x1xf32> to vector<18x32xf32>
    %244 = arith.mulf %239, %243 : vector<18x32xf32>
    %245 = vector.broadcast %224 : vector<1x32xf32> to vector<18x32xf32>
    %246 = arith.mulf %244, %245 : vector<18x32xf32>
    %247 = vector.broadcast %226 : vector<1x32xf32> to vector<18x32xf32>
    %248 = arith.addf %246, %247 : vector<18x32xf32>
    %c1_87 = arith.constant 1 : index
    %c0_88 = arith.constant 0 : index
    %c0_89 = arith.constant 0 : index
    %249 = vector.load %arg4[%c1_87, %c0_88, %c0_89] : memref<2x32x256xbf16, #tpu.memory_space<vmem>>, vector<1x32x256xbf16>
    %250 = vector.shape_cast %249 : vector<1x32x256xbf16> to vector<32x256xbf16>
    %251 = arith.truncf %248 : vector<18x32xf32> to vector<18x32xbf16>
    %252 = vector.extract_strided_slice %250 {offsets = [0, 0], sizes = [32, 96], strides = [1, 1]} : vector<32x256xbf16> to vector<32x96xbf16>
    %cst_90 = arith.constant dense<0.000000e+00> : vector<18x96xf32>
    %253 = tpu.matmul %251, %252, %cst_90 {dimension_numbers = #tpu.dot_dimension_numbers<[1], [0], [0], [1], [0, 0, 1, 1], [], []>} : vector<18x32xbf16>, vector<32x96xbf16>, vector<18x96xf32> -> vector<18x96xf32>
    %c1_91 = arith.constant 1 : index
    %c0_92 = arith.constant 0 : index
    %c0_93 = arith.constant 0 : index
    %254 = vector.load %arg7[%c1_91, %c0_92, %c0_93] : memref<2x13x96xf32, #tpu.memory_space<vmem>>, vector<1x1x96xf32>
    %255 = vector.shape_cast %254 : vector<1x1x96xf32> to vector<1x96xf32>
    %256 = vector.broadcast %255 : vector<1x96xf32> to vector<18x96xf32>
    %257 = arith.addf %253, %256 : vector<18x96xf32>
    %258 = vector.extract_strided_slice %257 {offsets = [0, 0], sizes = [18, 32], strides = [1, 1]} : vector<18x96xf32> to vector<18x32xf32>
    %259 = vector.extract_strided_slice %257 {offsets = [0, 32], sizes = [18, 32], strides = [1, 1]} : vector<18x96xf32> to vector<18x32xf32>
    %260 = vector.extract_strided_slice %257 {offsets = [0, 64], sizes = [18, 32], strides = [1, 1]} : vector<18x96xf32> to vector<18x32xf32>
    %261 = tpu.concatenate %258, %258, %258, %258 in 0 : vector<18x32xf32>, vector<18x32xf32>, vector<18x32xf32>, vector<18x32xf32> -> vector<72x32xf32>
    %262 = arith.mulf %261, %27 : vector<72x32xf32>
    %263 = arith.truncf %262 : vector<72x32xf32> to vector<72x32xbf16>
    %264 = arith.truncf %259 : vector<18x32xf32> to vector<18x32xbf16>
    %cst_94 = arith.constant dense<0.000000e+00> : vector<72x18xf32>
    %265 = tpu.matmul %263, %264, %cst_94 {dimension_numbers = #tpu.dot_dimension_numbers<[1], [1], [0], [0], [0, 0, 1, 0], [], []>} : vector<72x32xbf16>, vector<18x32xbf16>, vector<72x18xf32> -> vector<72x18xf32>
    %cst_95 = arith.constant 0.353553385 : f32
    %266 = vector.broadcast %cst_95 : f32 to vector<72x18xf32>
    %267 = arith.mulf %265, %266 : vector<72x18xf32>
    %cst_96 = arith.constant -1.000000e+30 : f32
    %268 = vector.broadcast %cst_96 : f32 to vector<72x18xf32>
    %269 = arith.select %36, %267, %268 : vector<72x18xi1>, vector<72x18xf32>
    %cst_97 = arith.constant dense<0xFF800000> : vector<72xf32>
    %270 = vector.multi_reduction <maximumf>, %269, %cst_97 [1] : vector<72x18xf32> to vector<72xf32>
    %271 = vector.shape_cast %270 : vector<72xf32> to vector<72x1xf32>
    %272 = vector.broadcast %271 : vector<72x1xf32> to vector<72x18xf32>
    %273 = arith.subf %269, %272 : vector<72x18xf32>
    %274 = math.exp %273 : vector<72x18xf32>
    %cst_98 = arith.constant dense<0.000000e+00> : vector<72xf32>
    %275 = vector.multi_reduction <add>, %274, %cst_98 [1] : vector<72x18xf32> to vector<72xf32>
    %276 = vector.shape_cast %275 : vector<72xf32> to vector<72x1xf32>
    %277 = tpu.reciprocal %276 {approx = true} : vector<72x1xf32> -> vector<72x1xf32>
    %278 = vector.broadcast %277 : vector<72x1xf32> to vector<72x18xf32>
    %279 = arith.mulf %274, %278 : vector<72x18xf32>
    %280 = arith.truncf %279 : vector<72x18xf32> to vector<72x18xbf16>
    %281 = arith.truncf %260 : vector<18x32xf32> to vector<18x32xbf16>
    %cst_99 = arith.constant dense<0.000000e+00> : vector<72x32xf32>
    %282 = tpu.matmul %280, %281, %cst_99 {dimension_numbers = #tpu.dot_dimension_numbers<[1], [0], [0], [1], [0, 0, 1, 1], [], []>} : vector<72x18xbf16>, vector<18x32xbf16>, vector<72x32xf32> -> vector<72x32xf32>
    %283 = arith.mulf %282, %27 : vector<72x32xf32>
    %cst_100 = arith.constant dense<0.000000e+00> : vector<18x32xf32>
    %284 = tpu.matmul %33, %283, %cst_100 {dimension_numbers = #tpu.dot_dimension_numbers<[1], [0], [0], [1], [0, 0, 1, 1], [], []>} : vector<18x72xf32>, vector<72x32xf32>, vector<18x32xf32> -> vector<18x32xf32>
    %285 = arith.truncf %284 : vector<18x32xf32> to vector<18x32xbf16>
    %286 = vector.extract_strided_slice %250 {offsets = [0, 96], sizes = [32, 32], strides = [1, 1]} : vector<32x256xbf16> to vector<32x32xbf16>
    %cst_101 = arith.constant dense<0.000000e+00> : vector<18x32xf32>
    %287 = tpu.matmul %285, %286, %cst_101 {dimension_numbers = #tpu.dot_dimension_numbers<[1], [0], [0], [1], [0, 0, 1, 1], [], []>} : vector<18x32xbf16>, vector<32x32xbf16>, vector<18x32xf32> -> vector<18x32xf32>
    %c1_102 = arith.constant 1 : index
    %c1_103 = arith.constant 1 : index
    %c0_104 = arith.constant 0 : index
    %288 = vector.load %arg7[%c1_102, %c1_103, %c0_104] : memref<2x13x96xf32, #tpu.memory_space<vmem>>, vector<1x1x32xf32>
    %289 = vector.shape_cast %288 : vector<1x1x32xf32> to vector<1x32xf32>
    %290 = vector.broadcast %289 : vector<1x32xf32> to vector<18x32xf32>
    %291 = arith.addf %287, %290 : vector<18x32xf32>
    %292 = arith.addf %248, %291 : vector<18x32xf32>
    %c1_105 = arith.constant 1 : index
    %c7_106 = arith.constant 7 : index
    %c0_107 = arith.constant 0 : index
    %293 = vector.load %arg7[%c1_105, %c7_106, %c0_107] : memref<2x13x96xf32, #tpu.memory_space<vmem>>, vector<1x1x32xf32>
    %294 = vector.shape_cast %293 : vector<1x1x32xf32> to vector<1x32xf32>
    %c1_108 = arith.constant 1 : index
    %c8_109 = arith.constant 8 : index
    %c0_110 = arith.constant 0 : index
    %295 = vector.load %arg7[%c1_108, %c8_109, %c0_110] : memref<2x13x96xf32, #tpu.memory_space<vmem>>, vector<1x1x32xf32>
    %296 = vector.shape_cast %295 : vector<1x1x32xf32> to vector<1x32xf32>
    %cst_111 = arith.constant dense<0.000000e+00> : vector<18xf32>
    %297 = vector.multi_reduction <add>, %292, %cst_111 [1] : vector<18x32xf32> to vector<18xf32>
    %298 = vector.shape_cast %297 : vector<18xf32> to vector<18x1xf32>
    %cst_112 = arith.constant 3.200000e+01 : f32
    %299 = vector.broadcast %cst_112 : f32 to vector<18x1xf32>
    %300 = arith.divf %298, %299 : vector<18x1xf32>
    %301 = vector.broadcast %300 : vector<18x1xf32> to vector<18x32xf32>
    %302 = arith.subf %292, %301 : vector<18x32xf32>
    %303 = arith.mulf %302, %302 : vector<18x32xf32>
    %cst_113 = arith.constant dense<0.000000e+00> : vector<18xf32>
    %304 = vector.multi_reduction <add>, %303, %cst_113 [1] : vector<18x32xf32> to vector<18xf32>
    %305 = vector.shape_cast %304 : vector<18xf32> to vector<18x1xf32>
    %cst_114 = arith.constant 3.200000e+01 : f32
    %306 = vector.broadcast %cst_114 : f32 to vector<18x1xf32>
    %307 = arith.divf %305, %306 : vector<18x1xf32>
    %308 = vector.broadcast %300 : vector<18x1xf32> to vector<18x32xf32>
    %309 = arith.subf %292, %308 : vector<18x32xf32>
    %cst_115 = arith.constant 9.99999974E-6 : f32
    %310 = vector.broadcast %cst_115 : f32 to vector<18x1xf32>
    %311 = arith.addf %307, %310 : vector<18x1xf32>
    %312 = math.rsqrt %311 : vector<18x1xf32>
    %313 = vector.broadcast %312 : vector<18x1xf32> to vector<18x32xf32>
    %314 = arith.mulf %309, %313 : vector<18x32xf32>
    %315 = vector.broadcast %294 : vector<1x32xf32> to vector<18x32xf32>
    %316 = arith.mulf %314, %315 : vector<18x32xf32>
    %317 = vector.broadcast %296 : vector<1x32xf32> to vector<18x32xf32>
    %318 = arith.addf %316, %317 : vector<18x32xf32>
    %319 = arith.truncf %318 : vector<18x32xf32> to vector<18x32xbf16>
    %320 = vector.extract_strided_slice %250 {offsets = [0, 128], sizes = [32, 32], strides = [1, 1]} : vector<32x256xbf16> to vector<32x32xbf16>
    %cst_116 = arith.constant dense<0.000000e+00> : vector<18x32xf32>
    %321 = tpu.matmul %319, %320, %cst_116 {dimension_numbers = #tpu.dot_dimension_numbers<[1], [0], [0], [1], [0, 0, 1, 1], [], []>} : vector<18x32xbf16>, vector<32x32xbf16>, vector<18x32xf32> -> vector<18x32xf32>
    %c1_117 = arith.constant 1 : index
    %c2_118 = arith.constant 2 : index
    %c0_119 = arith.constant 0 : index
    %322 = vector.load %arg7[%c1_117, %c2_118, %c0_119] : memref<2x13x96xf32, #tpu.memory_space<vmem>>, vector<1x1x32xf32>
    %323 = vector.shape_cast %322 : vector<1x1x32xf32> to vector<1x32xf32>
    %324 = vector.broadcast %323 : vector<1x32xf32> to vector<18x32xf32>
    %325 = arith.addf %321, %324 : vector<18x32xf32>
    %326 = vector.extract_strided_slice %62 {offsets = [0, 64], sizes = [10, 64], strides = [1, 1]} : vector<10x128xf32> to vector<10x64xf32>
    %c1_120 = arith.constant 1 : index
    %c3_121 = arith.constant 3 : index
    %c0_122 = arith.constant 0 : index
    %327 = vector.load %arg7[%c1_120, %c3_121, %c0_122] : memref<2x13x96xf32, #tpu.memory_space<vmem>>, vector<1x1x64xf32>
    %328 = vector.shape_cast %327 : vector<1x1x64xf32> to vector<1x64xf32>
    %329 = vector.broadcast %328 : vector<1x64xf32> to vector<10x64xf32>
    %330 = arith.addf %326, %329 : vector<10x64xf32>
    %331 = vector.extract_strided_slice %330 {offsets = [0, 0], sizes = [10, 32], strides = [1, 1]} : vector<10x64xf32> to vector<10x32xf32>
    %332 = vector.extract_strided_slice %330 {offsets = [0, 32], sizes = [10, 32], strides = [1, 1]} : vector<10x64xf32> to vector<10x32xf32>
    %333 = tpu.concatenate %325, %325, %325, %325 in 0 : vector<18x32xf32>, vector<18x32xf32>, vector<18x32xf32>, vector<18x32xf32> -> vector<72x32xf32>
    %334 = arith.mulf %333, %27 : vector<72x32xf32>
    %335 = arith.truncf %334 : vector<72x32xf32> to vector<72x32xbf16>
    %336 = arith.truncf %331 : vector<10x32xf32> to vector<10x32xbf16>
    %cst_123 = arith.constant dense<0.000000e+00> : vector<72x10xf32>
    %337 = tpu.matmul %335, %336, %cst_123 {dimension_numbers = #tpu.dot_dimension_numbers<[1], [1], [0], [0], [0, 0, 1, 0], [], []>} : vector<72x32xbf16>, vector<10x32xbf16>, vector<72x10xf32> -> vector<72x10xf32>
    %cst_124 = arith.constant 0.353553385 : f32
    %338 = vector.broadcast %cst_124 : f32 to vector<72x10xf32>
    %339 = arith.mulf %337, %338 : vector<72x10xf32>
    %cst_125 = arith.constant -1.000000e+30 : f32
    %340 = vector.broadcast %cst_125 : f32 to vector<72x10xf32>
    %341 = arith.select %39, %339, %340 : vector<72x10xi1>, vector<72x10xf32>
    %cst_126 = arith.constant dense<0xFF800000> : vector<72xf32>
    %342 = vector.multi_reduction <maximumf>, %341, %cst_126 [1] : vector<72x10xf32> to vector<72xf32>
    %343 = vector.shape_cast %342 : vector<72xf32> to vector<72x1xf32>
    %344 = vector.broadcast %343 : vector<72x1xf32> to vector<72x10xf32>
    %345 = arith.subf %341, %344 : vector<72x10xf32>
    %346 = math.exp %345 : vector<72x10xf32>
    %cst_127 = arith.constant dense<0.000000e+00> : vector<72xf32>
    %347 = vector.multi_reduction <add>, %346, %cst_127 [1] : vector<72x10xf32> to vector<72xf32>
    %348 = vector.shape_cast %347 : vector<72xf32> to vector<72x1xf32>
    %349 = tpu.reciprocal %348 {approx = true} : vector<72x1xf32> -> vector<72x1xf32>
    %350 = vector.broadcast %349 : vector<72x1xf32> to vector<72x10xf32>
    %351 = arith.mulf %346, %350 : vector<72x10xf32>
    %352 = arith.truncf %351 : vector<72x10xf32> to vector<72x10xbf16>
    %353 = arith.truncf %332 : vector<10x32xf32> to vector<10x32xbf16>
    %cst_128 = arith.constant dense<0.000000e+00> : vector<72x32xf32>
    %354 = tpu.matmul %352, %353, %cst_128 {dimension_numbers = #tpu.dot_dimension_numbers<[1], [0], [0], [1], [0, 0, 1, 1], [], []>} : vector<72x10xbf16>, vector<10x32xbf16>, vector<72x32xf32> -> vector<72x32xf32>
    %355 = arith.mulf %354, %27 : vector<72x32xf32>
    %cst_129 = arith.constant dense<0.000000e+00> : vector<18x32xf32>
    %356 = tpu.matmul %33, %355, %cst_129 {dimension_numbers = #tpu.dot_dimension_numbers<[1], [0], [0], [1], [0, 0, 1, 1], [], []>} : vector<18x72xf32>, vector<72x32xf32>, vector<18x32xf32> -> vector<18x32xf32>
    %357 = arith.truncf %356 : vector<18x32xf32> to vector<18x32xbf16>
    %358 = vector.extract_strided_slice %250 {offsets = [0, 160], sizes = [32, 32], strides = [1, 1]} : vector<32x256xbf16> to vector<32x32xbf16>
    %cst_130 = arith.constant dense<0.000000e+00> : vector<18x32xf32>
    %359 = tpu.matmul %357, %358, %cst_130 {dimension_numbers = #tpu.dot_dimension_numbers<[1], [0], [0], [1], [0, 0, 1, 1], [], []>} : vector<18x32xbf16>, vector<32x32xbf16>, vector<18x32xf32> -> vector<18x32xf32>
    %c1_131 = arith.constant 1 : index
    %c4_132 = arith.constant 4 : index
    %c0_133 = arith.constant 0 : index
    %360 = vector.load %arg7[%c1_131, %c4_132, %c0_133] : memref<2x13x96xf32, #tpu.memory_space<vmem>>, vector<1x1x32xf32>
    %361 = vector.shape_cast %360 : vector<1x1x32xf32> to vector<1x32xf32>
    %362 = vector.broadcast %361 : vector<1x32xf32> to vector<18x32xf32>
    %363 = arith.addf %359, %362 : vector<18x32xf32>
    %364 = arith.addf %318, %363 : vector<18x32xf32>
    %c1_134 = arith.constant 1 : index
    %c9_135 = arith.constant 9 : index
    %c0_136 = arith.constant 0 : index
    %365 = vector.load %arg7[%c1_134, %c9_135, %c0_136] : memref<2x13x96xf32, #tpu.memory_space<vmem>>, vector<1x1x32xf32>
    %366 = vector.shape_cast %365 : vector<1x1x32xf32> to vector<1x32xf32>
    %c1_137 = arith.constant 1 : index
    %c10_138 = arith.constant 10 : index
    %c0_139 = arith.constant 0 : index
    %367 = vector.load %arg7[%c1_137, %c10_138, %c0_139] : memref<2x13x96xf32, #tpu.memory_space<vmem>>, vector<1x1x32xf32>
    %368 = vector.shape_cast %367 : vector<1x1x32xf32> to vector<1x32xf32>
    %cst_140 = arith.constant dense<0.000000e+00> : vector<18xf32>
    %369 = vector.multi_reduction <add>, %364, %cst_140 [1] : vector<18x32xf32> to vector<18xf32>
    %370 = vector.shape_cast %369 : vector<18xf32> to vector<18x1xf32>
    %cst_141 = arith.constant 3.200000e+01 : f32
    %371 = vector.broadcast %cst_141 : f32 to vector<18x1xf32>
    %372 = arith.divf %370, %371 : vector<18x1xf32>
    %373 = vector.broadcast %372 : vector<18x1xf32> to vector<18x32xf32>
    %374 = arith.subf %364, %373 : vector<18x32xf32>
    %375 = arith.mulf %374, %374 : vector<18x32xf32>
    %cst_142 = arith.constant dense<0.000000e+00> : vector<18xf32>
    %376 = vector.multi_reduction <add>, %375, %cst_142 [1] : vector<18x32xf32> to vector<18xf32>
    %377 = vector.shape_cast %376 : vector<18xf32> to vector<18x1xf32>
    %cst_143 = arith.constant 3.200000e+01 : f32
    %378 = vector.broadcast %cst_143 : f32 to vector<18x1xf32>
    %379 = arith.divf %377, %378 : vector<18x1xf32>
    %380 = vector.broadcast %372 : vector<18x1xf32> to vector<18x32xf32>
    %381 = arith.subf %364, %380 : vector<18x32xf32>
    %cst_144 = arith.constant 9.99999974E-6 : f32
    %382 = vector.broadcast %cst_144 : f32 to vector<18x1xf32>
    %383 = arith.addf %379, %382 : vector<18x1xf32>
    %384 = math.rsqrt %383 : vector<18x1xf32>
    %385 = vector.broadcast %384 : vector<18x1xf32> to vector<18x32xf32>
    %386 = arith.mulf %381, %385 : vector<18x32xf32>
    %387 = vector.broadcast %366 : vector<1x32xf32> to vector<18x32xf32>
    %388 = arith.mulf %386, %387 : vector<18x32xf32>
    %389 = vector.broadcast %368 : vector<1x32xf32> to vector<18x32xf32>
    %390 = arith.addf %388, %389 : vector<18x32xf32>
    %391 = arith.truncf %390 : vector<18x32xf32> to vector<18x32xbf16>
    %392 = vector.extract_strided_slice %250 {offsets = [0, 192], sizes = [32, 64], strides = [1, 1]} : vector<32x256xbf16> to vector<32x64xbf16>
    %cst_145 = arith.constant dense<0.000000e+00> : vector<18x64xf32>
    %393 = tpu.matmul %391, %392, %cst_145 {dimension_numbers = #tpu.dot_dimension_numbers<[1], [0], [0], [1], [0, 0, 1, 1], [], []>} : vector<18x32xbf16>, vector<32x64xbf16>, vector<18x64xf32> -> vector<18x64xf32>
    %c1_146 = arith.constant 1 : index
    %c5_147 = arith.constant 5 : index
    %c0_148 = arith.constant 0 : index
    %394 = vector.load %arg7[%c1_146, %c5_147, %c0_148] : memref<2x13x96xf32, #tpu.memory_space<vmem>>, vector<1x1x64xf32>
    %395 = vector.shape_cast %394 : vector<1x1x64xf32> to vector<1x64xf32>
    %396 = vector.broadcast %395 : vector<1x64xf32> to vector<18x64xf32>
    %397 = arith.addf %393, %396 : vector<18x64xf32>
    %cst_149 = arith.constant 0.000000e+00 : f32
    %398 = vector.broadcast %cst_149 : f32 to vector<18x64xf32>
    %399 = arith.maximumf %397, %398 : vector<18x64xf32>
    %400 = arith.truncf %399 : vector<18x64xf32> to vector<18x64xbf16>
    %c1_150 = arith.constant 1 : index
    %c0_151 = arith.constant 0 : index
    %c0_152 = arith.constant 0 : index
    %401 = vector.load %arg6[%c1_150, %c0_151, %c0_152] : memref<2x64x32xbf16, #tpu.memory_space<vmem>>, vector<1x64x32xbf16>
    %402 = vector.shape_cast %401 : vector<1x64x32xbf16> to vector<64x32xbf16>
    %cst_153 = arith.constant dense<0.000000e+00> : vector<18x32xf32>
    %403 = tpu.matmul %400, %402, %cst_153 {dimension_numbers = #tpu.dot_dimension_numbers<[1], [0], [0], [1], [0, 0, 1, 1], [], []>} : vector<18x64xbf16>, vector<64x32xbf16>, vector<18x32xf32> -> vector<18x32xf32>
    %c1_154 = arith.constant 1 : index
    %c6_155 = arith.constant 6 : index
    %c0_156 = arith.constant 0 : index
    %404 = vector.load %arg7[%c1_154, %c6_155, %c0_156] : memref<2x13x96xf32, #tpu.memory_space<vmem>>, vector<1x1x32xf32>
    %405 = vector.shape_cast %404 : vector<1x1x32xf32> to vector<1x32xf32>
    %406 = vector.broadcast %405 : vector<1x32xf32> to vector<18x32xf32>
    %407 = arith.addf %403, %406 : vector<18x32xf32>
    %408 = arith.addf %390, %407 : vector<18x32xf32>
    %c1_157 = arith.constant 1 : index
    %c11_158 = arith.constant 11 : index
    %c0_159 = arith.constant 0 : index
    %409 = vector.load %arg7[%c1_157, %c11_158, %c0_159] : memref<2x13x96xf32, #tpu.memory_space<vmem>>, vector<1x1x32xf32>
    %410 = vector.shape_cast %409 : vector<1x1x32xf32> to vector<1x32xf32>
    %c1_160 = arith.constant 1 : index
    %c12_161 = arith.constant 12 : index
    %c0_162 = arith.constant 0 : index
    %411 = vector.load %arg7[%c1_160, %c12_161, %c0_162] : memref<2x13x96xf32, #tpu.memory_space<vmem>>, vector<1x1x32xf32>
    %412 = vector.shape_cast %411 : vector<1x1x32xf32> to vector<1x32xf32>
    %cst_163 = arith.constant dense<0.000000e+00> : vector<18xf32>
    %413 = vector.multi_reduction <add>, %408, %cst_163 [1] : vector<18x32xf32> to vector<18xf32>
    %414 = vector.shape_cast %413 : vector<18xf32> to vector<18x1xf32>
    %cst_164 = arith.constant 3.200000e+01 : f32
    %415 = vector.broadcast %cst_164 : f32 to vector<18x1xf32>
    %416 = arith.divf %414, %415 : vector<18x1xf32>
    %417 = vector.broadcast %416 : vector<18x1xf32> to vector<18x32xf32>
    %418 = arith.subf %408, %417 : vector<18x32xf32>
    %419 = arith.mulf %418, %418 : vector<18x32xf32>
    %cst_165 = arith.constant dense<0.000000e+00> : vector<18xf32>
    %420 = vector.multi_reduction <add>, %419, %cst_165 [1] : vector<18x32xf32> to vector<18xf32>
    %421 = vector.shape_cast %420 : vector<18xf32> to vector<18x1xf32>
    %cst_166 = arith.constant 3.200000e+01 : f32
    %422 = vector.broadcast %cst_166 : f32 to vector<18x1xf32>
    %423 = arith.divf %421, %422 : vector<18x1xf32>
    %424 = vector.broadcast %416 : vector<18x1xf32> to vector<18x32xf32>
    %425 = arith.subf %408, %424 : vector<18x32xf32>
    %cst_167 = arith.constant 9.99999974E-6 : f32
    %426 = vector.broadcast %cst_167 : f32 to vector<18x1xf32>
    %427 = arith.addf %423, %426 : vector<18x1xf32>
    %428 = math.rsqrt %427 : vector<18x1xf32>
    %429 = vector.broadcast %428 : vector<18x1xf32> to vector<18x32xf32>
    %430 = arith.mulf %425, %429 : vector<18x32xf32>
    %431 = vector.broadcast %410 : vector<1x32xf32> to vector<18x32xf32>
    %432 = arith.mulf %430, %431 : vector<18x32xf32>
    %433 = vector.broadcast %412 : vector<1x32xf32> to vector<18x32xf32>
    %434 = arith.addf %432, %433 : vector<18x32xf32>
    %435 = vector.extract_strided_slice %434 {offsets = [1, 0], sizes = [8, 32], strides = [1, 1]} : vector<18x32xf32> to vector<8x32xf32>
    %436 = vector.extract_strided_slice %434 {offsets = [10, 0], sizes = [8, 32], strides = [1, 1]} : vector<18x32xf32> to vector<8x32xf32>
    %437 = tpu.concatenate %435, %436 in 0 : vector<8x32xf32>, vector<8x32xf32> -> vector<16x32xf32>
    %c0_168 = arith.constant 0 : index
    %c0_169 = arith.constant 0 : index
    %438 = vector.load %arg8[%c0_168, %c0_169] : memref<33x128xf32, #tpu.memory_space<vmem>>, vector<32x128xf32>
    %cst_170 = arith.constant dense<0.000000e+00> : vector<16x128xf32>
    %439 = tpu.matmul %437, %438, %cst_170 {dimension_numbers = #tpu.dot_dimension_numbers<[1], [0], [0], [1], [0, 0, 1, 1], [], []>} : vector<16x32xf32>, vector<32x128xf32>, vector<16x128xf32> -> vector<16x128xf32>
    %c32 = arith.constant 32 : index
    %c0_171 = arith.constant 0 : index
    %440 = vector.load %arg8[%c32, %c0_171] : memref<33x128xf32, #tpu.memory_space<vmem>>, vector<1x128xf32>
    %441 = vector.broadcast %440 : vector<1x128xf32> to vector<16x128xf32>
    %442 = arith.addf %439, %441 : vector<16x128xf32>
    %c0_172 = arith.constant 0 : index
    %c0_173 = arith.constant 0 : index
    %443 = vector.load %arg9[%c0_172, %c0_173] : memref<16x128xf32, #tpu.memory_space<vmem>>, vector<16x128xf32>
    tpu.vector_store %arg9[%c0_172, %c0_173], %442 {strides = array<i32>} : memref<16x128xf32, #tpu.memory_space<vmem>>, vector<16x128xf32>,
    return
  }
  func.func @transform_0(%arg0: i32) -> (i32, i32) {
    %c0_i32 = arith.constant 0 : i32
    %c0_i32_0 = arith.constant 0 : i32
    %c0_i32_1 = arith.constant 0 : i32
    return %c0_i32, %c0_i32_0 : i32, i32
  }
  func.func @transform_1(%arg0: i32) -> (i32, i32) {
    %c0_i32 = arith.constant 0 : i32
    %c0_i32_0 = arith.constant 0 : i32
    %c0_i32_1 = arith.constant 0 : i32
    return %c0_i32, %c0_i32_0 : i32, i32
  }
  func.func @transform_2(%arg0: i32) -> (i32, i32) {
    %c0_i32 = arith.constant 0 : i32
    %c0_i32_0 = arith.constant 0 : i32
    %c0_i32_1 = arith.constant 0 : i32
    return %c0_i32, %c0_i32_0 : i32, i32
  }
  func.func @transform_3(%arg0: i32) -> (i32, i32, i32) {
    %c0_i32 = arith.constant 0 : i32
    %c0_i32_0 = arith.constant 0 : i32
    %c0_i32_1 = arith.constant 0 : i32
    %c0_i32_2 = arith.constant 0 : i32
    return %c0_i32, %c0_i32_0, %c0_i32_1 : i32, i32, i32
  }
  func.func @transform_4(%arg0: i32) -> (i32, i32) {
    %c0_i32 = arith.constant 0 : i32
    %c0_i32_0 = arith.constant 0 : i32
    %c0_i32_1 = arith.constant 0 : i32
    return %c0_i32, %c0_i32_0 : i32, i32
  }
  func.func @transform_5(%arg0: i32) -> (i32, i32, i32) {
    %c0_i32 = arith.constant 0 : i32
    %c0_i32_0 = arith.constant 0 : i32
    %c0_i32_1 = arith.constant 0 : i32
    %c0_i32_2 = arith.constant 0 : i32
    return %c0_i32, %c0_i32_0, %c0_i32_1 : i32, i32, i32
  }
  func.func @transform_6(%arg0: i32) -> (i32, i32, i32) {
    %c0_i32 = arith.constant 0 : i32
    %c0_i32_0 = arith.constant 0 : i32
    %c0_i32_1 = arith.constant 0 : i32
    %c0_i32_2 = arith.constant 0 : i32
    return %c0_i32, %c0_i32_0, %c0_i32_1 : i32, i32, i32
  }
  func.func @transform_7(%arg0: i32) -> (i32, i32) {
    %c0_i32 = arith.constant 0 : i32
    %c0_i32_0 = arith.constant 0 : i32
    %c0_i32_1 = arith.constant 0 : i32
    return %c0_i32, %c0_i32_0 : i32, i32
  }
  func.func @transform_8(%arg0: i32) -> (i32, i32) {
    %c0_i32 = arith.constant 0 : i32
    %c0_i32_0 = arith.constant 0 : i32
    %c0_i32_1 = arith.constant 0 : i32
    return %c0_i32, %c0_i32_0 : i32, i32
  }
}

</mosaic_0001>

<bundles_post_ra>
// kernel: tpu_custom_call.1
= control target key start
LH: loop header
LB: loop body
LE: loop exit
PB: predicated region body
PF: predicated region fallthrough
CT: control target
= control target key end

     0   :  { %13 = vsyncpa [#allocation3], 0  ;;  %s5979_s0 = inlined_call_operand.vmem [shape: f32[9,32], index: 0, kind: input, shape index: {}]   ;;  %s5980_s1 = inlined_call_operand.hbm [shape: f32[2,32], index: 1, kind: input, shape index: {}]   ;;  %s5981_s2 = inlined_call_operand.hbm [shape: f32[10,32], index: 2, kind: input, shape index: {}]   ;;  %s5982_s3 = inlined_call_operand.vmem [shape: bf16[2,32,256], index: 3, kind: input, shape index: {}]   ;;  %s5983_s4 = inlined_call_operand.vmem [shape: bf16[32,128], index: 4, kind: input, shape index: {}]   ;;  %s5984_s5 = inlined_call_operand.vmem [shape: bf16[2,64,32], index: 5, kind: input, shape index: {}]   ;;  %s5985_s6 = inlined_call_operand.vmem [shape: f32[2,13,96], index: 6, kind: input, shape index: {}]   ;;  %s5986_s7 = inlined_call_operand.vmem [shape: f32[33,128], index: 7, kind: input, shape index: {}]   ;;  %s5987_s8 = inlined_call_operand.hbm [shape: f32[16,128], index: 8, kind: output, shape index: {}]  }
   0x1   :  { %14 = vsyncpa [#allocation6], 0 }
   0x2   :  { %15 = vsyncpa [#allocation4], 0  ;;  %s4727_s27 = smov [#allocation2]   ;;  %s4728_s29 = smov [#allocation5]  }
   0x3   :  { %s24_s28 = sshll.u32 %s4727_s27, 4  ;;  %s33_s30 = sshll.u32 %s4728_s29, 4  ;;  %s25_s28 = int_to_ptr.vmem [resolvable:$true] %s24_s28  ;;  %s4794_s30 = int_to_ptr.vmem [resolvable:$true] %s33_s30 }
   0x4   :  { %s4655_s11 = scalar_lea.hbm %s5980_s1, 32 }
   0x5   :  { %p4656_p0 = scmp.ne.s32.totalorder %s5980_s1, %s4655_s11  ;;  %p4659_p1 = scmp.lt.u32.totalorder %s4655_s11, %s5980_s1 }
   0x7   :  { %p4661_p2 = pnand %p4659_p1, %p4656_p0 }
   0x9   :  { %4664 = shalt.err (!%p4661_p2)
}
   0xa   :  { %s4665_s16 = scalar_lea.vmem %s25_s28, 32  ;;  %p4670_p4 = scmp.lt.s32.totalorder %s25_s28, %s25_s28 }
   0xb   :  { %p4666_p3 = scmp.ne.s32.totalorder %s25_s28, %s4665_s16  ;;  %p4671_p5 = scmp.lt.s32.totalorder %s4665_s16, %s4665_s16 }
   0xd   :  { %p4672_p6 = por %p4671_p5, %p4670_p4 }
   0xf   :  { %p4673_p7 = pnand %p4672_p6, %p4666_p3 }
  0x11   :  { %4676 = shalt.err (!%p4673_p7)
}
  0x12   :  { %27 = dma.hbm_to_vmem [thread:$0]  %s5980_s1, 32, %s25_s28, [#allocation3]  }
  0x13   :  { %s4677_s21 = scalar_lea.hbm %s5981_s2, 256 }
  0x14   :  { %p4678_p8 = scmp.ne.s32.totalorder %s5981_s2, %s4677_s21  ;;  %p4681_p9 = scmp.lt.u32.totalorder %s4677_s21, %s5981_s2 }
  0x16   :  { %p4683_p10 = pnand %p4681_p9, %p4678_p8 }
  0x18   :  { %4686 = shalt.err (!%p4683_p10)
}
  0x19   :  { %s4687_s26 = scalar_lea.vmem %s4794_s30, 256  ;;  %p4692_p12 = scmp.lt.s32.totalorder %s4794_s30, %s4794_s30 }
  0x1a   :  { %p4688_p11 = scmp.ne.s32.totalorder %s4794_s30, %s4687_s26  ;;  %p4693_p13 = scmp.lt.s32.totalorder %s4687_s26, %s4687_s26 }
  0x1c   :  { %p4694_p0 = por %p4693_p13, %p4692_p12 }
  0x1e   :  { %p4695_p1 = pnand %p4694_p0, %p4688_p11 }
  0x20   :  { %4698 = shalt.err (!%p4695_p1)
}
  0x21   :  { %s4729_s1 = smov 128   ;;  %s4730_s27 = smov 8  }
  0x22   :  { %39 = dma.hbm_to_vmem [thread:$0]  %s5981_s2, 256, %s4794_s30, [#allocation6], %s4729_s1, %s4729_s1, %s4730_s27  }
  0x23   :  { %4721 = dma.done.wait [#allocation3], 32  }
  0x24   :  { %4722 = vsyncadd [#allocation3], 4294967264  ;;  %v59_v0 = vlaneseq }
  0x25   :  { %4723 = dma.done.wait [#allocation6], 256  }
  0x26   :  { %4724 = vsyncadd [#allocation6], 4294967040  ;;  %v4731_v1 = vmov 0   ;;  %v4830_v2 = vand.u32 127, %v59_v0  ;;  %v4832_v3 = vshrl.u32 %v59_v0, 7  ;;  %vm5990_vm0 = vcmask 1040384  }
  0x27   :  { %4451 = vset.pattern.permute.xlu0 %v4731_v1  ;;  %4452 = vset.pattern.permute.xlu1 %v4731_v1  ;;  %s4732_s9 = smov 1   ;;  %v4733_v6 = vmov 1   ;;  %v4734_v8 = vmov 0.0   ;;  %vm66_vm1 = vcmask 1041408   ;;  %vm4735_vm2 = vmmov 0   ;;  %v231_v28 = vld [vmem:[%s5979_s0] sm:$0xff] }
  0x28   :  { %243 = vrot.lane.b32.xlu1 %v4830_v2, %s4732_s9  ;;  %254 = vperm.xlu0 %4451, %v4832_v3   ;;  %v4837_v4 = vadd.s32 8, %v4832_v3  ;;  %v62_v5 = vrot.slane %v4832_v3, 7  ;;  %v4842_v7 = vsel %vm5990_vm0, 0, %v4733_v6  ;;  %v278_v11 = vld [vmem:[#allocation2] sm:$0x3]  ;;  %vm241_vm3 = vcmask 7168  }
  0x29   :  { %3947 = vmatprep.subr.mxu0 %v4734_v8  ;;  %3958 = vmatprep.subr.bf16.mxu1 %v4734_v8  ;;  %v242_v13 = vsel %vm241_vm3, 0, %v4733_v6  ;;  %v4858_v14 = vsub.s32 0, %v4832_v3  ;;  %vm102_vm6 = vcmask 15360   ;;  %v4879_v26 = vld [vmem:[%s5982_s3] ss:$8 sps:$4 sm:$0xff]   ;;  %v235_v29 = vrot.slane %v231_v28, 7 }
  0x2a   :  { %v65_v9 = vsel %vm5990_vm0, %v4837_v4, %v62_v5  ;;  %v63_v10 = vrot.slane %v4837_v4, 7  ;;  %3949 = vmatprep.mubr.msk.f32.mxu0 %vm4735_vm2, %v4734_v8  ;;  %3962 = vmatprep.mubr.msk.bf16.mxu1 %vm4735_vm2, %v4734_v8  ;;  %v4886_v27 = vld [vmem:[%s5982_s3 + $0x10] ss:$8 sps:$4 sm:$0xff]   ;;  %v232_v30 = vld [vmem:[%s5979_s0 + $0x8] sm:$0x1]  ;;  %vm393_vm14 = vcmask 261120  }
  0x2b   :  { %3948 = vmatpush3.msk.msra.mxu0 %vm66_vm1, %v278_v11  ;;  %v249_v16 = vrot.slane %v242_v13, %v4858_v14  ;;  %v236_v33 = vrot.slane %v232_v30, 7  ;;  %v240_v34 = vsel %vm5990_vm0, %v232_v30, %v235_v29  ;;  %v4459_v45 = vld [vmem:[%s5983_s4] sm:$0xff]   ;;  %v4460_v46 = vld [vmem:[%s5983_s4 + $0x8] sm:$0xff]   ;;  %vm84_vm15 = vcmask 64512   ;;  %s4736_s20 = smov 96   ;;  %s4739_s23 = smov 64  }
  0x2c   :  { %257 = vperm.xlu1 %4452, %v65_v9   ;;  %182 = vperm.xlu0 %4451, %v4842_v7   ;;  %v64_v12 = vsel %vm5990_vm0, %v62_v5, %v63_v10  ;;  %v85_v47 = vsel %vm84_vm15, 0, %v4733_v6  ;;  %v374_v49 = vld [vmem:[#allocation5] sm:$0xff]  ;;  %v375_v50 = vld [vmem:[#allocation5 + $0x8] sm:$0x3]  ;;  %v3636_v54 = vld [vmem:[%s5985_s6] ss:$0 sm:$0xff] }
  0x2d   :  { %vm3624_vm4 = vcmp.eq.s32.totalorder %v249_v16, 0  ;;  %vm3625_vm11 = vcmp.eq.s32.totalorder %v249_v16, 1  ;;  %3966 = vmatprep.subr.bf16.mxu0 %v4879_v26  ;;  %v237_v39 = vsel %vm5990_vm0, %v235_v29, %v236_v33  ;;  %3959 = vmatpush3.bf16.msra.mxu1 %v4459_v45  ;;  %v376_v52 = vpack.c.bf16 %v375_v50, %v374_v49  ;;  %s4740_s24 = smov 18   ;;  %s4741_s25 = smov 36  }
  0x2e   :  { %3960 = vmatprep.subr.bf16.mxu1 %v4734_v8  ;;  %v4737_v5 = vmov 2   ;;  %v81_v10 = vsel %vm66_vm1, 0, %v4733_v6  ;;  %v67_v11 = vrot.slane %v4842_v7, 6  ;;  %s4742_s26 = smov 54   ;;  %s4744_s28 = smov 32  }
  0x2f   :  { %s4745_s12 = smov 4   ;;  %s4746_s13 = smov 2  }
  0x30   :  { %260 = vperm.xlu0 %4451, %v64_v12   ;;  %v69_v33 = vsel %vm66_vm1, %v67_v11, 1  ;;  %s4747_s14 = smov 6   ;;  %s4748_s22 = smov [#allocation7]  }
  0x31   :  { %3961 = vmatpush3.bf16.msra.mxu1 %v4460_v46 }
  0x32   :  { %3974 = vmatprep.subr.bf16.mxu1 %v4734_v8 }
  0x34   :  { %3963 = vmatmul.mubr.msk.bf16.vlgmr.msra.gmra.mrb[0].mxu1 %vm393_vm14, %v376_v52 }
  0x35   :  { %3978 = vmatprep.mubr.msk.bf16.mxu1 %vm4735_vm2, %v4734_v8 }
  0x9a   :  { %v244_v15 = vpop.permute.xlu1 %243 }
  0x9b   :  { %v245_v17 = vsel %vm241_vm3, %v4830_v2, %v244_v15  ;;  %vm86_vm3 = vcmask 130048  }
  0x9c   :  { %v265_v18 = vrot.slane %v245_v17, %v4858_v14  ;;  %v87_v48 = vsel %vm86_vm3, %v85_v47, 2  ;;  %v75_v47 = vrot.slane %v4842_v7, 2 }
  0xa7   :  { %v255_v19 = vpop.permute.xlu0 %254 }
  0xa8   :  { %vm266_vm5 = vcmp.eq.s32.totalorder %v255_v19, %v265_v18 }
  0xa9   :  { %vm269_vm7 = vmand %vm3624_vm4, %vm266_vm5  ;;  %vm88_vm4 = vcmask 195584  }
  0xaa   :  { %v3626_v20 = vsel %vm269_vm7, 1.0, %v4734_v8  ;;  %v89_v51 = vsel %vm88_vm4, %v87_v48, 3  ;;  %vm70_vm7 = vcmask 1043456   ;;  %v68_v48 = vsel %vm66_vm1, 0, %v67_v11 }
  0xab   :  { %v258_v21 = vpop.permute.xlu1 %257  ;;  %v4864_v22 = vpop.permute.xlu0 %182  ;;  %3950 = vmatmul.mubr.msk.f32.vlgmr.msra.gmra.mrb[0].mxu0 %vm102_vm6, %v3626_v20  ;;  %v4925_v53 = vrot.slane %v89_v51, %v4858_v14  ;;  %v82_v9 = vsel %vm70_vm7, 1, %v4737_v5  ;;  %vm90_vm4 = vcmask 72704  }
  0xac   :  { %vm267_vm8 = vcmp.eq.s32.totalorder %v258_v21, %v265_v18  ;;  %3952 = vmatprep.mubr.msk.f32.mxu0 %vm4735_vm2, %v4734_v8  ;;  %vm251_vm9 = vcmp.eq.s32.totalorder %v4864_v22, %v249_v16  ;;  %3967 = vmatpush3.bf16.msra.mxu0 %v4879_v26 }
  0xad   :  { %vm270_vm10 = vmand %vm251_vm9, %vm267_vm8  ;;  %3968 = vmatprep.subr.bf16.mxu0 %v4886_v27  ;;  %vm3608_vm5 = vcmp.eq.s32.totalorder %v4925_v53, 0  ;;  %vm74_vm8 = vcmask 1045504   ;;  %vm3610_vm9 = vcmp.eq.s32.totalorder %v4925_v53, 2 }
  0xae   :  { %v3627_v23 = vsel %vm270_vm10, 1.0, %v4734_v8  ;;  %v4934_v60 = vsel %vm3608_vm5, 1.0, %v4734_v8  ;;  %v77_v49 = vsel %vm74_vm8, %v75_v47, 1  ;;  %v76_v51 = vsel %vm74_vm8, 0, %v75_v47 }
  0xaf   :  { %v261_v24 = vpop.permute.xlu0 %260  ;;  %3953 = vmatmul.mubr.msk.f32.gmra.mrb[2].mxu0 %vm102_vm6, %v3627_v23 }
  0xb0   :  { %vm268_vm12 = vcmp.eq.s32.totalorder %v261_v24, %v265_v18  ;;  %3955 = vmatprep.mubr.msk.f32.mxu0 %vm4735_vm2, %v4734_v8  ;;  %3969 = vmatpush3.bf16.msra.mxu0 %v4886_v27 }
  0xb1   :  { %vm271_vm13 = vmand %vm3625_vm11, %vm268_vm12  ;;  %3998 = vmatprep.subr.bf16.mxu0 %v4734_v8  ;;  %vm3609_vm11 = vcmp.eq.s32.totalorder %v4925_v53, 1  ;;  %vm3611_vm12 = vcmp.eq.s32.totalorder %v4925_v53, 3 }
  0xb2   :  { %v3628_v25 = vsel %vm271_vm13, 1.0, %v4734_v8 }
  0xb3   :  { %3956 = vmatmul.mubr.msk.f32.gmra.mrb[4].mxu0 %vm102_vm6, %v3628_v25 }
 0x17e   :  { %v357_v31 = vpop.f32.mrb[0].mxu0 }
 0x17f   :  { %v3951_v32 = vpop.f32.mrb[1].mxu0  ;;  %v4898_v36 = vadd.f32 %v357_v31, %v231_v28 }
 0x180   :  { %v78_v32 = vsel %vm66_vm1, 1, %v4731_v1 }
 0x182   :  { %v362_v35 = vpop.f32.mrb[2].mxu0 }
 0x183   :  { %v4900_v37 = vadd.f32 %v362_v35, %v240_v34  ;;  %v3954_v38 = vpop.f32.mrb[3].mxu0 }
 0x184   :  { %v71_v38 = vrot.slane %v4842_v7, 4 }
 0x185   :  { %v442_v40 = vpack.c.bf16 %v4900_v37, %v4898_v36 }
 0x186   :  { %v367_v41 = vpop.f32.mrb[4].mxu0  ;;  %v73_v45 = vsel %vm70_vm7, %v71_v38, 1  ;;  %v72_v50 = vsel %vm70_vm7, 0, %v71_v38 }
 0x187   :  { %v4905_v42 = vadd.f32 %v367_v41, %v237_v39  ;;  %v3957_v43 = vpop.f32.mrb[5].mxu0  ;;  %3970 = vmatprep.mubr.msk.bf16.mxu0 %vm393_vm14, %v442_v40  ;;  %v80_v46 = vsel %vm74_vm8, %v73_v45, 0 }
 0x188   :  { %v79_v43 = vsel %vm70_vm7, %v69_v33, 0  ;;  %v91_v33 = vsel %vm90_vm4, 0, %v4733_v6 }
 0x189   :  { %v443_v44 = vpack.c.bf16 %v4905_v42, %v4905_v42 }
 0x18b   :  { %3971 = vmatmul.mubr.msk.bf16.vlgmr.msra.gmra.mrb[8].mxu0 %vm393_vm14, %v443_v44  ;;  %v4738_v44 = vmov 3  }
 0x18c   :  { %4002 = vmatprep.mubr.msk.bf16.mxu0 %vm4735_vm2, %v4734_v8  ;;  %v83_v1 = vsel %vm74_vm8, 2, %v4738_v44 }
 0x25e   :  { %v3972_v55 = vpop.f32.mrb[8].mxu0 }
 0x25f   :  { %v510_v56 = vadd.f32 %v3972_v55, %v3636_v54  ;;  %v501_v57 = vpop.f32.mrb[9].mxu0 }
 0x260   :  { %v502_v58 = vadd.f32 %v3636_v54, %v501_v57  ;;  %v3973_v59 = vpop.f32.mrb[10].mxu0  ;;  %v4979_v57 = vsel %vm3610_vm9, 1.0, %v4734_v8  ;;  %vm115_vm9 = vcmask 146432  }
 0x261   :  { %v504_v61 = vpop.f32.mrb[11].mxu0  ;;  %v4936_v62 = vpack.c.bf16 %v510_v56, %v510_v56  ;;  %v521_v12 = vrot.slane %v510_v56, 6  ;;  %v529_v21 = vrot.slane %v510_v56, 4  ;;  %v537_v23 = vrot.slane %v510_v56, 2 }
 0x262   :  { %v518_v63 = vrot.slane %v502_v58, 6  ;;  %v505_v0 = vadd.f32 %v3636_v54, %v504_v61  ;;  %v526_v13 = vrot.slane %v502_v58, 4  ;;  %v545_v15 = vmul.f32 %v4934_v60, %v502_v58 }
 0x263   :  { %565 = vrot.lane.b32.xlu0 %v4936_v62, %s4736_s20  ;;  %v534_v24 = vrot.slane %v502_v58, 2 }
 0x264   :  { %v4946_v16 = vsel %vm66_vm1, %v510_v56, %v518_v63  ;;  %v519_v17 = vrot.slane %v505_v0, 6  ;;  %v527_v18 = vrot.slane %v505_v0, 4  ;;  %v535_v19 = vrot.slane %v505_v0, 2 }
 0x265   :  { %v546_v20 = vmul.f32 %v4934_v60, %v505_v0  ;;  %v4949_v25 = vpack.c.bf16 %v505_v0, %v502_v58  ;;  %v4990_v0 = vsel %vm3609_vm11, 1.0, %v4734_v8 }
 0x266   :  { %v520_v29 = vsel %vm66_vm1, %v518_v63, %v519_v17  ;;  %v522_v30 = vsel %vm66_vm1, %v519_v17, %v521_v12  ;;  %v528_v31 = vsel %vm70_vm7, %v526_v13, %v527_v18  ;;  %v530_v35 = vsel %vm70_vm7, %v527_v18, %v529_v21  ;;  %v3664_v21 = vld [vmem:[%s5985_s6 + $0x3] ss:$0 sm:$0xff] }
 0x267   :  { %131 = vperm.xlu0 %4451, %v82_v9   ;;  %v554_v28 = vpack.c.bf16 %v546_v20, %v545_v15  ;;  %563 = vrot.lane.b32.xlu1 %v4949_v25, %s4736_s20  ;;  %v543_v34 = vsel %vm70_vm7, %v522_v30, %v526_v13  ;;  %v536_v39 = vsel %vm74_vm8, %v534_v24, %v535_v19  ;;  %v5003_v12 = vsel %vm3611_vm12, 1.0, %v4734_v8 }
 0x268   :  { %v544_v40 = vsel %vm74_vm8, %v530_v35, %v534_v24  ;;  %v538_v41 = vsel %vm74_vm8, %v535_v19, %v537_v23  ;;  %v550_v61 = vmul.f32 %v4979_v57, %v528_v31  ;;  %v548_v11 = vmul.f32 %v4990_v0, %v520_v29  ;;  %v5025_v23 = vpop.f32.mrb[0].mxu1 }
 0x269   :  { %v552_v19 = vmul.f32 %v5003_v12, %v536_v39  ;;  %v1177_v24 = vadd.f32 %v3664_v21, %v5025_v23 }
 0x26b   :  { %185 = vperm.xlu0 %4451, %v78_v32   ;;  %125 = vperm.xlu1 %4452, %v81_v10  }
 0x26f   :  { %191 = vperm.xlu0 %4451, %v79_v43   ;;  %137 = vperm.xlu1 %4452, %v83_v1  }
 0x273   :  { %197 = vperm.xlu0 %4451, %v80_v46   ;;  %188 = vperm.xlu1 %4452, %v68_v48  }
 0x277   :  { %203 = vperm.xlu0 %4451, %v77_v49   ;;  %194 = vperm.xlu1 %4452, %v72_v50  }
 0x27b   :  { %200 = vperm.xlu1 %4452, %v76_v51  }
 0x2d5   :  { %v566_v7 = vpop.permute.xlu0 %565 }
 0x2d6   :  { %v586_v55 = vsel %vm393_vm14, %v566_v7, 0 }
 0x2d9   :  { %v564_v52 = vpop.permute.xlu1 %563 }
 0x2da   :  { %v583_v54 = vsel %vm393_vm14, %v564_v52, 0 }
 0x2db   :  { %3975 = vmatpush3.bf16.xpose.msra.mxu1 %v583_v54 }
 0x2dc   :  { %3976 = vmatprep.subr.bf16.mxu1 %v4734_v8 }
 0x2e3   :  { %3977 = vmatpush3.bf16.xpose.msra.mxu1 %v586_v55 }
 0x2e6   :  { %v132_v56 = vpop.permute.xlu0 %131 }
 0x2e7   :  { %vm149_vm10 = vcmp.eq.s32.totalorder %v132_v56, %v4925_v53 }
 0x2e8   :  { %v4983_v58 = vsel %vm149_vm10, 1.0, %v4734_v8 }
 0x2e9   :  { %v549_v59 = vmul.f32 %v4983_v58, %v543_v34  ;;  %v5035_v34 = vrot.slane %v91_v33, %v4858_v14 }
 0x2ea   :  { %v126_v63 = vpop.permute.xlu1 %125  ;;  %3979 = vmatmul.mubr.msk.bf16.vlgmr.msra.gmra.mrb[4].mxu1 %vm393_vm14, %v554_v28  ;;  %v3964_v28 = vpop.f32.mrb[1].mxu1 }
 0x2eb   :  { %v556_v5 = vpack.c.bf16 %v550_v61, %v549_v59  ;;  %vm147_vm13 = vcmp.eq.s32.totalorder %v126_v63, %v4925_v53  ;;  %3982 = vmatprep.mubr.msk.bf16.mxu1 %vm4735_vm2, %v4734_v8  ;;  %v5028_v29 = vpop.f32.mrb[2].mxu1  ;;  %vm3622_vm5 = vcmp.eq.s32.totalorder %v5035_v34, 0  ;;  %vm210_vm10 = vcmp.eq.s32.totalorder %v4864_v22, %v5035_v34  ;;  %v5053_v46 = vpop.permute.xlu0 %185 }
 0x2ec   :  { %v4997_v9 = vsel %vm147_vm13, 1.0, %v4734_v8  ;;  %v1178_v30 = vadd.f32 %v3664_v21, %v5028_v29  ;;  %v3965_v31 = vpop.f32.mrb[3].mxu1  ;;  %vm5995_vm11 = vcmp.eq.s32.totalorder %v5053_v46, %v5035_v34 }
 0x2ed   :  { %v547_v10 = vmul.f32 %v4997_v9, %v4946_v16 }
 0x2ee   :  { %v138_v13 = vpop.permute.xlu1 %137  ;;  %v5031_v32 = vpack.c.bf16 %v1178_v30, %v1177_v24 }
 0x2ef   :  { %vm151_vm3 = vcmp.eq.s32.totalorder %v138_v13, %v4925_v53  ;;  %v555_v15 = vpack.c.bf16 %v548_v11, %v547_v10  ;;  %v553_v53 = vmul.f32 %v5003_v12, %v538_v41  ;;  %v5069_v61 = vpop.permute.xlu0 %191 }
 0x2f0   :  { %v5007_v17 = vsel %vm151_vm3, 1.0, %v4734_v8  ;;  %vm5993_vm13 = vcmp.eq.s32.totalorder %v5069_v61, %v5035_v34 }
 0x2f1   :  { %v551_v18 = vmul.f32 %v5007_v17, %v544_v40  ;;  %v558_v20 = vpack.c.bf16 %v553_v53, %v553_v53 }
 0x2f2   :  { %3983 = vmatmul.mubr.msk.bf16.gmra.mrb[8].mxu1 %vm393_vm14, %v555_v15  ;;  %v5055_v48 = vpop.permute.xlu1 %188 }
 0x2f3   :  { %3986 = vmatprep.mubr.msk.bf16.mxu1 %vm4735_vm2, %v4734_v8  ;;  %v557_v16 = vpack.c.bf16 %v552_v19, %v551_v18  ;;  %vm5994_vm12 = vcmp.eq.s32.totalorder %v5055_v48, %v5035_v34  ;;  %v5085_v21 = vpop.permute.xlu0 %197 }
 0x2f4   :  { %vm5989_vm4 = vcmp.eq.s32.totalorder %v5085_v21, %v5035_v34 }
 0x2fa   :  { %3987 = vmatmul.mubr.msk.bf16.gmra.mrb[12].mxu1 %vm393_vm14, %v556_v5  ;;  %v5071_v5 = vpop.permute.xlu1 %194 }
 0x2fb   :  { %3990 = vmatprep.mubr.msk.bf16.mxu1 %vm4735_vm2, %v4734_v8  ;;  %vm5988_vm3 = vcmp.eq.s32.totalorder %v5071_v5, %v5035_v34 }
 0x2fe   :  { %v5087_v28 = vpop.permute.xlu1 %200 }
 0x302   :  { %3991 = vmatmul.mubr.msk.bf16.gmra.mrb[16].mxu1 %vm393_vm14, %v557_v16 }
 0x303   :  { %3994 = vmatprep.mubr.msk.bf16.mxu1 %vm4735_vm2, %v4734_v8 }
 0x30a   :  { %3995 = vmatmul.mubr.msk.bf16.gmra.mrb[20].mxu1 %vm393_vm14, %v558_v20 }
 0x3bd   :  { %v622_v35 = vpop.f32.mrb[4].mxu1 }
 0x3be   :  { %v660_v38 = vmul.f32 0.35355338, %v622_v35  ;;  %v3980_v39 = vpop.f32.mrb[5].mxu1 }
 0x3bf   :  { %v625_v40 = vpop.f32.mrb[6].mxu1 }
 0x3c0   :  { %v661_v41 = vmul.f32 0.35355338, %v625_v40  ;;  %v3981_v43 = vpop.f32.mrb[7].mxu1  ;;  %v5040_v44 = vsel %vm3622_vm5, %v660_v38, -1e+30 }
 0x3c1   :  { %v678_v1 = vsel %vm115_vm9, %v5040_v44, -inf }
 0x3c2   :  { %679 = vmax.xlane.f32.xlu1 %v678_v1  ;;  %v5049_v6 = vsel %vm210_vm10, %v661_v41, -1e+30  ;;  %v5101_v1 = vpop.permute.xlu0 %203 }
 0x3c3   :  { %v681_v45 = vsel %vm115_vm9, %v5049_v6, -inf }
 0x3c4   :  { %682 = vmax.xlane.f32.xlu0 %v681_v45 }
 0x3c5   :  { %v630_v47 = vpop.f32.mrb[8].mxu1 }
 0x3c6   :  { %v662_v49 = vmul.f32 0.35355338, %v630_v47  ;;  %v3984_v50 = vpop.f32.mrb[9].mxu1 }
 0x3c7   :  { %v633_v51 = vpop.f32.mrb[10].mxu1 }
 0x3c8   :  { %v663_v52 = vmul.f32 0.35355338, %v633_v51  ;;  %v3985_v54 = vpop.f32.mrb[11].mxu1  ;;  %v671_v7 = vsel %vm5995_vm11, %v662_v49, -1e+30  ;;  %vm1332_vm11 = vcmask 80896  }
 0x3c9   :  { %v684_v55 = vsel %vm115_vm9, %v671_v7, -inf }
 0x3ca   :  { %685 = vmax.xlane.f32.xlu0 %v684_v55  ;;  %v672_v56 = vsel %vm5994_vm12, %v663_v52, -1e+30 }
 0x3cb   :  { %v687_v59 = vsel %vm115_vm9, %v672_v56, -inf }
 0x3cc   :  { %688 = vmax.xlane.f32.xlu1 %v687_v59 }
 0x3cd   :  { %v638_v63 = vpop.f32.mrb[12].mxu1 }
 0x3ce   :  { %v664_v10 = vmul.f32 0.35355338, %v638_v63  ;;  %v3988_v11 = vpop.f32.mrb[13].mxu1 }
 0x3cf   :  { %v641_v13 = vpop.f32.mrb[14].mxu1 }
 0x3d0   :  { %v665_v15 = vmul.f32 0.35355338, %v641_v13  ;;  %v3989_v18 = vpop.f32.mrb[15].mxu1  ;;  %v673_v19 = vsel %vm5993_vm13, %v664_v10, -1e+30  ;;  %vm886_vm13 = vcmask 588800  }
 0x3d1   :  { %v690_v16 = vsel %vm115_vm9, %v673_v19, -inf }
 0x3d2   :  { %691 = vmax.xlane.f32.xlu0 %v690_v16  ;;  %v674_v53 = vsel %vm5988_vm3, %v665_v15, -1e+30  ;;  %vm5992_vm3 = vcmp.eq.s32.totalorder %v5087_v28, %v5035_v34 }
 0x3d3   :  { %v693_v20 = vsel %vm115_vm9, %v674_v53, -inf }
 0x3d4   :  { %694 = vmax.xlane.f32.xlu1 %v693_v20 }
 0x3d5   :  { %v646_v24 = vpop.f32.mrb[16].mxu1 }
 0x3d6   :  { %v666_v30 = vmul.f32 0.35355338, %v646_v24  ;;  %v3992_v31 = vpop.f32.mrb[17].mxu1 }
 0x3d7   :  { %v649_v33 = vpop.f32.mrb[18].mxu1 }
 0x3d8   :  { %v667_v35 = vmul.f32 0.35355338, %v649_v33  ;;  %v3993_v38 = vpop.f32.mrb[19].mxu1  ;;  %v675_v39 = vsel %vm5989_vm4, %v666_v30, -1e+30  ;;  %vm5991_vm4 = vcmp.eq.s32.totalorder %v5101_v1, %v5035_v34 }
 0x3d9   :  { %v696_v40 = vsel %vm115_vm9, %v675_v39, -inf }
 0x3da   :  { %697 = vmax.xlane.f32.xlu0 %v696_v40  ;;  %v676_v41 = vsel %vm5992_vm3, %v667_v35, -1e+30 }
 0x3db   :  { %v699_v43 = vsel %vm115_vm9, %v676_v41, -inf }
 0x3dc   :  { %700 = vmax.xlane.f32.xlu1 %v699_v43 }
 0x3dd   :  { %v654_v45 = vpop.f32.mrb[20].mxu1 }
 0x3de   :  { %v668_v47 = vmul.f32 0.35355338, %v654_v45  ;;  %v3996_v49 = vpop.f32.mrb[21].mxu1 }
 0x3df   :  { %v657_v50 = vpop.f32.mrb[22].mxu1 }
 0x3e0   :  { %v3997_v51 = vpop.f32.mrb[23].mxu1  ;;  %v5108_v52 = vsel %vm5991_vm4, %v668_v47, -1e+30  ;;  %vm119_vm4 = vcmask 441344  }
 0x3e1   :  { %v702_v54 = vsel %vm115_vm9, %v5108_v52, -inf }
 0x3e2   :  { %703 = vmax.xlane.f32.xlu0 %v702_v54 }
 0x44f   :  { %v680_v55 = vpop.xlane.xlu1 %679 }
 0x450   :  { %v705_v59 = vsub.f32 %v5040_v44, %v680_v55 }
 0x451   :  { %v683_v63 = vpop.xlane.xlu0 %682 }
 0x452   :  { %v714_v10 = vmul.f32 1.442695, %v705_v59  ;;  %v706_v11 = vsub.f32 %v5049_v6, %v683_v63 }
 0x454   :  { %4475 = vpow2.f32 %v714_v10  ;;  %v716_v13 = vmul.f32 1.442695, %v706_v11 }
 0x456   :  { %4477 = vpow2.f32 %v716_v13 }
 0x457   :  { %v686_v15 = vpop.xlane.xlu0 %685 }
 0x458   :  { %v707_v18 = vsub.f32 %v671_v7, %v686_v15 }
 0x459   :  { %v689_v16 = vpop.xlane.xlu1 %688 }
 0x45a   :  { %v718_v20 = vmul.f32 1.442695, %v707_v18  ;;  %v708_v24 = vsub.f32 %v672_v56, %v689_v16 }
 0x45c   :  { %4479 = vpow2.f32 %v718_v20  ;;  %v720_v30 = vmul.f32 1.442695, %v708_v24 }
 0x45e   :  { %v5114_v31 = vpop.eup %4475  ;;  %4481 = vpow2.f32 %v720_v30 }
 0x45f   :  { %v692_v33 = vpop.xlane.xlu0 %691  ;;  %v732_v44 = vsel %vm115_vm9, %v5114_v31, 0.0 }
 0x460   :  { %v5118_v35 = vpop.eup %4477  ;;  %v709_v6 = vsub.f32 %v673_v19, %v692_v33  ;;  %733 = vadd.xlane.f32.xlu1 %v732_v44 }
 0x461   :  { %v695_v38 = vpop.xlane.xlu1 %694  ;;  %v735_v7 = vsel %vm115_vm9, %v5118_v35, 0.0 }
 0x462   :  { %v722_v40 = vmul.f32 1.442695, %v709_v6  ;;  %v710_v43 = vsub.f32 %v674_v53, %v695_v38  ;;  %736 = vadd.xlane.f32.xlu0 %v735_v7 }
 0x464   :  { %4483 = vpow2.f32 %v722_v40  ;;  %v724_v56 = vmul.f32 1.442695, %v710_v43 }
 0x466   :  { %v5122_v45 = vpop.eup %4479  ;;  %4485 = vpow2.f32 %v724_v56 }
 0x467   :  { %v698_v47 = vpop.xlane.xlu0 %697  ;;  %v738_v49 = vsel %vm115_vm9, %v5122_v45, 0.0 }
 0x468   :  { %v5126_v50 = vpop.eup %4481  ;;  %v711_v19 = vsub.f32 %v675_v39, %v698_v47  ;;  %739 = vadd.xlane.f32.xlu1 %v738_v49 }
 0x469   :  { %v701_v51 = vpop.xlane.xlu1 %700  ;;  %v741_v54 = vsel %vm115_vm9, %v5126_v50, 0.0 }
 0x46a   :  { %v726_v55 = vmul.f32 1.442695, %v711_v19  ;;  %v712_v53 = vsub.f32 %v676_v41, %v701_v51  ;;  %742 = vadd.xlane.f32.xlu0 %v741_v54 }
 0x46c   :  { %4487 = vpow2.f32 %v726_v55  ;;  %v728_v59 = vmul.f32 1.442695, %v712_v53 }
 0x46e   :  { %v5130_v63 = vpop.eup %4483  ;;  %4489 = vpow2.f32 %v728_v59 }
 0x46f   :  { %v744_v10 = vsel %vm115_vm9, %v5130_v63, 0.0  ;;  %v704_v16 = vpop.xlane.xlu0 %703 }
 0x470   :  { %v5134_v11 = vpop.eup %4485  ;;  %745 = vadd.xlane.f32.xlu1 %v744_v10  ;;  %v713_v20 = vsub.f32 %v5108_v52, %v704_v16 }
 0x471   :  { %v747_v39 = vsel %vm115_vm9, %v5134_v11, 0.0 }
 0x472   :  { %748 = vadd.xlane.f32.xlu0 %v747_v39  ;;  %v730_v24 = vmul.f32 1.442695, %v713_v20 }
 0x474   :  { %4491 = vpow2.f32 %v730_v24 }
 0x476   :  { %v5138_v13 = vpop.eup %4487 }
 0x477   :  { %v750_v41 = vsel %vm115_vm9, %v5138_v13, 0.0 }
 0x478   :  { %v5142_v15 = vpop.eup %4489  ;;  %751 = vadd.xlane.f32.xlu0 %v750_v41 }
 0x479   :  { %v753_v18 = vsel %vm115_vm9, %v5142_v15, 0.0 }
 0x47c   :  { %754 = vadd.xlane.f32.xlu0 %v753_v18 }
 0x47e   :  { %v4492_v30 = vpop.eup %4491 }
 0x47f   :  { %v756_v33 = vsel %vm115_vm9, %v4492_v30, 0.0 }
 0x481   :  { %782 = vrot.lane.b32.xlu1 %v4949_v25, %s4739_s23 }
 0x492   :  { %784 = vrot.lane.b32.xlu0 %v4936_v62, %s4739_s23 }
 0x496   :  { %109 = vrot.lane.b32.xlu0 %v4830_v2, %s4740_s24 }
 0x49a   :  { %111 = vrot.lane.b32.xlu0 %v4830_v2, %s4741_s25 }
 0x49e   :  { %113 = vrot.lane.b32.xlu0 %v4830_v2, %s4742_s26 }
 0x4a2   :  { %983 = vrot.lane.b32.xlu0 %v4879_v26, %s4744_s28 }
 0x4a5   :  { %757 = vadd.xlane.f32.xlu1 %v756_v33 }
 0x4a6   :  { %985 = vrot.lane.b32.xlu0 %v4886_v27, %s4744_s28 }
 0x4ed   :  { %v734_v25 = vpop.xlane.xlu1 %733 }
 0x4ef   :  { %v737_v52 = vpop.xlane.xlu0 %736 }
 0x4f0   :  { %4493 = vrcp.f32 %v737_v52 }
 0x4f1   :  { %4495 = vrcp.f32 %v734_v25 }
 0x4f5   :  { %v740_v44 = vpop.xlane.xlu1 %739 }
 0x4f7   :  { %v743_v6 = vpop.xlane.xlu0 %742 }
 0x4f8   :  { %4497 = vrcp.f32 %v743_v6  ;;  %v4743_v6 = vmov 0.0|0.0  }
 0x4f9   :  { %4499 = vrcp.f32 %v740_v44 }
 0x4fa   :  { %v4494_v43 = vpop.eup %4493 }
 0x4fb   :  { %v4496_v47 = vpop.eup %4495  ;;  %v769_v49 = vmul.f32 %v4494_v43, %v5118_v35 }
 0x4fc   :  { %v768_v51 = vmul.f32 %v4496_v47, %v5114_v31 }
 0x4fd   :  { %v746_v62 = vpop.xlane.xlu1 %745 }
 0x4fe   :  { %v777_v55 = vpack.c.bf16 %v769_v49, %v768_v51 }
 0x4ff   :  { %v749_v38 = vpop.xlane.xlu0 %748 }
 0x500   :  { %4501 = vrcp.f32 %v749_v38 }
 0x501   :  { %v783_v7 = vpop.permute.xlu1 %782  ;;  %4503 = vrcp.f32 %v746_v62 }
 0x502   :  { %3999 = vmatpush3.bf16.msra.mxu0 %v783_v7  ;;  %v4498_v53 = vpop.eup %4497 }
 0x503   :  { %4000 = vmatprep.subr.bf16.mxu0 %v4734_v8  ;;  %v4500_v59 = vpop.eup %4499  ;;  %v771_v10 = vmul.f32 %v4498_v53, %v5126_v50 }
 0x504   :  { %v770_v35 = vmul.f32 %v4500_v59, %v5122_v45 }
 0x505   :  { %v752_v40 = vpop.xlane.xlu0 %751 }
 0x506   :  { %v778_v39 = vpack.c.bf16 %v771_v10, %v770_v35 }
 0x509   :  { %v755_v56 = vpop.xlane.xlu0 %754 }
 0x50a   :  { %4505 = vrcp.f32 %v755_v56  ;;  %v4502_v31 = vpop.eup %4501 }
 0x50b   :  { %4507 = vrcp.f32 %v752_v40  ;;  %v4504_v41 = vpop.eup %4503  ;;  %v773_v18 = vmul.f32 %v4502_v31, %v5134_v11 }
 0x50c   :  { %v772_v16 = vmul.f32 %v4504_v41, %v5130_v63 }
 0x50d   :  { %v785_v19 = vpop.permute.xlu0 %784 }
 0x50e   :  { %v803_v54 = vsel %vm5990_vm0, %v785_v19, 0  ;;  %v779_v20 = vpack.c.bf16 %v773_v18, %v772_v16  ;;  %vm117_vm0 = vcmask 293888  }
 0x50f   :  { %4001 = vmatpush3.bf16.msra.mxu0 %v803_v54 }
 0x510   :  { %4373 = vmatprep.subr.bf16.mxu0 %v4743_v6 }
 0x511   :  { %v110_v18 = vpop.permute.xlu0 %109 }
 0x512   :  { %4003 = vmatmul.mubr.msk.bf16.vlgmr.msra.gmra.mrb[12].mxu0 %vm115_vm9, %v777_v55 }
 0x513   :  { %4006 = vmatprep.mubr.msk.bf16.mxu0 %vm4735_vm2, %v4734_v8 }
 0x514   :  { %v4506_v24 = vpop.eup %4505 }
 0x515   :  { %v4508_v50 = vpop.eup %4507  ;;  %v775_v45 = vmul.f32 %v4506_v24, %v5142_v15 }
 0x516   :  { %v774_v33 = vmul.f32 %v4508_v50, %v5138_v13 }
 0x518   :  { %v780_v25 = vpack.c.bf16 %v775_v45, %v774_v33  ;;  %v112_v45 = vpop.permute.xlu0 %111  ;;  %v116_v33 = vsel %vm115_vm9, %v4830_v2, %v110_v18 }
 0x51a   :  { %4007 = vmatmul.mubr.msk.bf16.gmra.mrb[16].mxu0 %vm115_vm9, %v778_v39 }
 0x51b   :  { %4010 = vmatprep.mubr.msk.bf16.mxu0 %vm4735_vm2, %v4734_v8 }
 0x522   :  { %4011 = vmatmul.mubr.msk.bf16.gmra.mrb[20].mxu0 %vm115_vm9, %v779_v20 }
 0x523   :  { %4014 = vmatprep.mubr.msk.bf16.mxu0 %vm4735_vm2, %v4734_v8 }
 0x52a   :  { %4015 = vmatmul.mubr.msk.bf16.gmra.mrb[24].mxu0 %vm115_vm9, %v780_v25  ;;  %v118_v25 = vsel %vm117_vm0, %v116_v33, %v112_v45 }
 0x52b   :  { %4018 = vmatprep.mubr.msk.bf16.mxu0 %vm4735_vm2, %v4734_v8 }
 0x532   :  { %v758_v11 = vpop.xlane.xlu1 %757 }
 0x533   :  { %4509 = vrcp.f32 %v758_v11  ;;  %v114_v11 = vpop.permute.xlu0 %113 }
 0x53d   :  { %v4510_v63 = vpop.eup %4509 }
 0x53e   :  { %v776_v52 = vmul.f32 %v4510_v63, %v4492_v30  ;;  %v120_v63 = vsel %vm119_vm4, %v118_v25, %v114_v11  ;;  %vm1054_vm4 = vcmask 254976  }
 0x540   :  { %v781_v44 = vpack.c.bf16 %v776_v52, %v776_v52  ;;  %v171_v52 = vrot.slane %v120_v63, %v4858_v14 }
 0x542   :  { %4019 = vmatmul.mubr.msk.bf16.gmra.mrb[28].mxu0 %vm115_vm9, %v781_v44  ;;  %v984_v44 = vpop.permute.xlu0 %983  ;;  %vm172_vm3 = vcmp.eq.s32.totalorder %v4832_v3, %v171_v52  ;;  %vm173_vm0 = vcmp.eq.s32.totalorder %v4837_v4, %v171_v52  ;;  %v1240_v4 = vsel %vm393_vm14, %v5031_v32, 0 }
 0x543   :  { %4040 = vmatprep.mubr.msk.f32.mxu0 %vm4735_vm2, %v4734_v8  ;;  %4049 = vmatprep.subr.bf16.mxu1 %v984_v44 }
 0x544   :  { %4050 = vmatpush3.bf16.msra.mxu1 %v984_v44 }
 0x5e5   :  { %v839_v13 = vpop.f32.mrb[12].mxu0 }
 0x5e6   :  { %v4004_v15 = vpop.f32.mrb[13].mxu0  ;;  %v877_v30 = vmul.f32 %v4934_v60, %v839_v13 }
 0x5e7   :  { %v842_v62 = vpop.f32.mrb[14].mxu0 }
 0x5e8   :  { %v878_v38 = vmul.f32 %v4934_v60, %v842_v62  ;;  %v4005_v7 = vpop.f32.mrb[15].mxu0 }
 0x5e9   :  { %v5208_v7 = vsel %vm172_vm3, 1.0, %v4734_v8 }
 0x5ea   :  { %v4374_v40 = vpack.c.bf16 %v878_v38, %v877_v30  ;;  %v5205_v38 = vld [vmem:[%s5982_s3 + $0x4] ss:$8 sps:$4 sm:$0xff]  }
 0x5ec   :  { %4375 = vmatpush3.bf16.msra.mxu0 %v4374_v40 }
 0x5ed   :  { %v847_v43 = vpop.f32.mrb[16].mxu0  ;;  %4376 = vmatprep.subr.bf16.mxu0 %v4743_v6 }
 0x5ee   :  { %v4008_v56 = vpop.f32.mrb[17].mxu0  ;;  %v879_v26 = vmul.f32 %v4997_v9, %v847_v43  ;;  %v986_v43 = vpop.permute.xlu0 %985 }
 0x5ef   :  { %v850_v47 = vpop.f32.mrb[18].mxu0  ;;  %v167_v56 = vadd.s32 16, %v4832_v3  ;;  %4051 = vmatprep.subr.bf16.mxu1 %v986_v43 }
 0x5f0   :  { %v880_v49 = vmul.f32 %v4990_v0, %v850_v47  ;;  %v4009_v27 = vpop.f32.mrb[19].mxu0  ;;  %4052 = vmatpush3.bf16.msra.mxu1 %v986_v43  ;;  %v5218_v47 = vsel %vm173_vm0, 1.0, %v4734_v8  ;;  %vm104_vm0 = vcmask 31744  }
 0x5f1   :  { %4057 = vmatprep.subr.bf16.mxu1 %v5205_v38  ;;  %vm174_vm3 = vcmp.eq.s32.totalorder %v167_v56, %v171_v52 }
 0x5f2   :  { %v4377_v19 = vpack.c.bf16 %v880_v49, %v879_v26  ;;  %v5228_v3 = vsel %vm174_vm3, 1.0, %v4734_v8  ;;  %vm106_vm3 = vcmask 48128  }
 0x5f4   :  { %4378 = vmatpush3.bf16.msra.mxu0 %v4377_v19 }
 0x5f5   :  { %v855_v51 = vpop.f32.mrb[20].mxu0  ;;  %4379 = vmatprep.subr.bf16.mxu0 %v4743_v6 }
 0x5f6   :  { %v4012_v54 = vpop.f32.mrb[21].mxu0  ;;  %v881_v53 = vmul.f32 %v4983_v58, %v855_v51 }
 0x5f7   :  { %v858_v55 = vpop.f32.mrb[22].mxu0 }
 0x5f8   :  { %v882_v59 = vmul.f32 %v4979_v57, %v858_v55  ;;  %v4013_v10 = vpop.f32.mrb[23].mxu0  ;;  %v5239_v55 = vld [vmem:[%s5982_s3 + $0x14] ss:$8 sps:$4 sm:$0xff]  }
 0x5f9   :  { %v3654_v10 = vld [vmem:[%s5985_s6 + $0x1] ss:$0 sm:$0xff] }
 0x5fa   :  { %v4380_v35 = vpack.c.bf16 %v882_v59, %v881_v53 }
 0x5fc   :  { %4381 = vmatpush3.bf16.msra.mxu0 %v4380_v35 }
 0x5fd   :  { %v863_v39 = vpop.f32.mrb[24].mxu0  ;;  %4382 = vmatprep.subr.bf16.mxu0 %v4743_v6 }
 0x5fe   :  { %v4016_v31 = vpop.f32.mrb[25].mxu0  ;;  %v883_v16 = vmul.f32 %v5007_v17, %v863_v39 }
 0x5ff   :  { %v866_v41 = vpop.f32.mrb[26].mxu0 }
 0x600   :  { %v884_v20 = vmul.f32 %v5003_v12, %v866_v41  ;;  %v4017_v24 = vpop.f32.mrb[27].mxu0 }
 0x602   :  { %v4383_v50 = vpack.c.bf16 %v884_v20, %v883_v16 }
 0x604   :  { %4384 = vmatpush3.bf16.msra.mxu0 %v4383_v50 }
 0x605   :  { %4038 = vmatprep.subr.mxu0 %v4734_v8 }
 0x615   :  { %v871_v13 = vpop.f32.mrb[28].mxu0 }
 0x616   :  { %v885_v15 = vmul.f32 %v5003_v12, %v871_v13  ;;  %v4020_v62 = vpop.f32.mrb[29].mxu0 }
 0x617   :  { %v874_v30 = vpop.f32.mrb[30].mxu0 }
 0x618   :  { %v4021_v40 = vpop.f32.mrb[31].mxu0  ;;  %4039 = vmatpush3.msra.mxu0 %v885_v15 }
 0x619   :  { %4041 = vmatmul.mubr.msk.f32.vlgmr.msra.gmra.mrb[6].mxu0 %vm886_vm13, %v5208_v7  ;;  %4065 = vmatprep.subr.bf16.mxu0 %v4734_v8 }
 0x61a   :  { %4043 = vmatprep.mubr.msk.f32.mxu0 %vm4735_vm2, %v4734_v8 }
 0x61d   :  { %4044 = vmatmul.mubr.msk.f32.gmra.mrb[32].mxu0 %vm886_vm13, %v5218_v47 }
 0x61e   :  { %4046 = vmatprep.mubr.msk.f32.mxu0 %vm4735_vm2, %v4734_v8 }
 0x61f   :  { %4066 = vmatpush3.bf16.xpose.msra.mxu0 %v1240_v4 }
 0x620   :  { %4385 = vmatprep.subr.bf16.mxu0 %v4743_v6 }
 0x621   :  { %4047 = vmatmul.mubr.msk.f32.gmra.mrb[34].mxu0 %vm886_vm13, %v5228_v3 }
 0x622   :  { %4067 = vmatprep.mubr.msk.bf16.mxu0 %vm4735_vm2, %v4734_v8 }
 0x6ec   :  { %v962_v26 = vpop.f32.mrb[6].mxu0 }
 0x6ed   :  { %v4042_v49 = vpop.f32.mrb[7].mxu0 }
 0x6f0   :  { %v967_v27 = vpop.f32.mrb[32].mxu0 }
 0x6f1   :  { %v976_v19 = vpack.c.bf16 %v967_v27, %v962_v26  ;;  %v4045_v51 = vpop.f32.mrb[33].mxu0 }
 0x6f3   :  { %4053 = vmatprep.mubr.msk.bf16.mxu1 %vm393_vm14, %v976_v19 }
 0x6f4   :  { %v972_v54 = vpop.f32.mrb[34].mxu0 }
 0x6f5   :  { %v977_v53 = vpack.c.bf16 %v972_v54, %v972_v54  ;;  %v4048_v59 = vpop.f32.mrb[35].mxu0 }
 0x6f7   :  { %4054 = vmatmul.mubr.msk.bf16.vlgmr.msra.gmra.mrb[24].mxu1 %vm393_vm14, %v977_v53 }
 0x6f8   :  { %4058 = vmatpush3.bf16.msra.mxu1 %v5205_v38 }
 0x6f9   :  { %4059 = vmatprep.subr.bf16.mxu1 %v5239_v55 }
 0x6fc   :  { %4060 = vmatpush3.bf16.msra.mxu1 %v5239_v55 }
 0x6fd   :  { %4087 = vmatprep.subr.bf16.mxu1 %v4734_v8 }
 0x7ca   :  { %v4055_v35 = vpop.f32.mrb[24].mxu1 }
 0x7cb   :  { %v1029_v39 = vpop.f32.mrb[25].mxu1  ;;  %v1038_v16 = vadd.f32 %v4055_v35, %v3654_v10 }
 0x7cc   :  { %v1030_v31 = vadd.f32 %v3654_v10, %v1029_v39  ;;  %v4056_v41 = vpop.f32.mrb[26].mxu1 }
 0x7cd   :  { %v1032_v18 = vpop.f32.mrb[27].mxu1  ;;  %v1045_v25 = vadd.f32 %v1038_v16, %v4905_v42  ;;  %v3657_v41 = vld [vmem:[%s5985_s6 + $0x7] ss:$0 sm:$0xff] }
 0x7ce   :  { %v1033_v20 = vadd.f32 %v3654_v10, %v1032_v18  ;;  %v1043_v24 = vadd.f32 %v1030_v31, %v4898_v36 }
 0x7cf   :  { %v1055_v11 = vsel %vm1054_vm4, %v1045_v25, 0.0 }
 0x7d0   :  { %v1048_v50 = vsel %vm393_vm14, %v1043_v24, 0.0  ;;  %v1044_v45 = vadd.f32 %v1033_v20, %v4900_v37 }
 0x7d1   :  { %1049 = vadd.xlane.f32.xlu0 %v1048_v50 }
 0x7d2   :  { %v1051_v33 = vsel %vm393_vm14, %v1044_v45, 0.0 }
 0x7d3   :  { %1052 = vadd.xlane.f32.xlu1 %v1051_v33 }
 0x7d7   :  { %1056 = vadd.xlane.f32.xlu1 %v1055_v11 }
 0x7e7   :  { %96 = vrot.lane.b32.xlu0 %v4830_v2, %s4745_s12 }
 0x85e   :  { %v1050_v63 = vpop.xlane.xlu0 %1049 }
 0x85f   :  { %v1059_v52 = vmul.f32 0.03125, %v1050_v63 }
 0x860   :  { %v1053_v36 = vpop.xlane.xlu1 %1052 }
 0x861   :  { %v1062_v44 = vsub.f32 %v1043_v24, %v1059_v52  ;;  %v1060_v13 = vmul.f32 0.03125, %v1053_v36  ;;  %v3658_v24 = vld [vmem:[%s5985_s6 + $0x8] ss:$0 sm:$0xff] }
 0x863   :  { %v1063_v15 = vsub.f32 %v1044_v45, %v1060_v13  ;;  %v1065_v37 = vmul.f32 %v1062_v44, %v1062_v44  ;;  %v3659_v13 = vld [vmem:[%s5985_s6 + $0x2] ss:$0 sm:$0xff] }
 0x864   :  { %v1057_v62 = vpop.xlane.xlu1 %1056 }
 0x865   :  { %v1061_v30 = vmul.f32 0.03125, %v1057_v62  ;;  %v1068_v40 = vsel %vm393_vm14, %v1065_v37, 0.0  ;;  %v1066_v42 = vmul.f32 %v1063_v15, %v1063_v15 }
 0x866   :  { %1069 = vadd.xlane.f32.xlu1 %v1068_v40 }
 0x867   :  { %v1064_v43 = vsub.f32 %v1045_v25, %v1061_v30  ;;  %v1071_v56 = vsel %vm393_vm14, %v1066_v42, 0.0 }
 0x869   :  { %v1067_v4 = vmul.f32 %v1064_v43, %v1064_v43 }
 0x86a   :  { %1072 = vadd.xlane.f32.xlu1 %v1071_v56 }
 0x86b   :  { %v1074_v26 = vsel %vm1054_vm4, %v1067_v4, 0.0 }
 0x86e   :  { %1075 = vadd.xlane.f32.xlu1 %v1074_v26 }
 0x87f   :  { %94 = vrot.lane.b32.xlu1 %v4830_v2, %s4746_s13 }
 0x883   :  { %98 = vrot.lane.b32.xlu1 %v4830_v2, %s4747_s14 }
 0x887   :  { %100 = vrot.lane.b32.xlu1 %v4830_v2, %s4730_s27 }
 0x8f3   :  { %v1070_v49 = vpop.xlane.xlu1 %1069 }
 0x8f4   :  { %v1077_v27 = vmul.f32 0.03125, %v1070_v49 }
 0x8f6   :  { %v1080_v19 = vadd.f32 1e-05, %v1077_v27 }
 0x8f7   :  { %v1073_v51 = vpop.xlane.xlu1 %1072 }
 0x8f8   :  { %4511 = vrsqrt.f32 %v1080_v19  ;;  %v1078_v54 = vmul.f32 0.03125, %v1073_v51 }
 0x8fa   :  { %v1081_v53 = vadd.f32 1e-05, %v1078_v54 }
 0x8fb   :  { %v1076_v59 = vpop.xlane.xlu1 %1075 }
 0x8fc   :  { %4513 = vrsqrt.f32 %v1081_v53  ;;  %v1079_v10 = vmul.f32 0.03125, %v1076_v59 }
 0x8fe   :  { %v1082_v35 = vadd.f32 1e-05, %v1079_v10 }
 0x900   :  { %4515 = vrsqrt.f32 %v1082_v35 }
 0x902   :  { %v4512_v39 = vpop.eup %4511 }
 0x903   :  { %v1086_v31 = vmul.f32 %v4512_v39, %v1062_v44 }
 0x905   :  { %v1093_v20 = vmul.f32 %v3657_v41, %v1086_v31 }
 0x906   :  { %v4514_v18 = vpop.eup %4513 }
 0x907   :  { %v1087_v16 = vmul.f32 %v4514_v18, %v1063_v15  ;;  %v5269_v25 = vadd.f32 %v3658_v24, %v1093_v20 }
 0x909   :  { %v1094_v50 = vmul.f32 %v3657_v41, %v1087_v16 }
 0x90a   :  { %v4516_v45 = vpop.eup %4515 }
 0x90b   :  { %v1088_v33 = vmul.f32 %v4516_v45, %v1064_v43  ;;  %v5271_v11 = vadd.f32 %v3658_v24, %v1094_v50 }
 0x90d   :  { %v1103_v63 = vpack.c.bf16 %v5271_v11, %v5269_v25  ;;  %v1095_v52 = vmul.f32 %v3657_v41, %v1088_v33 }
 0x90f   :  { %4061 = vmatprep.mubr.msk.bf16.mxu1 %vm393_vm14, %v1103_v63  ;;  %v5276_v36 = vadd.f32 %v3658_v24, %v1095_v52 }
 0x911   :  { %v1104_v44 = vpack.c.bf16 %v5276_v36, %v5276_v36 }
 0x913   :  { %4062 = vmatmul.mubr.msk.bf16.vlgmr.msra.gmra.mrb[28].mxu1 %vm393_vm14, %v1104_v44 }
 0x914   :  { %4089 = vmatprep.mubr.msk.bf16.mxu1 %vm4735_vm2, %v4734_v8 }
 0x9e6   :  { %v4063_v15 = vpop.f32.mrb[28].mxu1 }
 0x9e7   :  { %v1158_v37 = vpop.f32.mrb[29].mxu1  ;;  %v1167_v62 = vadd.f32 %v4063_v15, %v3659_v13 }
 0x9e8   :  { %v1159_v30 = vadd.f32 %v3659_v13, %v1158_v37  ;;  %v4064_v40 = vpop.f32.mrb[30].mxu1 }
 0x9e9   :  { %v1161_v42 = vpop.f32.mrb[31].mxu1  ;;  %v1185_v4 = vrot.slane %v1167_v62, 6  ;;  %v1193_v59 = vrot.slane %v1167_v62, 4  ;;  %v1201_v10 = vrot.slane %v1167_v62, 2 }
 0x9ea   :  { %v1182_v43 = vrot.slane %v1159_v30, 6  ;;  %v1162_v56 = vadd.f32 %v3659_v13, %v1161_v42  ;;  %v1190_v26 = vrot.slane %v1159_v30, 4  ;;  %v1209_v49 = vmul.f32 %v4934_v60, %v1159_v30 }
 0x9eb   :  { %v1198_v35 = vrot.slane %v1159_v30, 2 }
 0x9ec   :  { %v1206_v27 = vsel %vm66_vm1, %v1167_v62, %v1182_v43  ;;  %v1183_v19 = vrot.slane %v1162_v56, 6  ;;  %v1191_v51 = vrot.slane %v1162_v56, 4  ;;  %v1199_v54 = vrot.slane %v1162_v56, 2 }
 0x9ed   :  { %v1210_v53 = vmul.f32 %v4934_v60, %v1162_v56  ;;  %v1211_v39 = vmul.f32 %v4997_v9, %v1206_v27 }
 0x9ee   :  { %v1184_v41 = vsel %vm66_vm1, %v1182_v43, %v1183_v19  ;;  %v1186_v18 = vsel %vm66_vm1, %v1183_v19, %v1185_v4  ;;  %v1192_v16 = vsel %vm70_vm7, %v1190_v26, %v1191_v51  ;;  %v1194_v45 = vsel %vm70_vm7, %v1191_v51, %v1193_v59  ;;  %v95_v43 = vpop.permute.xlu1 %94 }
 0x9ef   :  { %v1218_v31 = vpack.c.bf16 %v1210_v53, %v1209_v49  ;;  %v1212_v20 = vmul.f32 %v4990_v0, %v1184_v41  ;;  %v1207_v24 = vsel %vm70_vm7, %v1186_v18, %v1190_v26  ;;  %v1214_v50 = vmul.f32 %v4979_v57, %v1192_v16  ;;  %v97_v26 = vpop.permute.xlu0 %96 }
 0x9f0   :  { %v1213_v33 = vmul.f32 %v4983_v58, %v1207_v24  ;;  %v1200_v63 = vsel %vm74_vm8, %v1198_v35, %v1199_v54  ;;  %v1208_v52 = vsel %vm74_vm8, %v1194_v45, %v1198_v35  ;;  %v1202_v44 = vsel %vm74_vm8, %v1199_v54, %v1201_v10 }
 0x9f1   :  { %4068 = vmatmul.mubr.msk.bf16.vlgmr.msra.gmra.mrb[36].mxu0 %vm393_vm14, %v1218_v31  ;;  %v1219_v13 = vpack.c.bf16 %v1212_v20, %v1211_v39  ;;  %v1215_v15 = vmul.f32 %v5007_v17, %v1208_v52  ;;  %v1216_v37 = vmul.f32 %v5003_v12, %v1200_v63  ;;  %v1217_v40 = vmul.f32 %v5003_v12, %v1202_v44 }
 0x9f2   :  { %4071 = vmatprep.mubr.msk.bf16.mxu0 %vm4735_vm2, %v4734_v8  ;;  %v1220_v62 = vpack.c.bf16 %v1214_v50, %v1213_v33  ;;  %v103_v56 = vsel %vm102_vm6, %v4830_v2, %v95_v43  ;;  %v99_v4 = vpop.permute.xlu1 %98 }
 0x9f3   :  { %v1221_v30 = vpack.c.bf16 %v1216_v37, %v1215_v15  ;;  %v1222_v42 = vpack.c.bf16 %v1217_v40, %v1217_v40  ;;  %v105_v49 = vsel %vm104_vm0, %v103_v56, %v97_v26 }
 0x9f4   :  { %v107_v19 = vsel %vm106_vm3, %v105_v49, %v99_v4 }
 0x9f6   :  { %v101_v27 = vpop.permute.xlu1 %100 }
 0x9f7   :  { %v108_v51 = vsel %vm84_vm15, %v107_v19, %v101_v27 }
 0x9f8   :  { %v5323_v54 = vrot.slane %v108_v51, %v4858_v14 }
 0x9f9   :  { %4072 = vmatmul.mubr.msk.bf16.gmra.mrb[40].mxu0 %vm393_vm14, %v1219_v13 }
 0x9fa   :  { %4075 = vmatprep.mubr.msk.bf16.mxu0 %vm4735_vm2, %v4734_v8  ;;  %vm3623_vm12 = vcmp.eq.s32.totalorder %v5323_v54, 0  ;;  %vm223_vm6 = vcmp.eq.s32.totalorder %v4864_v22, %v5323_v54  ;;  %vm224_vm15 = vcmp.eq.s32.totalorder %v5053_v46, %v5323_v54  ;;  %vm5996_vm0 = vcmp.eq.s32.totalorder %v5055_v48, %v5323_v54 }
 0x9fb   :  { %vm5997_vm3 = vcmp.eq.s32.totalorder %v5069_v61, %v5323_v54 }
 0xa01   :  { %4076 = vmatmul.mubr.msk.bf16.gmra.mrb[44].mxu0 %vm393_vm14, %v1220_v62 }
 0xa02   :  { %4079 = vmatprep.mubr.msk.bf16.mxu0 %vm4735_vm2, %v4734_v8 }
 0xa09   :  { %4080 = vmatmul.mubr.msk.bf16.gmra.mrb[48].mxu0 %vm393_vm14, %v1221_v30 }
 0xa0a   :  { %4083 = vmatprep.mubr.msk.bf16.mxu0 %vm4735_vm2, %v4734_v8 }
 0xa11   :  { %4084 = vmatmul.mubr.msk.bf16.gmra.mrb[52].mxu0 %vm393_vm14, %v1222_v42 }
 0xa12   :  { %4127 = vmatprep.mubr.msk.f32.mxu0 %vm4735_vm2, %v4734_v8 }
 0xac4   :  { %v1276_v53 = vpop.f32.mrb[36].mxu0 }
 0xac5   :  { %v1314_v59 = vmul.f32 0.35355338, %v1276_v53  ;;  %v4069_v10 = vpop.f32.mrb[37].mxu0 }
 0xac6   :  { %v1279_v35 = vpop.f32.mrb[38].mxu0 }
 0xac7   :  { %v1315_v2 = vmul.f32 0.35355338, %v1279_v35  ;;  %v4070_v39 = vpop.f32.mrb[39].mxu0  ;;  %v1323_v31 = vsel %vm3623_vm12, %v1314_v59, -1e+30 }
 0xac8   :  { %v1333_v41 = vsel %vm1332_vm11, %v1323_v31, -inf }
 0xac9   :  { %1334 = vmax.xlane.f32.xlu1 %v1333_v41  ;;  %v1324_v14 = vsel %vm223_vm6, %v1315_v2, -1e+30 }
 0xaca   :  { %v1336_v18 = vsel %vm1332_vm11, %v1324_v14, -inf }
 0xacb   :  { %1337 = vmax.xlane.f32.xlu0 %v1336_v18 }
 0xacc   :  { %v1284_v16 = vpop.f32.mrb[40].mxu0 }
 0xacd   :  { %v1316_v20 = vmul.f32 0.35355338, %v1284_v16  ;;  %v4073_v24 = vpop.f32.mrb[41].mxu0 }
 0xace   :  { %v1287_v50 = vpop.f32.mrb[42].mxu0 }
 0xacf   :  { %v1317_v45 = vmul.f32 0.35355338, %v1287_v50  ;;  %v4074_v33 = vpop.f32.mrb[43].mxu0  ;;  %v1325_v63 = vsel %vm224_vm15, %v1316_v20, -1e+30 }
 0xad0   :  { %v1339_v52 = vsel %vm1332_vm11, %v1325_v63, -inf }
 0xad1   :  { %1340 = vmax.xlane.f32.xlu1 %v1339_v52  ;;  %v1326_v44 = vsel %vm5996_vm0, %v1317_v45, -1e+30  ;;  %vm5998_vm0 = vcmp.eq.s32.totalorder %v5071_v5, %v5323_v54 }
 0xad2   :  { %v1342_v13 = vsel %vm1332_vm11, %v1326_v44, -inf }
 0xad3   :  { %1343 = vmax.xlane.f32.xlu0 %v1342_v13 }
 0xad4   :  { %v1292_v15 = vpop.f32.mrb[44].mxu0 }
 0xad5   :  { %v1318_v37 = vmul.f32 0.35355338, %v1292_v15  ;;  %v4077_v62 = vpop.f32.mrb[45].mxu0 }
 0xad6   :  { %v1295_v30 = vpop.f32.mrb[46].mxu0 }
 0xad7   :  { %v1319_v40 = vmul.f32 0.35355338, %v1295_v30  ;;  %v4078_v42 = vpop.f32.mrb[47].mxu0  ;;  %v1327_v43 = vsel %vm5997_vm3, %v1318_v37, -1e+30  ;;  %vm5999_vm3 = vcmp.eq.s32.totalorder %v5085_v21, %v5323_v54 }
 0xad8   :  { %v1345_v56 = vsel %vm1332_vm11, %v1327_v43, -inf }
 0xad9   :  { %1346 = vmax.xlane.f32.xlu1 %v1345_v56  ;;  %v1328_v4 = vsel %vm5998_vm0, %v1319_v40, -1e+30  ;;  %vm229_vm0 = vcmp.eq.s32.totalorder %v5087_v28, %v5323_v54 }
 0xada   :  { %v1348_v26 = vsel %vm1332_vm11, %v1328_v4, -inf }
 0xadb   :  { %1349 = vmax.xlane.f32.xlu0 %v1348_v26 }
 0xadc   :  { %v1300_v49 = vpop.f32.mrb[48].mxu0 }
 0xadd   :  { %v1320_v27 = vmul.f32 0.35355338, %v1300_v49  ;;  %v4081_v19 = vpop.f32.mrb[49].mxu0 }
 0xade   :  { %v1303_v51 = vpop.f32.mrb[50].mxu0 }
 0xadf   :  { %v1321_v53 = vmul.f32 0.35355338, %v1303_v51  ;;  %v4082_v59 = vpop.f32.mrb[51].mxu0  ;;  %v1329_v10 = vsel %vm5999_vm3, %v1320_v27, -1e+30  ;;  %vm6000_vm3 = vcmp.eq.s32.totalorder %v5101_v1, %v5323_v54 }
 0xae0   :  { %v1351_v35 = vsel %vm1332_vm11, %v1329_v10, -inf }
 0xae1   :  { %1352 = vmax.xlane.f32.xlu1 %v1351_v35  ;;  %v1330_v2 = vsel %vm229_vm0, %v1321_v53, -1e+30 }
 0xae2   :  { %v1354_v39 = vsel %vm1332_vm11, %v1330_v2, -inf }
 0xae3   :  { %1355 = vmax.xlane.f32.xlu0 %v1354_v39 }
 0xae4   :  { %v1308_v41 = vpop.f32.mrb[52].mxu0 }
 0xae5   :  { %v1322_v18 = vmul.f32 0.35355338, %v1308_v41  ;;  %v4085_v16 = vpop.f32.mrb[53].mxu0 }
 0xae6   :  { %v1311_v20 = vpop.f32.mrb[54].mxu0 }
 0xae7   :  { %v4086_v24 = vpop.f32.mrb[55].mxu0  ;;  %v1331_v50 = vsel %vm6000_vm3, %v1322_v18, -1e+30  ;;  %vm6001_vm3 = vcmask 1044480  }
 0xae8   :  { %v1357_v45 = vsel %vm1332_vm11, %v1331_v50, -inf }
 0xae9   :  { %1358 = vmax.xlane.f32.xlu1 %v1357_v45 }
 0xb56   :  { %v1335_v33 = vpop.xlane.xlu1 %1334 }
 0xb57   :  { %v1360_v52 = vsub.f32 %v1323_v31, %v1335_v33 }
 0xb58   :  { %v1338_v13 = vpop.xlane.xlu0 %1337 }
 0xb59   :  { %v1369_v15 = vmul.f32 1.442695, %v1360_v52  ;;  %v1361_v37 = vsub.f32 %v1324_v14, %v1338_v13 }
 0xb5b   :  { %4517 = vpow2.f32 %v1369_v15  ;;  %v1371_v62 = vmul.f32 1.442695, %v1361_v37 }
 0xb5d   :  { %4519 = vpow2.f32 %v1371_v62 }
 0xb5e   :  { %v1341_v30 = vpop.xlane.xlu1 %1340 }
 0xb5f   :  { %v1362_v40 = vsub.f32 %v1325_v63, %v1341_v30 }
 0xb60   :  { %v1344_v42 = vpop.xlane.xlu0 %1343 }
 0xb61   :  { %v1373_v56 = vmul.f32 1.442695, %v1362_v40  ;;  %v1363_v26 = vsub.f32 %v1326_v44, %v1344_v42 }
 0xb63   :  { %4521 = vpow2.f32 %v1373_v56  ;;  %v1375_v49 = vmul.f32 1.442695, %v1363_v26 }
 0xb65   :  { %v5377_v27 = vpop.eup %4517  ;;  %4523 = vpow2.f32 %v1375_v49 }
 0xb66   :  { %v1347_v19 = vpop.xlane.xlu1 %1346  ;;  %v1387_v31 = vsel %vm1332_vm11, %v5377_v27, 0.0 }
 0xb67   :  { %v4520_v51 = vpop.eup %4519  ;;  %v1364_v53 = vsub.f32 %v1327_v43, %v1347_v19  ;;  %1388 = vadd.xlane.f32.xlu0 %v1387_v31 }
 0xb68   :  { %v1350_v14 = vpop.xlane.xlu0 %1349  ;;  %v1390_v59 = vsel %vm1332_vm11, %v4520_v51, 0.0 }
 0xb69   :  { %v1377_v35 = vmul.f32 1.442695, %v1364_v53  ;;  %v1365_v63 = vsub.f32 %v1328_v4, %v1350_v14  ;;  %1391 = vadd.xlane.f32.xlu1 %v1390_v59 }
 0xb6b   :  { %4525 = vpow2.f32 %v1377_v35  ;;  %v1379_v44 = vmul.f32 1.442695, %v1365_v63 }
 0xb6d   :  { %v5382_v39 = vpop.eup %4521  ;;  %4527 = vpow2.f32 %v1379_v44 }
 0xb6e   :  { %v1353_v41 = vpop.xlane.xlu1 %1352  ;;  %v1393_v18 = vsel %vm1332_vm11, %v5382_v39, 0.0 }
 0xb6f   :  { %v4524_v16 = vpop.eup %4523  ;;  %v1366_v20 = vsub.f32 %v1329_v10, %v1353_v41  ;;  %1394 = vadd.xlane.f32.xlu0 %v1393_v18 }
 0xb70   :  { %v1356_v43 = vpop.xlane.xlu0 %1355  ;;  %v1396_v24 = vsel %vm1332_vm11, %v4524_v16, 0.0 }
 0xb71   :  { %v1381_v45 = vmul.f32 1.442695, %v1366_v20  ;;  %v1367_v33 = vsub.f32 %v1330_v2, %v1356_v43  ;;  %1397 = vadd.xlane.f32.xlu1 %v1396_v24 }
 0xb73   :  { %4529 = vpow2.f32 %v1381_v45  ;;  %v1383_v4 = vmul.f32 1.442695, %v1367_v33 }
 0xb75   :  { %v4526_v52 = vpop.eup %4525  ;;  %4531 = vpow2.f32 %v1383_v4 }
 0xb76   :  { %v1359_v13 = vpop.xlane.xlu1 %1358  ;;  %v1399_v15 = vsel %vm1332_vm11, %v4526_v52, 0.0 }
 0xb77   :  { %v4528_v37 = vpop.eup %4527  ;;  %v1368_v62 = vsub.f32 %v1331_v50, %v1359_v13  ;;  %1400 = vadd.xlane.f32.xlu0 %v1399_v15 }
 0xb78   :  { %v1402_v30 = vsel %vm1332_vm11, %v4528_v37, 0.0 }
 0xb79   :  { %v1385_v10 = vmul.f32 1.442695, %v1368_v62  ;;  %1403 = vadd.xlane.f32.xlu1 %v1402_v30 }
 0xb7b   :  { %4533 = vpow2.f32 %v1385_v10 }
 0xb7d   :  { %v4530_v40 = vpop.eup %4529 }
 0xb7e   :  { %v1405_v42 = vsel %vm1332_vm11, %v4530_v40, 0.0 }
 0xb7f   :  { %v4532_v2 = vpop.eup %4531  ;;  %1406 = vadd.xlane.f32.xlu0 %v1405_v42 }
 0xb80   :  { %v1408_v56 = vsel %vm1332_vm11, %v4532_v2, 0.0 }
 0xb81   :  { %1409 = vadd.xlane.f32.xlu1 %v1408_v56 }
 0xb85   :  { %v4534_v26 = vpop.eup %4533 }
 0xb86   :  { %v1411_v49 = vsel %vm1332_vm11, %v4534_v26, 0.0 }
 0xb87   :  { %1412 = vadd.xlane.f32.xlu1 %v1411_v49 }
 0xb95   :  { %1438 = vrot.lane.b32.xlu0 %v5031_v32, %s4736_s20 }
 0xb98   :  { %1627 = vrot.lane.b32.xlu1 %v5205_v38, %s4736_s20 }
 0xb99   :  { %1629 = vrot.lane.b32.xlu0 %v5239_v55, %s4736_s20 }
 0xbf4   :  { %v1389_v19 = vpop.xlane.xlu0 %1388 }
 0xbf6   :  { %v1392_v50 = vpop.xlane.xlu1 %1391 }
 0xbf7   :  { %4535 = vrcp.f32 %v1392_v50 }
 0xbf8   :  { %4537 = vrcp.f32 %v1389_v19 }
 0xbfc   :  { %v1395_v31 = vpop.xlane.xlu0 %1394 }
 0xbfe   :  { %v1398_v53 = vpop.xlane.xlu1 %1397 }
 0xbff   :  { %4539 = vrcp.f32 %v1398_v53 }
 0xc00   :  { %4541 = vrcp.f32 %v1395_v31 }
 0xc01   :  { %v4536_v59 = vpop.eup %4535 }
 0xc02   :  { %v4538_v63 = vpop.eup %4537  ;;  %v1424_v32 = vmul.f32 %v4536_v59, %v4520_v51 }
 0xc03   :  { %v1423_v18 = vmul.f32 %v4538_v63, %v5377_v27 }
 0xc04   :  { %v1401_v14 = vpop.xlane.xlu0 %1400 }
 0xc05   :  { %v1432_v43 = vpack.c.bf16 %v1424_v32, %v1423_v18 }
 0xc06   :  { %v1404_v44 = vpop.xlane.xlu1 %1403 }
 0xc07   :  { %4543 = vrcp.f32 %v1404_v44 }
 0xc08   :  { %4545 = vrcp.f32 %v1401_v14 }
 0xc09   :  { %v4540_v24 = vpop.eup %4539 }
 0xc0a   :  { %v4542_v45 = vpop.eup %4541  ;;  %v1426_v4 = vmul.f32 %v4540_v24, %v4524_v16 }
 0xc0b   :  { %v1425_v51 = vmul.f32 %v4542_v45, %v5382_v39 }
 0xc0c   :  { %v1407_v35 = vpop.xlane.xlu0 %1406 }
 0xc0d   :  { %v1433_v13 = vpack.c.bf16 %v1426_v4, %v1425_v51 }
 0xc0e   :  { %v1410_v33 = vpop.xlane.xlu1 %1409 }
 0xc0f   :  { %4547 = vrcp.f32 %v1410_v33 }
 0xc10   :  { %v1439_v41 = vpop.permute.xlu0 %1438  ;;  %4549 = vrcp.f32 %v1407_v35 }
 0xc11   :  { %v1457_v20 = vsel %vm6001_vm3, %v1439_v41, 0  ;;  %v4544_v27 = vpop.eup %4543  ;;  %vm6002_vm3 = vcmask 523264  }
 0xc12   :  { %4088 = vmatpush3.bf16.msra.mxu1 %v1457_v20  ;;  %v4546_v15 = vpop.eup %4545  ;;  %v1428_v30 = vmul.f32 %v4544_v27, %v4528_v37 }
 0xc13   :  { %v1427_v10 = vmul.f32 %v4546_v15, %v4526_v52 }
 0xc14   :  { %v1413_v62 = vpop.xlane.xlu1 %1412  ;;  %v1630_v53 = vpop.permute.xlu0 %1629 }
 0xc15   :  { %4090 = vmatmul.mubr.msk.bf16.vlgmr.msra.gmra.mrb[32].mxu1 %vm1332_vm11, %v1432_v43  ;;  %4551 = vrcp.f32 %v1413_v62  ;;  %v1434_v42 = vpack.c.bf16 %v1428_v30, %v1427_v10 }
 0xc16   :  { %4093 = vmatprep.mubr.msk.bf16.mxu1 %vm4735_vm2, %v4734_v8 }
 0xc18   :  { %v1628_v31 = vpop.permute.xlu1 %1627 }
 0xc19   :  { %v4548_v56 = vpop.eup %4547  ;;  %4136 = vmatprep.subr.bf16.mxu1 %v1628_v31 }
 0xc1a   :  { %v4550_v16 = vpop.eup %4549  ;;  %v1430_v39 = vmul.f32 %v4548_v56, %v4532_v2  ;;  %4137 = vmatpush3.bf16.msra.mxu1 %v1628_v31 }
 0xc1b   :  { %v1429_v49 = vmul.f32 %v4550_v16, %v4530_v40  ;;  %4138 = vmatprep.subr.bf16.mxu1 %v1630_v53 }
 0xc1d   :  { %4094 = vmatmul.mubr.msk.bf16.gmra.mrb[36].mxu1 %vm1332_vm11, %v1433_v13  ;;  %v1435_v50 = vpack.c.bf16 %v1430_v39, %v1429_v49 }
 0xc1e   :  { %4097 = vmatprep.mubr.msk.bf16.mxu1 %vm4735_vm2, %v4734_v8  ;;  %4139 = vmatpush3.bf16.msra.mxu1 %v1630_v53 }
 0xc1f   :  { %v4552_v19 = vpop.eup %4551 }
 0xc20   :  { %v1431_v37 = vmul.f32 %v4552_v19, %v4534_v26 }
 0xc22   :  { %v1436_v52 = vpack.c.bf16 %v1431_v37, %v1431_v37 }
 0xc25   :  { %4098 = vmatmul.mubr.msk.bf16.gmra.mrb[40].mxu1 %vm1332_vm11, %v1434_v42 }
 0xc26   :  { %4101 = vmatprep.mubr.msk.bf16.mxu1 %vm4735_vm2, %v4734_v8 }
 0xc2d   :  { %4102 = vmatmul.mubr.msk.bf16.gmra.mrb[44].mxu1 %vm1332_vm11, %v1435_v50 }
 0xc2e   :  { %4105 = vmatprep.mubr.msk.bf16.mxu1 %vm4735_vm2, %v4734_v8 }
 0xc35   :  { %4106 = vmatmul.mubr.msk.bf16.gmra.mrb[48].mxu1 %vm1332_vm11, %v1436_v52 }
 0xce8   :  { %v1493_v14 = vpop.f32.mrb[32].mxu1 }
 0xce9   :  { %v4091_v2 = vpop.f32.mrb[33].mxu1  ;;  %v1531_v59 = vmul.f32 %v4934_v60, %v1493_v14 }
 0xcea   :  { %v1496_v40 = vpop.f32.mrb[34].mxu1 }
 0xceb   :  { %v1532_v35 = vmul.f32 %v4934_v60, %v1496_v40  ;;  %v4092_v63 = vpop.f32.mrb[35].mxu1 }
 0xced   :  { %v4386_v32 = vpack.c.bf16 %v1532_v35, %v1531_v59 }
 0xcef   :  { %4387 = vmatpush3.bf16.msra.mxu0 %v4386_v32  ;;  %v3678_v32 = vld [vmem:[%s5985_s6 + $0x4] ss:$0 sm:$0xff] }
 0xcf0   :  { %v1501_v26 = vpop.f32.mrb[36].mxu1  ;;  %4388 = vmatprep.subr.bf16.mxu0 %v4743_v6 }
 0xcf1   :  { %v4095_v44 = vpop.f32.mrb[37].mxu1  ;;  %v1533_v18 = vmul.f32 %v4997_v9, %v1501_v26 }
 0xcf2   :  { %v1504_v41 = vpop.f32.mrb[38].mxu1 }
 0xcf3   :  { %v1534_v20 = vmul.f32 %v4990_v0, %v1504_v41  ;;  %v4096_v43 = vpop.f32.mrb[39].mxu1 }
 0xcf5   :  { %v4389_v24 = vpack.c.bf16 %v1534_v20, %v1533_v18 }
 0xcf7   :  { %4390 = vmatpush3.bf16.msra.mxu0 %v4389_v24 }
 0xcf8   :  { %v1509_v45 = vpop.f32.mrb[40].mxu1  ;;  %4391 = vmatprep.subr.bf16.mxu0 %v4743_v6 }
 0xcf9   :  { %v4099_v33 = vpop.f32.mrb[41].mxu1  ;;  %v1535_v51 = vmul.f32 %v4983_v58, %v1509_v45 }
 0xcfa   :  { %v1512_v4 = vpop.f32.mrb[42].mxu1 }
 0xcfb   :  { %v1536_v13 = vmul.f32 %v4979_v57, %v1512_v4  ;;  %v4100_v27 = vpop.f32.mrb[43].mxu1 }
 0xcfd   :  { %v4392_v15 = vpack.c.bf16 %v1536_v13, %v1535_v51 }
 0xcff   :  { %4393 = vmatpush3.bf16.msra.mxu0 %v4392_v15 }
 0xd00   :  { %v1517_v62 = vpop.f32.mrb[44].mxu1  ;;  %4394 = vmatprep.subr.bf16.mxu0 %v4743_v6 }
 0xd01   :  { %v4103_v30 = vpop.f32.mrb[45].mxu1  ;;  %v1537_v42 = vmul.f32 %v5007_v17, %v1517_v62 }
 0xd02   :  { %v1520_v10 = vpop.f32.mrb[46].mxu1 }
 0xd03   :  { %v1538_v56 = vmul.f32 %v5003_v12, %v1520_v10  ;;  %v4104_v16 = vpop.f32.mrb[47].mxu1 }
 0xd05   :  { %v4395_v39 = vpack.c.bf16 %v1538_v56, %v1537_v42 }
 0xd07   :  { %4396 = vmatpush3.bf16.msra.mxu0 %v4395_v39 }
 0xd08   :  { %v1525_v49 = vpop.f32.mrb[48].mxu1  ;;  %4125 = vmatprep.subr.mxu0 %v4734_v8 }
 0xd09   :  { %v1539_v50 = vmul.f32 %v5003_v12, %v1525_v49  ;;  %v4107_v19 = vpop.f32.mrb[49].mxu1 }
 0xd0a   :  { %v1528_v37 = vpop.f32.mrb[50].mxu1 }
 0xd0b   :  { %v4108_v52 = vpop.f32.mrb[51].mxu1  ;;  %4126 = vmatpush3.msra.mxu0 %v1539_v50 }
 0xd0c   :  { %4128 = vmatmul.mubr.msk.f32.vlgmr.msra.gmra.mrb[56].mxu0 %vm886_vm13, %v5208_v7  ;;  %v4461_v52 = vld [vmem:[%s5984_s5] sm:$0xff]  }
 0xd0d   :  { %4130 = vmatprep.mubr.msk.f32.mxu0 %vm4735_vm2, %v4734_v8  ;;  %4152 = vmatprep.subr.bf16.mxu1 %v4461_v52 }
 0xd10   :  { %4131 = vmatmul.mubr.msk.f32.gmra.mrb[58].mxu0 %vm886_vm13, %v5218_v47 }
 0xd11   :  { %4133 = vmatprep.mubr.msk.f32.mxu0 %vm4735_vm2, %v4734_v8 }
 0xd14   :  { %4134 = vmatmul.mubr.msk.f32.gmra.mrb[60].mxu0 %vm886_vm13, %v5228_v3 }
 0xddf   :  { %v1606_v31 = vpop.f32.mrb[56].mxu0 }
 0xde0   :  { %v4129_v53 = vpop.f32.mrb[57].mxu0 }
 0xde3   :  { %v1611_v14 = vpop.f32.mrb[58].mxu0 }
 0xde4   :  { %v1620_v2 = vpack.c.bf16 %v1611_v14, %v1606_v31  ;;  %v4132_v40 = vpop.f32.mrb[59].mxu0  ;;  %v4462_v31 = vld [vmem:[%s5984_s5 + $0x8] sm:$0xff]  }
 0xde6   :  { %4140 = vmatprep.mubr.msk.bf16.mxu1 %vm393_vm14, %v1620_v2 }
 0xde7   :  { %v1616_v59 = vpop.f32.mrb[60].mxu0 }
 0xde8   :  { %v1621_v35 = vpack.c.bf16 %v1616_v59, %v1616_v59  ;;  %v4135_v63 = vpop.f32.mrb[61].mxu0 }
 0xdea   :  { %4141 = vmatmul.mubr.msk.bf16.vlgmr.msra.gmra.mrb[52].mxu1 %vm393_vm14, %v1621_v35 }
 0xdeb   :  { %4153 = vmatpush3.bf16.msra.mxu1 %v4461_v52 }
 0xdec   :  { %4154 = vmatprep.subr.bf16.mxu1 %v4462_v31 }
 0xdef   :  { %4155 = vmatpush3.bf16.msra.mxu1 %v4462_v31 }
 0xebd   :  { %v4142_v26 = vpop.f32.mrb[52].mxu1 }
 0xebe   :  { %v1673_v44 = vpop.f32.mrb[53].mxu1  ;;  %v1682_v43 = vadd.f32 %v4142_v26, %v3678_v32 }
 0xebf   :  { %v1674_v41 = vadd.f32 %v3678_v32, %v1673_v44  ;;  %v4143_v18 = vpop.f32.mrb[54].mxu1 }
 0xec0   :  { %v1676_v20 = vpop.f32.mrb[55].mxu1  ;;  %v1689_v13 = vadd.f32 %v1682_v43, %v5276_v36  ;;  %v3681_v43 = vld [vmem:[%s5985_s6 + $0x9] ss:$0 sm:$0xff] }
 0xec1   :  { %v1677_v24 = vadd.f32 %v3678_v32, %v1676_v20  ;;  %v1687_v45 = vadd.f32 %v1674_v41, %v5269_v25 }
 0xec2   :  { %v1698_v27 = vsel %vm1054_vm4, %v1689_v13, 0.0 }
 0xec3   :  { %v1692_v33 = vsel %vm393_vm14, %v1687_v45, 0.0  ;;  %v1688_v4 = vadd.f32 %v1677_v24, %v5271_v11 }
 0xec4   :  { %1693 = vadd.xlane.f32.xlu1 %v1692_v33 }
 0xec5   :  { %v1695_v51 = vsel %vm393_vm14, %v1688_v4, 0.0 }
 0xec6   :  { %1696 = vadd.xlane.f32.xlu0 %v1695_v51  ;;  %v3682_v51 = vld [vmem:[%s5985_s6 + $0xa] ss:$0 sm:$0xff] }
 0xeca   :  { %1699 = vadd.xlane.f32.xlu0 %v1698_v27 }
 0xf51   :  { %v1694_v15 = vpop.xlane.xlu1 %1693 }
 0xf52   :  { %v1701_v10 = vmul.f32 0.03125, %v1694_v15 }
 0xf53   :  { %v1697_v62 = vpop.xlane.xlu0 %1696 }
 0xf54   :  { %v1702_v30 = vmul.f32 0.03125, %v1697_v62  ;;  %v1704_v39 = vsub.f32 %v1687_v45, %v1701_v10 }
 0xf56   :  { %v1705_v42 = vsub.f32 %v1688_v4, %v1702_v30  ;;  %v1707_v19 = vmul.f32 %v1704_v39, %v1704_v39 }
 0xf57   :  { %v1700_v56 = vpop.xlane.xlu0 %1699 }
 0xf58   :  { %v1703_v25 = vmul.f32 0.03125, %v1700_v56  ;;  %v1708_v16 = vmul.f32 %v1705_v42, %v1705_v42  ;;  %v1710_v37 = vsel %vm393_vm14, %v1707_v19, 0.0  ;;  %v4464_v56 = vld [vmem:[%s5984_s5 + $0x18] sm:$0xff]  }
 0xf5a   :  { %v1706_v49 = vsub.f32 %v1689_v13, %v1703_v25  ;;  %v1713_v11 = vsel %vm393_vm14, %v1708_v16, 0.0  ;;  %v3683_v25 = vld [vmem:[%s5985_s6 + $0x5] ss:$0 sm:$0xff] }
 0xf5b   :  { %1714 = vadd.xlane.f32.xlu0 %v1713_v11 }
 0xf5c   :  { %v1709_v50 = vmul.f32 %v1706_v49, %v1706_v49 }
 0xf5e   :  { %v1716_v36 = vsel %vm1054_vm4, %v1709_v50, 0.0 }
 0xf5f   :  { %1717 = vadd.xlane.f32.xlu1 %v1716_v36 }
 0xf63   :  { %1711 = vadd.xlane.f32.xlu1 %v1710_v37 }
 0xf71   :  { %1752 = vrot.lane.b32.xlu0 %v5205_v38, %s4739_s23 }
 0xf74   :  { %1754 = vrot.lane.b32.xlu1 %v5239_v55, %s4739_s23 }
 0xfe8   :  { %v1715_v53 = vpop.xlane.xlu0 %1714 }
 0xfe9   :  { %v1720_v14 = vmul.f32 0.03125, %v1715_v53 }
 0xfeb   :  { %v1723_v2 = vadd.f32 1e-05, %v1720_v14 }
 0xfec   :  { %v1718_v40 = vpop.xlane.xlu1 %1717  ;;  %v1753_v38 = vpop.permute.xlu0 %1752 }
 0xfed   :  { %v1721_v59 = vmul.f32 0.03125, %v1718_v40  ;;  %4144 = vmatprep.subr.bf16.mxu0 %v1753_v38  ;;  %4553 = vrsqrt.f32 %v1723_v2  ;;  %v3686_v2 = vld [vmem:[%s5985_s6 + $0x6] ss:$0 sm:$0xff] }
 0xfee   :  { %4145 = vmatpush3.bf16.msra.mxu0 %v1753_v38 }
 0xfef   :  { %v1724_v55 = vadd.f32 1e-05, %v1721_v59 }
 0xff0   :  { %v1712_v35 = vpop.xlane.xlu1 %1711 }
 0xff1   :  { %4555 = vrsqrt.f32 %v1724_v55  ;;  %v1719_v63 = vmul.f32 0.03125, %v1712_v35 }
 0xff3   :  { %v1722_v32 = vadd.f32 1e-05, %v1719_v63 }
 0xff4   :  { %v1755_v26 = vpop.permute.xlu1 %1754 }
 0xff5   :  { %4557 = vrsqrt.f32 %v1722_v32  ;;  %4146 = vmatprep.subr.bf16.mxu0 %v1755_v26 }
 0xff6   :  { %4147 = vmatpush3.bf16.msra.mxu0 %v1755_v26 }
 0xff7   :  { %v4554_v44 = vpop.eup %4553 }
 0xff8   :  { %v1729_v18 = vmul.f32 %v4554_v44, %v1705_v42  ;;  %v4463_v42 = vld [vmem:[%s5984_s5 + $0x10] sm:$0xff]  }
 0xff9   :  { %4156 = vmatprep.subr.bf16.mxu1 %v4463_v42 }
 0xffa   :  { %v1736_v4 = vmul.f32 %v3681_v43, %v1729_v18  ;;  %4157 = vmatpush3.bf16.msra.mxu1 %v4463_v42 }
 0xffb   :  { %v4556_v41 = vpop.eup %4555  ;;  %4158 = vmatprep.subr.bf16.mxu1 %v4464_v56 }
 0xffc   :  { %v1730_v20 = vmul.f32 %v4556_v41, %v1706_v49  ;;  %v1743_v62 = vadd.f32 %v3682_v51, %v1736_v4 }
 0xffe   :  { %v1737_v45 = vmul.f32 %v3681_v43, %v1730_v20  ;;  %4159 = vmatpush3.bf16.msra.mxu1 %v4464_v56 }
 0xfff   :  { %v4558_v24 = vpop.eup %4557  ;;  %4196 = vmatprep.subr.bf16.mxu1 %v4734_v8 }
0x1000   :  { %v1728_v33 = vmul.f32 %v4558_v24, %v1704_v39  ;;  %v1744_v27 = vadd.f32 %v3682_v51, %v1737_v45 }
0x1002   :  { %v1735_v13 = vmul.f32 %v3681_v43, %v1728_v33  ;;  %v1746_v10 = vpack.c.bf16 %v1744_v27, %v1744_v27 }
0x1004   :  { %v1742_v15 = vadd.f32 %v3682_v51, %v1735_v13 }
0x1006   :  { %v1745_v30 = vpack.c.bf16 %v1743_v62, %v1742_v15 }
0x1008   :  { %4148 = vmatprep.mubr.msk.bf16.mxu0 %vm393_vm14, %v1745_v30 }
0x1009   :  { %4149 = vmatmul.mubr.msk.bf16.vlgmr.msra.gmra.mrb[64].mxu0 %vm393_vm14, %v1746_v10 }
0x10dc   :  { %v4150_v16 = vpop.f32.mrb[64].mxu0 }
0x10dd   :  { %v1807_v39 = vadd.f32 %v4150_v16, %v3683_v25  ;;  %v1798_v49 = vpop.f32.mrb[65].mxu0 }
0x10de   :  { %v1799_v11 = vadd.f32 %v3683_v25, %v1798_v49  ;;  %v4151_v50 = vpop.f32.mrb[66].mxu0  ;;  %v5500_v49 = vld [vmem:[%s5982_s3 + $0x30] ss:$8 sps:$4 sm:$0xff]  }
0x10df   :  { %v1801_v36 = vpop.f32.mrb[67].mxu0  ;;  %v1814_v37 = vmax.f32 %v1807_v39, 0.0  ;;  %v5495_v39 = vld [vmem:[%s5982_s3 + $0x20] ss:$8 sps:$4 sm:$0xff]  }
0x10e0   :  { %v1802_v19 = vadd.f32 %v3683_v25, %v1801_v36  ;;  %v1812_v52 = vmax.f32 %v1799_v11, 0.0  ;;  %4164 = vmatprep.subr.bf16.mxu0 %v5495_v39 }
0x10e1   :  { %v1816_v14 = vpack.c.bf16 %v1814_v37, %v1814_v37  ;;  %4165 = vmatpush3.bf16.msra.mxu0 %v5495_v39 }
0x10e2   :  { %v1813_v31 = vmax.f32 %v1802_v19, 0.0  ;;  %4166 = vmatprep.subr.bf16.mxu0 %v5500_v49 }
0x10e4   :  { %v1815_v53 = vpack.c.bf16 %v1813_v31, %v1812_v52 }
0x10e5   :  { %4167 = vmatpush3.bf16.msra.mxu0 %v5500_v49 }
0x10e6   :  { %4160 = vmatprep.mubr.msk.bf16.mxu1 %vm6002_vm3, %v1815_v53  ;;  %4172 = vmatprep.subr.bf16.mxu0 %v4734_v8 }
0x10e7   :  { %4161 = vmatmul.mubr.msk.bf16.vlgmr.msra.gmra.mrb[56].mxu1 %vm6002_vm3, %v1816_v14  ;;  %vm6003_vm3 = vcmp.eq.s32.totalorder %v5053_v46, %v5035_v34 }
0x10e8   :  { %4200 = vmatprep.mubr.msk.bf16.mxu1 %vm4735_vm2, %v4734_v8 }
0x11ba   :  { %v4162_v40 = vpop.f32.mrb[56].mxu1 }
0x11bb   :  { %v1895_v38 = vpop.f32.mrb[57].mxu1  ;;  %v1904_v63 = vadd.f32 %v4162_v40, %v3686_v2  ;;  %v3693_v40 = vld [vmem:[%s5985_s6 + $0xb] ss:$0 sm:$0xff] }
0x11bc   :  { %v1896_v59 = vadd.f32 %v3686_v2, %v1895_v38  ;;  %v4163_v55 = vpop.f32.mrb[58].mxu1 }
0x11bd   :  { %v1898_v35 = vpop.f32.mrb[59].mxu1  ;;  %v1911_v20 = vadd.f32 %v1904_v63, %v1744_v27  ;;  %v3694_v63 = vld [vmem:[%s5985_s6 + $0xc] ss:$0 sm:$0xff] }
0x11be   :  { %v1899_v32 = vadd.f32 %v3686_v2, %v1898_v35  ;;  %v1909_v26 = vadd.f32 %v1896_v59, %v1742_v15 }
0x11bf   :  { %v1920_v43 = vsel %vm1054_vm4, %v1911_v20, 0.0 }
0x11c0   :  { %v1914_v44 = vsel %vm393_vm14, %v1909_v26, 0.0  ;;  %v1910_v41 = vadd.f32 %v1899_v32, %v1743_v62 }
0x11c1   :  { %1915 = vadd.xlane.f32.xlu1 %v1914_v44 }
0x11c2   :  { %v1917_v18 = vsel %vm393_vm14, %v1910_v41, 0.0 }
0x11c3   :  { %1918 = vadd.xlane.f32.xlu0 %v1917_v18 }
0x11c7   :  { %1921 = vadd.xlane.f32.xlu0 %v1920_v43 }
0x124e   :  { %v1916_v24 = vpop.xlane.xlu1 %1915 }
0x124f   :  { %v1923_v45 = vmul.f32 0.03125, %v1916_v24 }
0x1250   :  { %v1919_v33 = vpop.xlane.xlu0 %1918 }
0x1251   :  { %v1926_v4 = vsub.f32 %v1909_v26, %v1923_v45  ;;  %v1924_v51 = vmul.f32 0.03125, %v1919_v33  ;;  %v3700_v33 = vld [vmem:[%s5985_s6 + $0x10] ss:$0 sm:$0xff] }
0x1253   :  { %v1927_v13 = vsub.f32 %v1910_v41, %v1924_v51  ;;  %v1929_v30 = vmul.f32 %v1926_v4, %v1926_v4 }
0x1254   :  { %v1922_v10 = vpop.xlane.xlu0 %1921 }
0x1255   :  { %v1925_v15 = vmul.f32 0.03125, %v1922_v10  ;;  %v1932_v42 = vsel %vm393_vm14, %v1929_v30, 0.0  ;;  %v1930_v62 = vmul.f32 %v1927_v13, %v1927_v13 }
0x1256   :  { %1933 = vadd.xlane.f32.xlu1 %v1932_v42 }
0x1257   :  { %v1928_v56 = vsub.f32 %v1911_v20, %v1925_v15  ;;  %v1935_v27 = vsel %vm393_vm14, %v1930_v62, 0.0 }
0x1258   :  { %1936 = vadd.xlane.f32.xlu0 %v1935_v27 }
0x1259   :  { %v1931_v25 = vmul.f32 %v1928_v56, %v1928_v56 }
0x125b   :  { %v1938_v16 = vsel %vm1054_vm4, %v1931_v25, 0.0 }
0x125c   :  { %1939 = vadd.xlane.f32.xlu1 %v1938_v16 }
0x12e3   :  { %v1934_v11 = vpop.xlane.xlu1 %1933 }
0x12e4   :  { %v1941_v50 = vmul.f32 0.03125, %v1934_v11 }
0x12e5   :  { %v1937_v36 = vpop.xlane.xlu0 %1936 }
0x12e6   :  { %v1944_v19 = vadd.f32 1e-05, %v1941_v50  ;;  %v1942_v37 = vmul.f32 0.03125, %v1937_v36 }
0x12e8   :  { %4559 = vrsqrt.f32 %v1944_v19  ;;  %v1945_v52 = vadd.f32 1e-05, %v1942_v37 }
0x12e9   :  { %v1940_v31 = vpop.xlane.xlu1 %1939 }
0x12ea   :  { %4561 = vrsqrt.f32 %v1945_v52  ;;  %v1943_v53 = vmul.f32 0.03125, %v1940_v31 }
0x12ec   :  { %v1946_v14 = vadd.f32 1e-05, %v1943_v53 }
0x12ee   :  { %4563 = vrsqrt.f32 %v1946_v14 }
0x12f2   :  { %v4560_v2 = vpop.eup %4559 }
0x12f3   :  { %v1950_v38 = vmul.f32 %v4560_v2, %v1926_v4 }
0x12f4   :  { %v4562_v59 = vpop.eup %4561 }
0x12f5   :  { %v1951_v55 = vmul.f32 %v4562_v59, %v1927_v13  ;;  %v1957_v35 = vmul.f32 %v3693_v40, %v1950_v38 }
0x12f7   :  { %v1958_v32 = vmul.f32 %v3693_v40, %v1951_v55  ;;  %v5513_v41 = vadd.f32 %v3694_v63, %v1957_v35 }
0x12f8   :  { %v4564_v26 = vpop.eup %4563 }
0x12f9   :  { %v1952_v44 = vmul.f32 %v4564_v26, %v1928_v56  ;;  %v5515_v18 = vadd.f32 %v3694_v63, %v1958_v32 }
0x12fb   :  { %v1972_v20 = vpack.c.bf16 %v5515_v18, %v5513_v41  ;;  %v1959_v43 = vmul.f32 %v3693_v40, %v1952_v44 }
0x12fd   :  { %4168 = vmatprep.mubr.msk.bf16.mxu0 %vm393_vm14, %v1972_v20  ;;  %v5520_v24 = vadd.f32 %v3694_v63, %v1959_v43 }
0x12ff   :  { %v1973_v45 = vpack.c.bf16 %v5520_v24, %v5520_v24 }
0x1301   :  { %4169 = vmatmul.mubr.msk.bf16.vlgmr.msra.gmra.mrb[68].mxu0 %vm393_vm14, %v1973_v45 }
0x1302   :  { %4176 = vmatprep.mubr.msk.bf16.mxu0 %vm4735_vm2, %v4734_v8 }
0x13d4   :  { %v4170_v4 = vpop.f32.mrb[68].mxu0 }
0x13d5   :  { %v2041_v51 = vadd.f32 %v4170_v4, %v3700_v33  ;;  %v2032_v13 = vpop.f32.mrb[69].mxu0 }
0x13d6   :  { %v2033_v30 = vadd.f32 %v3700_v33, %v2032_v13  ;;  %v4171_v10 = vpop.f32.mrb[70].mxu0 }
0x13d7   :  { %v2035_v15 = vpop.f32.mrb[71].mxu0  ;;  %v5530_v42 = vpack.c.bf16 %v2041_v51, %v2041_v51  ;;  %v2052_v56 = vrot.slane %v2041_v51, 6  ;;  %v2060_v25 = vrot.slane %v2041_v51, 4  ;;  %v2068_v31 = vrot.slane %v2041_v51, 2 }
0x13d8   :  { %v2049_v62 = vrot.slane %v2033_v30, 6  ;;  %v2036_v27 = vadd.f32 %v3700_v33, %v2035_v15  ;;  %v2057_v16 = vrot.slane %v2033_v30, 4  ;;  %v2076_v11 = vmul.f32 %v4934_v60, %v2033_v30 }
0x13d9   :  { %2096 = vrot.lane.b32.xlu1 %v5530_v42, %s4736_s20  ;;  %v2065_v53 = vrot.slane %v2033_v30, 2 }
0x13da   :  { %v2073_v50 = vsel %vm66_vm1, %v2041_v51, %v2049_v62  ;;  %v2050_v36 = vrot.slane %v2036_v27, 6  ;;  %v2058_v19 = vrot.slane %v2036_v27, 4  ;;  %v2066_v37 = vrot.slane %v2036_v27, 2 }
0x13db   :  { %v2077_v52 = vmul.f32 %v4934_v60, %v2036_v27  ;;  %v5537_v14 = vpack.c.bf16 %v2036_v27, %v2033_v30  ;;  %v2078_v2 = vmul.f32 %v4997_v9, %v2073_v50 }
0x13dc   :  { %v2051_v38 = vsel %vm66_vm1, %v2049_v62, %v2050_v36  ;;  %v2053_v59 = vsel %vm66_vm1, %v2050_v36, %v2052_v56  ;;  %v2059_v55 = vsel %vm70_vm7, %v2057_v16, %v2058_v19  ;;  %v2061_v26 = vsel %vm70_vm7, %v2058_v19, %v2060_v25 }
0x13dd   :  { %v2085_v40 = vpack.c.bf16 %v2077_v52, %v2076_v11  ;;  %2094 = vrot.lane.b32.xlu0 %v5537_v14, %s4736_s20  ;;  %v2079_v35 = vmul.f32 %v4990_v0, %v2051_v38  ;;  %v2074_v63 = vsel %vm70_vm7, %v2053_v59, %v2057_v16  ;;  %v2081_v32 = vmul.f32 %v4979_v57, %v2059_v55 }
0x13de   :  { %v2080_v44 = vmul.f32 %v4983_v58, %v2074_v63  ;;  %v2067_v20 = vsel %vm74_vm8, %v2065_v53, %v2066_v37  ;;  %v2075_v43 = vsel %vm74_vm8, %v2061_v26, %v2065_v53  ;;  %v2069_v45 = vsel %vm74_vm8, %v2066_v37, %v2068_v31 }
0x13df   :  { %v2086_v33 = vpack.c.bf16 %v2079_v35, %v2078_v2  ;;  %v2082_v4 = vmul.f32 %v5007_v17, %v2075_v43  ;;  %v2083_v51 = vmul.f32 %v5003_v12, %v2067_v20  ;;  %v2084_v27 = vmul.f32 %v5003_v12, %v2069_v45 }
0x13e0   :  { %v2087_v13 = vpack.c.bf16 %v2081_v32, %v2080_v44 }
0x13e1   :  { %v2088_v30 = vpack.c.bf16 %v2083_v51, %v2082_v4  ;;  %v2089_v25 = vpack.c.bf16 %v2084_v27, %v2084_v27 }
0x144b   :  { %v2097_v62 = vpop.permute.xlu1 %2096 }
0x144c   :  { %v2117_v56 = vsel %vm393_vm14, %v2097_v62, 0 }
0x144f   :  { %v2095_v10 = vpop.permute.xlu0 %2094 }
0x1450   :  { %v2114_v15 = vsel %vm393_vm14, %v2095_v10, 0 }
0x1451   :  { %4173 = vmatpush3.bf16.xpose.msra.mxu0 %v2114_v15 }
0x1452   :  { %4174 = vmatprep.subr.bf16.mxu0 %v4734_v8 }
0x1459   :  { %4175 = vmatpush3.bf16.xpose.msra.mxu0 %v2117_v56 }
0x1460   :  { %4177 = vmatmul.mubr.msk.bf16.vlgmr.msra.gmra.mrb[72].mxu0 %vm393_vm14, %v2085_v40 }
0x1461   :  { %4180 = vmatprep.mubr.msk.bf16.mxu0 %vm4735_vm2, %v4734_v8 }
0x1468   :  { %4181 = vmatmul.mubr.msk.bf16.gmra.mrb[76].mxu0 %vm393_vm14, %v2086_v33 }
0x1469   :  { %4184 = vmatprep.mubr.msk.bf16.mxu0 %vm4735_vm2, %v4734_v8 }
0x1470   :  { %4185 = vmatmul.mubr.msk.bf16.gmra.mrb[80].mxu0 %vm393_vm14, %v2087_v13 }
0x1471   :  { %4188 = vmatprep.mubr.msk.bf16.mxu0 %vm4735_vm2, %v4734_v8 }
0x1478   :  { %4189 = vmatmul.mubr.msk.bf16.gmra.mrb[84].mxu0 %vm393_vm14, %v2088_v30 }
0x1479   :  { %4192 = vmatprep.mubr.msk.bf16.mxu0 %vm4735_vm2, %v4734_v8 }
0x1480   :  { %4193 = vmatmul.mubr.msk.bf16.gmra.mrb[88].mxu0 %vm393_vm14, %v2089_v25 }
0x1533   :  { %v2153_v16 = vpop.f32.mrb[72].mxu0 }
0x1534   :  { %v2191_v11 = vmul.f32 0.35355338, %v2153_v16  ;;  %v4178_v50 = vpop.f32.mrb[73].mxu0 }
0x1535   :  { %v2156_v36 = vpop.f32.mrb[74].mxu0 }
0x1536   :  { %v2192_v19 = vmul.f32 0.35355338, %v2156_v36  ;;  %v4179_v37 = vpop.f32.mrb[75].mxu0  ;;  %v2200_v52 = vsel %vm3622_vm5, %v2191_v11, -1e+30  ;;  %vm6004_vm5 = vcmp.eq.s32.totalorder %v5055_v48, %v5035_v34 }
0x1537   :  { %v2209_v31 = vsel %vm115_vm9, %v2200_v52, -inf }
0x1538   :  { %2210 = vmax.xlane.f32.xlu1 %v2209_v31  ;;  %v2201_v53 = vsel %vm210_vm10, %v2192_v19, -1e+30  ;;  %vm6005_vm10 = vcmp.eq.s32.totalorder %v5069_v61, %v5035_v34 }
0x1539   :  { %v2212_v2 = vsel %vm115_vm9, %v2201_v53, -inf }
0x153a   :  { %2213 = vmax.xlane.f32.xlu0 %v2212_v2 }
0x153b   :  { %v2161_v40 = vpop.f32.mrb[76].mxu0 }
0x153c   :  { %v2193_v38 = vmul.f32 0.35355338, %v2161_v40  ;;  %v4182_v59 = vpop.f32.mrb[77].mxu0 }
0x153d   :  { %v2164_v55 = vpop.f32.mrb[78].mxu0 }
0x153e   :  { %v2194_v35 = vmul.f32 0.35355338, %v2164_v55  ;;  %v4183_v63 = vpop.f32.mrb[79].mxu0  ;;  %v2202_v32 = vsel %vm6003_vm3, %v2193_v38, -1e+30  ;;  %vm6006_vm3 = vcmp.eq.s32.totalorder %v5071_v5, %v5035_v34 }
0x153f   :  { %v2215_v26 = vsel %vm115_vm9, %v2202_v32, -inf }
0x1540   :  { %2216 = vmax.xlane.f32.xlu0 %v2215_v26  ;;  %v2203_v44 = vsel %vm6004_vm5, %v2194_v35, -1e+30  ;;  %vm6007_vm5 = vcmp.eq.s32.totalorder %v5085_v21, %v5035_v34 }
0x1541   :  { %v2218_v20 = vsel %vm115_vm9, %v2203_v44, -inf }
0x1542   :  { %2219 = vmax.xlane.f32.xlu1 %v2218_v20 }
0x1543   :  { %v2169_v43 = vpop.f32.mrb[80].mxu0 }
0x1544   :  { %v2195_v45 = vmul.f32 0.35355338, %v2169_v43  ;;  %v4186_v33 = vpop.f32.mrb[81].mxu0 }
0x1545   :  { %v2172_v4 = vpop.f32.mrb[82].mxu0 }
0x1546   :  { %v2196_v51 = vmul.f32 0.35355338, %v2172_v4  ;;  %v4187_v13 = vpop.f32.mrb[83].mxu0  ;;  %v2204_v30 = vsel %vm6005_vm10, %v2195_v45, -1e+30  ;;  %vm6008_vm10 = vcmp.eq.s32.totalorder %v5087_v28, %v5035_v34 }
0x1547   :  { %v2221_v10 = vsel %vm115_vm9, %v2204_v30, -inf }
0x1548   :  { %2222 = vmax.xlane.f32.xlu0 %v2221_v10  ;;  %v2205_v15 = vsel %vm6006_vm3, %v2196_v51, -1e+30  ;;  %vm6009_vm3 = vcmp.eq.s32.totalorder %v5101_v1, %v5035_v34 }
0x1549   :  { %v2224_v62 = vsel %vm115_vm9, %v2205_v15, -inf }
0x154a   :  { %2225 = vmax.xlane.f32.xlu1 %v2224_v62 }
0x154b   :  { %v2177_v56 = vpop.f32.mrb[84].mxu0 }
0x154c   :  { %v2197_v27 = vmul.f32 0.35355338, %v2177_v56  ;;  %v4190_v25 = vpop.f32.mrb[85].mxu0 }
0x154d   :  { %v2180_v16 = vpop.f32.mrb[86].mxu0 }
0x154e   :  { %v2198_v11 = vmul.f32 0.35355338, %v2180_v16  ;;  %v4191_v50 = vpop.f32.mrb[87].mxu0  ;;  %v2206_v36 = vsel %vm6007_vm5, %v2197_v27, -1e+30  ;;  %vm6010_vm5 = vcmask 1040384  }
0x154f   :  { %v2227_v19 = vsel %vm115_vm9, %v2206_v36, -inf }
0x1550   :  { %2228 = vmax.xlane.f32.xlu0 %v2227_v19  ;;  %v2207_v37 = vsel %vm6008_vm10, %v2198_v11, -1e+30 }
0x1551   :  { %v2230_v31 = vsel %vm115_vm9, %v2207_v37, -inf }
0x1552   :  { %2231 = vmax.xlane.f32.xlu1 %v2230_v31 }
0x1553   :  { %v2185_v2 = vpop.f32.mrb[88].mxu0 }
0x1554   :  { %v2199_v40 = vmul.f32 0.35355338, %v2185_v2  ;;  %v4194_v38 = vpop.f32.mrb[89].mxu0 }
0x1555   :  { %v2188_v59 = vpop.f32.mrb[90].mxu0 }
0x1556   :  { %v5606_v55 = vsel %vm6009_vm3, %v2199_v40, -1e+30  ;;  %v4195_v35 = vpop.f32.mrb[91].mxu0 }
0x1557   :  { %v2233_v63 = vsel %vm115_vm9, %v5606_v55, -inf }
0x1558   :  { %2234 = vmax.xlane.f32.xlu0 %v2233_v63 }
0x15c5   :  { %v2211_v26 = vpop.xlane.xlu1 %2210 }
0x15c6   :  { %v2236_v20 = vsub.f32 %v2200_v52, %v2211_v26 }
0x15c7   :  { %v2214_v43 = vpop.xlane.xlu0 %2213 }
0x15c8   :  { %v2245_v45 = vmul.f32 1.442695, %v2236_v20  ;;  %v2237_v33 = vsub.f32 %v2201_v53, %v2214_v43 }
0x15ca   :  { %4565 = vpow2.f32 %v2245_v45  ;;  %v2247_v4 = vmul.f32 1.442695, %v2237_v33 }
0x15cc   :  { %4567 = vpow2.f32 %v2247_v4 }
0x15cd   :  { %v2217_v51 = vpop.xlane.xlu0 %2216 }
0x15ce   :  { %v2238_v13 = vsub.f32 %v2202_v32, %v2217_v51 }
0x15cf   :  { %v2220_v10 = vpop.xlane.xlu1 %2219 }
0x15d0   :  { %v2249_v62 = vmul.f32 1.442695, %v2238_v13  ;;  %v2239_v34 = vsub.f32 %v2203_v44, %v2220_v10 }
0x15d2   :  { %4569 = vpow2.f32 %v2249_v62  ;;  %v2251_v56 = vmul.f32 1.442695, %v2239_v34 }
0x15d4   :  { %v5610_v27 = vpop.eup %4565  ;;  %4571 = vpow2.f32 %v2251_v56 }
0x15d5   :  { %v2223_v25 = vpop.xlane.xlu0 %2222  ;;  %v2263_v52 = vsel %vm115_vm9, %v5610_v27, 0.0 }
0x15d6   :  { %v5614_v16 = vpop.eup %4567  ;;  %v2240_v53 = vsub.f32 %v2204_v30, %v2223_v25  ;;  %2264 = vadd.xlane.f32.xlu1 %v2263_v52 }
0x15d7   :  { %v2226_v11 = vpop.xlane.xlu1 %2225  ;;  %v2266_v32 = vsel %vm115_vm9, %v5614_v16, 0.0 }
0x15d8   :  { %v2253_v50 = vmul.f32 1.442695, %v2240_v53  ;;  %v2241_v19 = vsub.f32 %v2205_v15, %v2226_v11  ;;  %2267 = vadd.xlane.f32.xlu0 %v2266_v32 }
0x15da   :  { %4573 = vpow2.f32 %v2253_v50  ;;  %v2255_v44 = vmul.f32 1.442695, %v2241_v19 }
0x15dc   :  { %v5618_v31 = vpop.eup %4569  ;;  %4575 = vpow2.f32 %v2255_v44 }
0x15dd   :  { %v2229_v2 = vpop.xlane.xlu0 %2228  ;;  %v2269_v40 = vsel %vm115_vm9, %v5618_v31, 0.0 }
0x15de   :  { %v5622_v38 = vpop.eup %4571  ;;  %v2242_v30 = vsub.f32 %v2206_v36, %v2229_v2  ;;  %2270 = vadd.xlane.f32.xlu1 %v2269_v40 }
0x15df   :  { %v2232_v59 = vpop.xlane.xlu1 %2231  ;;  %v2272_v35 = vsel %vm115_vm9, %v5622_v38, 0.0 }
0x15e0   :  { %v2257_v63 = vmul.f32 1.442695, %v2242_v30  ;;  %v2243_v15 = vsub.f32 %v2207_v37, %v2232_v59  ;;  %2273 = vadd.xlane.f32.xlu0 %v2272_v35 }
0x15e2   :  { %4577 = vpow2.f32 %v2257_v63  ;;  %v2259_v26 = vmul.f32 1.442695, %v2243_v15 }
0x15e4   :  { %v5626_v20 = vpop.eup %4573  ;;  %4579 = vpow2.f32 %v2259_v26 }
0x15e5   :  { %v2275_v43 = vsel %vm115_vm9, %v5626_v20, 0.0  ;;  %v2235_v13 = vpop.xlane.xlu0 %2234 }
0x15e6   :  { %v4576_v45 = vpop.eup %4575  ;;  %2276 = vadd.xlane.f32.xlu1 %v2275_v43  ;;  %v2244_v10 = vsub.f32 %v5606_v55, %v2235_v13 }
0x15e7   :  { %v2278_v36 = vsel %vm115_vm9, %v4576_v45, 0.0 }
0x15e8   :  { %2279 = vadd.xlane.f32.xlu0 %v2278_v36  ;;  %v2261_v62 = vmul.f32 1.442695, %v2244_v10 }
0x15ea   :  { %4581 = vpow2.f32 %v2261_v62 }
0x15ec   :  { %v5631_v33 = vpop.eup %4577 }
0x15ed   :  { %v2281_v4 = vsel %vm115_vm9, %v5631_v33, 0.0 }
0x15ee   :  { %v4580_v37 = vpop.eup %4579  ;;  %2282 = vadd.xlane.f32.xlu0 %v2281_v4 }
0x15ef   :  { %v2284_v51 = vsel %vm115_vm9, %v4580_v37, 0.0 }
0x15f2   :  { %2285 = vadd.xlane.f32.xlu0 %v2284_v51 }
0x15f4   :  { %v4582_v34 = vpop.eup %4581 }
0x15f5   :  { %v2287_v56 = vsel %vm115_vm9, %v4582_v34, 0.0 }
0x15f7   :  { %2313 = vrot.lane.b32.xlu1 %v5537_v14, %s4739_s23 }
0x1608   :  { %2315 = vrot.lane.b32.xlu0 %v5530_v42, %s4739_s23 }
0x160c   :  { %2504 = vrot.lane.b32.xlu0 %v5495_v39, %s4744_s28 }
0x1610   :  { %2506 = vrot.lane.b32.xlu0 %v5500_v49, %s4744_s28 }
0x161b   :  { %2288 = vadd.xlane.f32.xlu1 %v2287_v56 }
0x1663   :  { %v2265_v25 = vpop.xlane.xlu1 %2264 }
0x1665   :  { %v2268_v14 = vpop.xlane.xlu0 %2267 }
0x1666   :  { %4583 = vrcp.f32 %v2268_v14 }
0x1667   :  { %4585 = vrcp.f32 %v2265_v25 }
0x166b   :  { %v2271_v52 = vpop.xlane.xlu1 %2270 }
0x166d   :  { %v2274_v53 = vpop.xlane.xlu0 %2273 }
0x166e   :  { %4587 = vrcp.f32 %v2274_v53 }
0x166f   :  { %4589 = vrcp.f32 %v2271_v52 }
0x1670   :  { %v4584_v32 = vpop.eup %4583 }
0x1671   :  { %v4586_v50 = vpop.eup %4585  ;;  %v2300_v19 = vmul.f32 %v4584_v32, %v5614_v16 }
0x1672   :  { %v2299_v2 = vmul.f32 %v4586_v50, %v5610_v27 }
0x1673   :  { %v2277_v55 = vpop.xlane.xlu1 %2276 }
0x1674   :  { %v2308_v30 = vpack.c.bf16 %v2300_v19, %v2299_v2 }
0x1675   :  { %v2280_v42 = vpop.xlane.xlu0 %2279 }
0x1676   :  { %4591 = vrcp.f32 %v2280_v42 }
0x1677   :  { %v2314_v11 = vpop.permute.xlu1 %2313  ;;  %4593 = vrcp.f32 %v2277_v55 }
0x1678   :  { %4197 = vmatpush3.bf16.msra.mxu1 %v2314_v11  ;;  %v4588_v59 = vpop.eup %4587 }
0x1679   :  { %4198 = vmatprep.subr.bf16.mxu1 %v4734_v8  ;;  %v4590_v35 = vpop.eup %4589  ;;  %v2302_v16 = vmul.f32 %v4588_v59, %v5622_v38 }
0x167a   :  { %v2301_v63 = vmul.f32 %v4590_v35, %v5618_v31 }
0x167b   :  { %v2283_v39 = vpop.xlane.xlu0 %2282 }
0x167c   :  { %v2309_v27 = vpack.c.bf16 %v2302_v16, %v2301_v63 }
0x167f   :  { %v2286_v49 = vpop.xlane.xlu0 %2285 }
0x1680   :  { %4595 = vrcp.f32 %v2286_v49  ;;  %v4592_v15 = vpop.eup %4591 }
0x1681   :  { %4597 = vrcp.f32 %v2283_v39  ;;  %v4594_v26 = vpop.eup %4593  ;;  %v2304_v43 = vmul.f32 %v4592_v15, %v4576_v45 }
0x1682   :  { %v2303_v36 = vmul.f32 %v4594_v26, %v5626_v20 }
0x1683   :  { %v2316_v44 = vpop.permute.xlu0 %2315 }
0x1684   :  { %v2334_v40 = vsel %vm6010_vm5, %v2316_v44, 0  ;;  %v2310_v4 = vpack.c.bf16 %v2304_v43, %v2303_v36 }
0x1685   :  { %4199 = vmatpush3.bf16.msra.mxu1 %v2334_v40 }
0x1686   :  { %4397 = vmatprep.subr.bf16.mxu1 %v4743_v6 }
0x1687   :  { %v2505_v25 = vpop.permute.xlu0 %2504 }
0x1688   :  { %4201 = vmatmul.mubr.msk.bf16.vlgmr.msra.gmra.mrb[60].mxu1 %vm115_vm9, %v2308_v30  ;;  %4247 = vmatprep.subr.bf16.mxu0 %v2505_v25 }
0x1689   :  { %4204 = vmatprep.mubr.msk.bf16.mxu1 %vm4735_vm2, %v4734_v8  ;;  %4248 = vmatpush3.bf16.msra.mxu0 %v2505_v25 }
0x168a   :  { %v4596_v51 = vpop.eup %4595 }
0x168b   :  { %v4598_v38 = vpop.eup %4597  ;;  %v2306_v31 = vmul.f32 %v4596_v51, %v4580_v37 }
0x168c   :  { %v2305_v13 = vmul.f32 %v4598_v38, %v5631_v33  ;;  %v2507_v33 = vpop.permute.xlu0 %2506  ;;  %v5686_v38 = vld [vmem:[%s5982_s3 + $0x24] ss:$8 sps:$4 sm:$0xff]  }
0x168d   :  { %4249 = vmatprep.subr.bf16.mxu0 %v2507_v33 }
0x168e   :  { %v2311_v10 = vpack.c.bf16 %v2306_v31, %v2305_v13  ;;  %4250 = vmatpush3.bf16.msra.mxu0 %v2507_v33 }
0x168f   :  { %4263 = vmatprep.subr.bf16.mxu0 %v4734_v8 }
0x1690   :  { %4205 = vmatmul.mubr.msk.bf16.gmra.mrb[64].mxu1 %vm115_vm9, %v2309_v27 }
0x1691   :  { %4208 = vmatprep.mubr.msk.bf16.mxu1 %vm4735_vm2, %v4734_v8 }
0x1698   :  { %4209 = vmatmul.mubr.msk.bf16.gmra.mrb[68].mxu1 %vm115_vm9, %v2310_v4 }
0x1699   :  { %4212 = vmatprep.mubr.msk.bf16.mxu1 %vm4735_vm2, %v4734_v8 }
0x16a0   :  { %4213 = vmatmul.mubr.msk.bf16.gmra.mrb[72].mxu1 %vm115_vm9, %v2311_v10 }
0x16a1   :  { %4216 = vmatprep.mubr.msk.bf16.mxu1 %vm4735_vm2, %v4734_v8 }
0x16a8   :  { %v2289_v45 = vpop.xlane.xlu1 %2288 }
0x16a9   :  { %4599 = vrcp.f32 %v2289_v45  ;;  %v5692_v45 = vld [vmem:[%s5982_s3 + $0x34] ss:$8 sps:$4 sm:$0xff]  }
0x16b3   :  { %v4600_v20 = vpop.eup %4599 }
0x16b4   :  { %v2307_v62 = vmul.f32 %v4600_v20, %v4582_v34 }
0x16b6   :  { %v2312_v56 = vpack.c.bf16 %v2307_v62, %v2307_v62 }
0x16b8   :  { %4217 = vmatmul.mubr.msk.bf16.gmra.mrb[76].mxu1 %vm115_vm9, %v2312_v56  ;;  %vm6013_vm9 = vcmp.eq.s32.totalorder %v5071_v5, %v5323_v54 }
0x16b9   :  { %4238 = vmatprep.mubr.msk.f32.mxu1 %vm4735_vm2, %v4734_v8 }
0x175b   :  { %v2370_v37 = vpop.f32.mrb[60].mxu1 }
0x175c   :  { %v4202_v14 = vpop.f32.mrb[61].mxu1  ;;  %v2408_v53 = vmul.f32 %v4934_v60, %v2370_v37 }
0x175d   :  { %v2373_v52 = vpop.f32.mrb[62].mxu1 }
0x175e   :  { %v2409_v34 = vmul.f32 %v4934_v60, %v2373_v52  ;;  %v4203_v55 = vpop.f32.mrb[63].mxu1 }
0x175f   :  { %v3719_v55 = vld [vmem:[%s5985_s6 + $0x11] ss:$0 sm:$0xff] }
0x1760   :  { %v4398_v42 = vpack.c.bf16 %v2409_v34, %v2408_v53 }
0x1762   :  { %4399 = vmatpush3.bf16.msra.mxu1 %v4398_v42 }
0x1763   :  { %v2378_v11 = vpop.f32.mrb[64].mxu1  ;;  %4400 = vmatprep.subr.bf16.mxu1 %v4743_v6 }
0x1764   :  { %v4206_v39 = vpop.f32.mrb[65].mxu1  ;;  %v2410_v49 = vmul.f32 %v4997_v9, %v2378_v11 }
0x1765   :  { %v2381_v32 = vpop.f32.mrb[66].mxu1 }
0x1766   :  { %v2411_v50 = vmul.f32 %v4990_v0, %v2381_v32  ;;  %v4207_v19 = vpop.f32.mrb[67].mxu1 }
0x1768   :  { %v4401_v44 = vpack.c.bf16 %v2411_v50, %v2410_v49 }
0x176a   :  { %4402 = vmatpush3.bf16.msra.mxu1 %v4401_v44 }
0x176b   :  { %v2386_v2 = vpop.f32.mrb[68].mxu1  ;;  %4403 = vmatprep.subr.bf16.mxu1 %v4743_v6 }
0x176c   :  { %v4210_v40 = vpop.f32.mrb[69].mxu1  ;;  %v2412_v59 = vmul.f32 %v4983_v58, %v2386_v2 }
0x176d   :  { %v2389_v30 = vpop.f32.mrb[70].mxu1 }
0x176e   :  { %v2413_v35 = vmul.f32 %v4979_v57, %v2389_v30  ;;  %v4211_v16 = vpop.f32.mrb[71].mxu1 }
0x176f   :  { %v3733_v16 = vld [vmem:[%s5985_s6 + $0x13] ss:$0 sm:$0xff] }
0x1770   :  { %v4404_v63 = vpack.c.bf16 %v2413_v35, %v2412_v59 }
0x1772   :  { %4405 = vmatpush3.bf16.msra.mxu1 %v4404_v63 }
0x1773   :  { %v2394_v27 = vpop.f32.mrb[72].mxu1  ;;  %4406 = vmatprep.subr.bf16.mxu1 %v4743_v6 }
0x1774   :  { %v4214_v15 = vpop.f32.mrb[73].mxu1  ;;  %v2414_v43 = vmul.f32 %v5007_v17, %v2394_v27 }
0x1775   :  { %v2397_v26 = vpop.f32.mrb[74].mxu1 }
0x1776   :  { %v2415_v36 = vmul.f32 %v5003_v12, %v2397_v26  ;;  %v4215_v4 = vpop.f32.mrb[75].mxu1 }
0x1778   :  { %v4407_v51 = vpack.c.bf16 %v2415_v36, %v2414_v43 }
0x177a   :  { %4408 = vmatpush3.bf16.msra.mxu1 %v4407_v51 }
0x177b   :  { %4236 = vmatprep.subr.mxu1 %v4734_v8 }
0x178b   :  { %v2402_v31 = vpop.f32.mrb[76].mxu1 }
0x178c   :  { %v2416_v13 = vmul.f32 %v5003_v12, %v2402_v31  ;;  %v4218_v10 = vpop.f32.mrb[77].mxu1 }
0x178d   :  { %v2405_v20 = vpop.f32.mrb[78].mxu1 }
0x178e   :  { %v4219_v62 = vpop.f32.mrb[79].mxu1  ;;  %4237 = vmatpush3.msra.mxu1 %v2416_v13 }
0x178f   :  { %4239 = vmatmul.mubr.msk.f32.vlgmr.msra.gmra.mrb[80].mxu1 %vm886_vm13, %v5208_v7  ;;  %4255 = vmatprep.subr.bf16.mxu1 %v5686_v38 }
0x1790   :  { %4241 = vmatprep.mubr.msk.f32.mxu1 %vm4735_vm2, %v4734_v8  ;;  %4256 = vmatpush3.bf16.msra.mxu1 %v5686_v38 }
0x1791   :  { %4257 = vmatprep.subr.bf16.mxu1 %v5692_v45 }
0x1793   :  { %4242 = vmatmul.mubr.msk.f32.gmra.mrb[82].mxu1 %vm886_vm13, %v5218_v47 }
0x1794   :  { %4244 = vmatprep.mubr.msk.f32.mxu1 %vm4735_vm2, %v4734_v8  ;;  %4258 = vmatpush3.bf16.msra.mxu1 %v5692_v45 }
0x1795   :  { %4285 = vmatprep.subr.bf16.mxu1 %v4734_v8 }
0x1797   :  { %4245 = vmatmul.mubr.msk.f32.gmra.mrb[84].mxu1 %vm886_vm13, %v5228_v3 }
0x1862   :  { %v2483_v56 = vpop.f32.mrb[80].mxu1 }
0x1863   :  { %v4240_v25 = vpop.f32.mrb[81].mxu1 }
0x1866   :  { %v2488_v33 = vpop.f32.mrb[82].mxu1 }
0x1867   :  { %v2497_v37 = vpack.c.bf16 %v2488_v33, %v2483_v56  ;;  %v4243_v14 = vpop.f32.mrb[83].mxu1 }
0x1869   :  { %4251 = vmatprep.mubr.msk.bf16.mxu0 %vm393_vm14, %v2497_v37 }
0x186a   :  { %v2493_v52 = vpop.f32.mrb[84].mxu1 }
0x186b   :  { %v2498_v53 = vpack.c.bf16 %v2493_v52, %v2493_v52  ;;  %v4246_v34 = vpop.f32.mrb[85].mxu1 }
0x186d   :  { %4252 = vmatmul.mubr.msk.bf16.vlgmr.msra.gmra.mrb[92].mxu0 %vm393_vm14, %v2498_v53 }
0x186e   :  { %4265 = vmatprep.mubr.msk.bf16.mxu0 %vm4735_vm2, %v4734_v8 }
0x1940   :  { %v4253_v42 = vpop.f32.mrb[92].mxu0 }
0x1941   :  { %v2550_v11 = vpop.f32.mrb[93].mxu0  ;;  %v2559_v50 = vadd.f32 %v4253_v42, %v3719_v55 }
0x1942   :  { %v2551_v39 = vadd.f32 %v3719_v55, %v2550_v11  ;;  %v4254_v32 = vpop.f32.mrb[94].mxu0 }
0x1943   :  { %v2553_v49 = vpop.f32.mrb[95].mxu0  ;;  %v2566_v30 = vadd.f32 %v2559_v50, %v5520_v24  ;;  %v3724_v50 = vld [vmem:[%s5985_s6 + $0x17] ss:$0 sm:$0xff] }
0x1944   :  { %v2564_v19 = vadd.f32 %v2551_v39, %v5513_v41  ;;  %v2554_v44 = vadd.f32 %v3719_v55, %v2553_v49 }
0x1945   :  { %v2575_v35 = vsel %vm1054_vm4, %v2566_v30, 0.0 }
0x1946   :  { %v2565_v2 = vadd.f32 %v2554_v44, %v5515_v18  ;;  %v2569_v40 = vsel %vm393_vm14, %v2564_v19, 0.0 }
0x1947   :  { %2570 = vadd.xlane.f32.xlu0 %v2569_v40  ;;  %v3725_v40 = vld [vmem:[%s5985_s6 + $0x18] ss:$0 sm:$0xff] }
0x1948   :  { %v2572_v59 = vsel %vm393_vm14, %v2565_v2, 0.0 }
0x1949   :  { %2573 = vadd.xlane.f32.xlu1 %v2572_v59 }
0x194d   :  { %2576 = vadd.xlane.f32.xlu1 %v2575_v35 }
0x195d   :  { %2697 = vrot.lane.b32.xlu0 %v3733_v16, %s4739_s23 }
0x19d4   :  { %v2571_v41 = vpop.xlane.xlu0 %2570 }
0x19d5   :  { %v2578_v63 = vmul.f32 0.03125, %v2571_v41 }
0x19d6   :  { %v2574_v18 = vpop.xlane.xlu1 %2573 }
0x19d7   :  { %v2581_v27 = vsub.f32 %v2564_v19, %v2578_v63  ;;  %v2579_v15 = vmul.f32 0.03125, %v2574_v18 }
0x19d8   :  { %v2698_v26 = vpop.permute.xlu0 %2697 }
0x19d9   :  { %v2582_v43 = vsub.f32 %v2565_v2, %v2579_v15  ;;  %v2700_v24 = vadd.f32 %v2698_v26, %v5025_v23  ;;  %v2701_v36 = vadd.f32 %v2698_v26, %v5028_v29  ;;  %v2584_v4 = vmul.f32 %v2581_v27, %v2581_v27  ;;  %v3727_v26 = vld [vmem:[%s5985_s6 + $0x12] ss:$0 sm:$0xff] }
0x19da   :  { %v2577_v51 = vpop.xlane.xlu1 %2576 }
0x19db   :  { %v5728_v31 = vpack.c.bf16 %v2701_v36, %v2700_v24  ;;  %v2580_v13 = vmul.f32 0.03125, %v2577_v51  ;;  %v2587_v10 = vsel %vm393_vm14, %v2584_v4, 0.0  ;;  %v2585_v20 = vmul.f32 %v2582_v43, %v2582_v43 }
0x19dc   :  { %2588 = vadd.xlane.f32.xlu1 %v2587_v10 }
0x19dd   :  { %v2583_v62 = vsub.f32 %v2566_v30, %v2580_v13  ;;  %v2590_v56 = vsel %vm393_vm14, %v2585_v20, 0.0 }
0x19df   :  { %v2586_v25 = vmul.f32 %v2583_v62, %v2583_v62 }
0x19e0   :  { %2591 = vadd.xlane.f32.xlu1 %v2590_v56 }
0x19e1   :  { %v2593_v33 = vsel %vm1054_vm4, %v2586_v25, 0.0 }
0x19e4   :  { %2594 = vadd.xlane.f32.xlu1 %v2593_v33 }
0x19f5   :  { %2748 = vrot.lane.b32.xlu1 %v5728_v31, %s4739_s23 }
0x1a69   :  { %v2589_v23 = vpop.xlane.xlu1 %2588 }
0x1a6a   :  { %v2596_v29 = vmul.f32 0.03125, %v2589_v23 }
0x1a6c   :  { %v2599_v37 = vadd.f32 1e-05, %v2596_v29 }
0x1a6d   :  { %v2592_v14 = vpop.xlane.xlu1 %2591 }
0x1a6e   :  { %4601 = vrsqrt.f32 %v2599_v37  ;;  %v2597_v52 = vmul.f32 0.03125, %v2592_v14 }
0x1a70   :  { %v2600_v53 = vadd.f32 1e-05, %v2597_v52 }
0x1a71   :  { %v2595_v34 = vpop.xlane.xlu1 %2594 }
0x1a72   :  { %4603 = vrsqrt.f32 %v2600_v53  ;;  %v2598_v55 = vmul.f32 0.03125, %v2595_v34 }
0x1a74   :  { %v2601_v42 = vadd.f32 1e-05, %v2598_v55 }
0x1a75   :  { %v2749_v11 = vpop.permute.xlu1 %2748 }
0x1a76   :  { %4605 = vrsqrt.f32 %v2601_v42  ;;  %v2766_v39 = vsel %vm393_vm14, %v2749_v11, 0 }
0x1a77   :  { %4264 = vmatpush3.bf16.xpose.msra.mxu0 %v2766_v39 }
0x1a78   :  { %v4602_v32 = vpop.eup %4601  ;;  %4409 = vmatprep.subr.bf16.mxu0 %v4743_v6 }
0x1a79   :  { %v2605_v49 = vmul.f32 %v4602_v32, %v2581_v27 }
0x1a7b   :  { %v2612_v2 = vmul.f32 %v3724_v50, %v2605_v49 }
0x1a7c   :  { %v4604_v19 = vpop.eup %4603 }
0x1a7d   :  { %v2606_v44 = vmul.f32 %v4604_v19, %v2582_v43  ;;  %v5743_v16 = vadd.f32 %v3725_v40, %v2612_v2 }
0x1a7f   :  { %v2613_v30 = vmul.f32 %v3724_v50, %v2606_v44 }
0x1a80   :  { %v4606_v59 = vpop.eup %4605 }
0x1a81   :  { %v2607_v35 = vmul.f32 %v4606_v59, %v2583_v62  ;;  %v5745_v41 = vadd.f32 %v3725_v40, %v2613_v30 }
0x1a83   :  { %v2614_v63 = vmul.f32 %v3724_v50, %v2607_v35  ;;  %v2622_v18 = vpack.c.bf16 %v5745_v41, %v5743_v16 }
0x1a85   :  { %v5749_v27 = vadd.f32 %v3725_v40, %v2614_v63  ;;  %4259 = vmatprep.mubr.msk.bf16.mxu1 %vm393_vm14, %v2622_v18 }
0x1a87   :  { %v2623_v15 = vpack.c.bf16 %v5749_v27, %v5749_v27 }
0x1a89   :  { %4260 = vmatmul.mubr.msk.bf16.vlgmr.msra.gmra.mrb[88].mxu1 %vm393_vm14, %v2623_v15 }
0x1a8a   :  { %4287 = vmatprep.mubr.msk.bf16.mxu1 %vm4735_vm2, %v4734_v8 }
0x1b5c   :  { %v4261_v43 = vpop.f32.mrb[88].mxu1 }
0x1b5d   :  { %v2677_v24 = vpop.f32.mrb[89].mxu1  ;;  %v2686_v36 = vadd.f32 %v4261_v43, %v3727_v26 }
0x1b5e   :  { %v2678_v4 = vadd.f32 %v3727_v26, %v2677_v24  ;;  %v4262_v51 = vpop.f32.mrb[90].mxu1 }
0x1b5f   :  { %v2680_v13 = vpop.f32.mrb[91].mxu1  ;;  %v2708_v62 = vrot.slane %v2686_v36, 6  ;;  %v2716_v52 = vrot.slane %v2686_v36, 4  ;;  %v2724_v53 = vrot.slane %v2686_v36, 2 }
0x1b60   :  { %v2705_v10 = vrot.slane %v2678_v4, 6  ;;  %v2681_v20 = vadd.f32 %v3727_v26, %v2680_v13  ;;  %v2713_v56 = vrot.slane %v2678_v4, 4  ;;  %v2732_v25 = vmul.f32 %v4934_v60, %v2678_v4 }
0x1b61   :  { %v2721_v34 = vrot.slane %v2678_v4, 2 }
0x1b62   :  { %v2729_v33 = vsel %vm66_vm1, %v2686_v36, %v2705_v10  ;;  %v2706_v23 = vrot.slane %v2681_v20, 6  ;;  %v2714_v29 = vrot.slane %v2681_v20, 4  ;;  %v2722_v37 = vrot.slane %v2681_v20, 2 }
0x1b63   :  { %v2733_v14 = vmul.f32 %v4934_v60, %v2681_v20  ;;  %v2734_v55 = vmul.f32 %v4997_v9, %v2729_v33 }
0x1b64   :  { %v2707_v11 = vsel %vm66_vm1, %v2705_v10, %v2706_v23  ;;  %v2709_v39 = vsel %vm66_vm1, %v2706_v23, %v2708_v62  ;;  %v2715_v32 = vsel %vm70_vm7, %v2713_v56, %v2714_v29  ;;  %v2717_v44 = vsel %vm70_vm7, %v2714_v29, %v2716_v52 }
0x1b65   :  { %v2741_v42 = vpack.c.bf16 %v2733_v14, %v2732_v25  ;;  %v2735_v49 = vmul.f32 %v4990_v0, %v2707_v11  ;;  %v2730_v50 = vsel %vm70_vm7, %v2709_v39, %v2713_v56  ;;  %v2737_v19 = vmul.f32 %v4979_v57, %v2715_v32 }
0x1b66   :  { %v2736_v2 = vmul.f32 %v4983_v58, %v2730_v50  ;;  %v2723_v40 = vsel %vm74_vm8, %v2721_v34, %v2722_v37  ;;  %v2731_v30 = vsel %vm74_vm8, %v2717_v44, %v2721_v34  ;;  %v2725_v59 = vsel %vm74_vm8, %v2722_v37, %v2724_v53 }
0x1b67   :  { %4266 = vmatmul.mubr.msk.bf16.vlgmr.msra.gmra.mrb[96].mxu0 %vm393_vm14, %v2741_v42  ;;  %v2742_v35 = vpack.c.bf16 %v2735_v49, %v2734_v55  ;;  %v2738_v63 = vmul.f32 %v5007_v17, %v2731_v30  ;;  %v2739_v18 = vmul.f32 %v5003_v12, %v2723_v40  ;;  %v2740_v43 = vmul.f32 %v5003_v12, %v2725_v59 }
0x1b68   :  { %4269 = vmatprep.mubr.msk.bf16.mxu0 %vm4735_vm2, %v4734_v8  ;;  %v2743_v15 = vpack.c.bf16 %v2737_v19, %v2736_v2  ;;  %vm6011_vm1 = vcmp.eq.s32.totalorder %v5055_v48, %v5323_v54  ;;  %vm6012_vm7 = vcmp.eq.s32.totalorder %v5069_v61, %v5323_v54 }
0x1b69   :  { %v2744_v26 = vpack.c.bf16 %v2739_v18, %v2738_v63  ;;  %v2745_v24 = vpack.c.bf16 %v2740_v43, %v2740_v43 }
0x1b6f   :  { %4270 = vmatmul.mubr.msk.bf16.gmra.mrb[100].mxu0 %vm393_vm14, %v2742_v35 }
0x1b70   :  { %4273 = vmatprep.mubr.msk.bf16.mxu0 %vm4735_vm2, %v4734_v8 }
0x1b77   :  { %4274 = vmatmul.mubr.msk.bf16.gmra.mrb[104].mxu0 %vm393_vm14, %v2743_v15 }
0x1b78   :  { %4277 = vmatprep.mubr.msk.bf16.mxu0 %vm4735_vm2, %v4734_v8 }
0x1b7f   :  { %4278 = vmatmul.mubr.msk.bf16.gmra.mrb[108].mxu0 %vm393_vm14, %v2744_v26 }
0x1b80   :  { %4281 = vmatprep.mubr.msk.bf16.mxu0 %vm4735_vm2, %v4734_v8 }
0x1b87   :  { %4282 = vmatmul.mubr.msk.bf16.gmra.mrb[112].mxu0 %vm393_vm14, %v2745_v24 }
0x1b88   :  { %4325 = vmatprep.mubr.msk.f32.mxu0 %vm4735_vm2, %v4734_v8 }
0x1c3a   :  { %v2802_v36 = vpop.f32.mrb[96].mxu0 }
0x1c3b   :  { %v2840_v4 = vmul.f32 0.35355338, %v2802_v36  ;;  %v4267_v51 = vpop.f32.mrb[97].mxu0 }
0x1c3c   :  { %v2805_v13 = vpop.f32.mrb[98].mxu0 }
0x1c3d   :  { %v2849_v10 = vsel %vm3623_vm12, %v2840_v4, -1e+30  ;;  %v2841_v20 = vmul.f32 0.35355338, %v2805_v13  ;;  %v4268_v62 = vpop.f32.mrb[99].mxu0  ;;  %vm6014_vm12 = vcmp.eq.s32.totalorder %v5085_v21, %v5323_v54 }
0x1c3e   :  { %v2858_v56 = vsel %vm1332_vm11, %v2849_v10, -inf }
0x1c3f   :  { %v2850_v25 = vsel %vm223_vm6, %v2841_v20, -1e+30  ;;  %2859 = vmax.xlane.f32.xlu1 %v2858_v56  ;;  %vm6015_vm6 = vcmp.eq.s32.totalorder %v5101_v1, %v5323_v54 }
0x1c40   :  { %v2861_v33 = vsel %vm1332_vm11, %v2850_v25, -inf }
0x1c41   :  { %2862 = vmax.xlane.f32.xlu0 %v2861_v33 }
0x1c42   :  { %v2810_v23 = vpop.f32.mrb[100].mxu0 }
0x1c43   :  { %v2842_v29 = vmul.f32 0.35355338, %v2810_v23  ;;  %v4271_v37 = vpop.f32.mrb[101].mxu0 }
0x1c44   :  { %v2813_v14 = vpop.f32.mrb[102].mxu0 }
0x1c45   :  { %v2851_v52 = vsel %vm224_vm15, %v2842_v29, -1e+30  ;;  %v2843_v53 = vmul.f32 0.35355338, %v2813_v14  ;;  %v4272_v34 = vpop.f32.mrb[103].mxu0  ;;  %vm6016_vm15 = vcmask 1044480  }
0x1c46   :  { %v2864_v55 = vsel %vm1332_vm11, %v2851_v52, -inf }
0x1c47   :  { %v2852_v22 = vsel %vm6011_vm1, %v2843_v53, -1e+30  ;;  %2865 = vmax.xlane.f32.xlu0 %v2864_v55 }
0x1c48   :  { %v2867_v42 = vsel %vm1332_vm11, %v2852_v22, -inf }
0x1c49   :  { %2868 = vmax.xlane.f32.xlu1 %v2867_v42 }
0x1c4a   :  { %v2818_v11 = vpop.f32.mrb[104].mxu0 }
0x1c4b   :  { %v2844_v39 = vmul.f32 0.35355338, %v2818_v11  ;;  %v4275_v32 = vpop.f32.mrb[105].mxu0 }
0x1c4c   :  { %v2821_v49 = vpop.f32.mrb[106].mxu0 }
0x1c4d   :  { %v2853_v46 = vsel %vm6012_vm7, %v2844_v39, -1e+30  ;;  %v2845_v50 = vmul.f32 0.35355338, %v2821_v49  ;;  %v4276_v19 = vpop.f32.mrb[107].mxu0 }
0x1c4e   :  { %v2870_v44 = vsel %vm1332_vm11, %v2853_v46, -inf }
0x1c4f   :  { %v2854_v48 = vsel %vm6013_vm9, %v2845_v50, -1e+30  ;;  %2871 = vmax.xlane.f32.xlu0 %v2870_v44 }
0x1c50   :  { %v2873_v2 = vsel %vm1332_vm11, %v2854_v48, -inf }
0x1c51   :  { %2874 = vmax.xlane.f32.xlu1 %v2873_v2 }
0x1c52   :  { %v2826_v40 = vpop.f32.mrb[108].mxu0 }
0x1c53   :  { %v2846_v30 = vmul.f32 0.35355338, %v2826_v40  ;;  %v4279_v59 = vpop.f32.mrb[109].mxu0 }
0x1c54   :  { %v2829_v35 = vpop.f32.mrb[110].mxu0 }
0x1c55   :  { %v2855_v61 = vsel %vm6014_vm12, %v2846_v30, -1e+30  ;;  %v2847_v63 = vmul.f32 0.35355338, %v2829_v35  ;;  %v4280_v18 = vpop.f32.mrb[111].mxu0 }
0x1c56   :  { %v2876_v15 = vsel %vm1332_vm11, %v2855_v61, -inf }
0x1c57   :  { %v2856_v5 = vsel %vm229_vm0, %v2847_v63, -1e+30  ;;  %2877 = vmax.xlane.f32.xlu0 %v2876_v15 }
0x1c58   :  { %v2879_v26 = vsel %vm1332_vm11, %v2856_v5, -inf }
0x1c59   :  { %2880 = vmax.xlane.f32.xlu1 %v2879_v26 }
0x1c5a   :  { %v2834_v43 = vpop.f32.mrb[112].mxu0 }
0x1c5b   :  { %v2848_v24 = vmul.f32 0.35355338, %v2834_v43  ;;  %v4283_v36 = vpop.f32.mrb[113].mxu0 }
0x1c5c   :  { %v2837_v4 = vpop.f32.mrb[114].mxu0 }
0x1c5d   :  { %v2857_v21 = vsel %vm6015_vm6, %v2848_v24, -1e+30  ;;  %v4284_v51 = vpop.f32.mrb[115].mxu0 }
0x1c5e   :  { %v2882_v13 = vsel %vm1332_vm11, %v2857_v21, -inf }
0x1c5f   :  { %2883 = vmax.xlane.f32.xlu0 %v2882_v13 }
0x1ccc   :  { %v2860_v20 = vpop.xlane.xlu1 %2859 }
0x1ccd   :  { %v2885_v62 = vsub.f32 %v2849_v10, %v2860_v20 }
0x1cce   :  { %v2863_v28 = vpop.xlane.xlu0 %2862 }
0x1ccf   :  { %v2894_v56 = vmul.f32 1.442695, %v2885_v62  ;;  %v2886_v33 = vsub.f32 %v2850_v25, %v2863_v28 }
0x1cd1   :  { %4607 = vpow2.f32 %v2894_v56  ;;  %v2896_v23 = vmul.f32 1.442695, %v2886_v33 }
0x1cd3   :  { %4609 = vpow2.f32 %v2896_v23 }
0x1cd4   :  { %v2866_v29 = vpop.xlane.xlu0 %2865 }
0x1cd5   :  { %v2887_v37 = vsub.f32 %v2851_v52, %v2866_v29 }
0x1cd6   :  { %v2869_v14 = vpop.xlane.xlu1 %2868 }
0x1cd7   :  { %v2898_v53 = vmul.f32 1.442695, %v2887_v37  ;;  %v2888_v34 = vsub.f32 %v2852_v22, %v2869_v14 }
0x1cd9   :  { %4611 = vpow2.f32 %v2898_v53  ;;  %v2900_v1 = vmul.f32 1.442695, %v2888_v34 }
0x1cdb   :  { %v5828_v54 = vpop.eup %4607  ;;  %4613 = vpow2.f32 %v2900_v1 }
0x1cdc   :  { %v2872_v55 = vpop.xlane.xlu0 %2871  ;;  %v2912_v10 = vsel %vm1332_vm11, %v5828_v54, 0.0 }
0x1cdd   :  { %v4610_v42 = vpop.eup %4609  ;;  %v2889_v11 = vsub.f32 %v2853_v46, %v2872_v55  ;;  %2913 = vadd.xlane.f32.xlu1 %v2912_v10 }
0x1cde   :  { %v2875_v25 = vpop.xlane.xlu1 %2874  ;;  %v2915_v39 = vsel %vm1332_vm11, %v4610_v42, 0.0 }
0x1cdf   :  { %v2902_v32 = vmul.f32 1.442695, %v2889_v11  ;;  %v2890_v52 = vsub.f32 %v2854_v48, %v2875_v25  ;;  %2916 = vadd.xlane.f32.xlu0 %v2915_v39 }
0x1ce1   :  { %4615 = vpow2.f32 %v2902_v32  ;;  %v2904_v22 = vmul.f32 1.442695, %v2890_v52 }
0x1ce3   :  { %v5833_v49 = vpop.eup %4611  ;;  %4617 = vpow2.f32 %v2904_v22 }
0x1ce4   :  { %v2878_v50 = vpop.xlane.xlu0 %2877  ;;  %v2918_v19 = vsel %vm1332_vm11, %v5833_v49, 0.0 }
0x1ce5   :  { %v4614_v44 = vpop.eup %4613  ;;  %v2891_v2 = vsub.f32 %v2855_v61, %v2878_v50  ;;  %2919 = vadd.xlane.f32.xlu1 %v2918_v19 }
0x1ce6   :  { %v2881_v46 = vpop.xlane.xlu1 %2880  ;;  %v2921_v40 = vsel %vm1332_vm11, %v4614_v44, 0.0 }
0x1ce7   :  { %v2906_v30 = vmul.f32 1.442695, %v2891_v2  ;;  %v2892_v59 = vsub.f32 %v2856_v5, %v2881_v46  ;;  %2922 = vadd.xlane.f32.xlu0 %v2921_v40 }
0x1ce9   :  { %4619 = vpow2.f32 %v2906_v30  ;;  %v2908_v48 = vmul.f32 1.442695, %v2892_v59 }
0x1ceb   :  { %v4616_v35 = vpop.eup %4615  ;;  %4621 = vpow2.f32 %v2908_v48 }
0x1cec   :  { %v2884_v63 = vpop.xlane.xlu0 %2883  ;;  %v2924_v18 = vsel %vm1332_vm11, %v4616_v35, 0.0 }
0x1ced   :  { %v4618_v15 = vpop.eup %4617  ;;  %v2893_v26 = vsub.f32 %v2857_v21, %v2884_v63  ;;  %2925 = vadd.xlane.f32.xlu1 %v2924_v18 }
0x1cee   :  { %v2927_v43 = vsel %vm1332_vm11, %v4618_v15, 0.0 }
0x1cef   :  { %v2910_v61 = vmul.f32 1.442695, %v2893_v26  ;;  %2928 = vadd.xlane.f32.xlu0 %v2927_v43 }
0x1cf1   :  { %4623 = vpow2.f32 %v2910_v61 }
0x1cf3   :  { %v4620_v24 = vpop.eup %4619 }
0x1cf4   :  { %v2930_v36 = vsel %vm1332_vm11, %v4620_v24, 0.0 }
0x1cf5   :  { %v4622_v5 = vpop.eup %4621  ;;  %2931 = vadd.xlane.f32.xlu1 %v2930_v36 }
0x1cf6   :  { %v2933_v4 = vsel %vm1332_vm11, %v4622_v5, 0.0 }
0x1cf7   :  { %2934 = vadd.xlane.f32.xlu0 %v2933_v4 }
0x1cfb   :  { %v4624_v51 = vpop.eup %4623 }
0x1cfc   :  { %v2936_v13 = vsel %vm1332_vm11, %v4624_v51, 0.0 }
0x1cfd   :  { %2937 = vadd.xlane.f32.xlu0 %v2936_v13 }
0x1d06   :  { %2962 = vrot.lane.b32.xlu1 %v5728_v31, %s4744_s28 }
0x1d0a   :  { %3152 = vrot.lane.b32.xlu1 %v5692_v45, %s4736_s20 }
0x1d13   :  { %3150 = vrot.lane.b32.xlu0 %v5686_v38, %s4736_s20 }
0x1d6a   :  { %v2914_v20 = vpop.xlane.xlu1 %2913 }
0x1d6c   :  { %v2917_v21 = vpop.xlane.xlu0 %2916 }
0x1d6d   :  { %4625 = vrcp.f32 %v2917_v21 }
0x1d6e   :  { %4627 = vrcp.f32 %v2914_v20 }
0x1d72   :  { %v2920_v62 = vpop.xlane.xlu1 %2919 }
0x1d74   :  { %v2923_v28 = vpop.xlane.xlu0 %2922 }
0x1d75   :  { %4629 = vrcp.f32 %v2923_v28 }
0x1d76   :  { %4631 = vrcp.f32 %v2920_v62 }
0x1d77   :  { %v4626_v33 = vpop.eup %4625 }
0x1d78   :  { %v4628_v29 = vpop.eup %4627  ;;  %v2949_v37 = vmul.f32 %v4626_v33, %v4610_v42 }
0x1d79   :  { %v2948_v53 = vmul.f32 %v4628_v29, %v5828_v54 }
0x1d7a   :  { %v2926_v56 = vpop.xlane.xlu1 %2925 }
0x1d7b   :  { %v2957_v1 = vpack.c.bf16 %v2949_v37, %v2948_v53 }
0x1d7c   :  { %v2929_v31 = vpop.xlane.xlu0 %2928 }
0x1d7d   :  { %4633 = vrcp.f32 %v2929_v31 }
0x1d7e   :  { %4635 = vrcp.f32 %v2926_v56 }
0x1d7f   :  { %v4630_v55 = vpop.eup %4629 }
0x1d80   :  { %v4632_v10 = vpop.eup %4631  ;;  %v2951_v25 = vmul.f32 %v4630_v55, %v4614_v44 }
0x1d81   :  { %v2950_v42 = vmul.f32 %v4632_v10, %v5833_v49 }
0x1d82   :  { %v2932_v23 = vpop.xlane.xlu1 %2931 }
0x1d83   :  { %v2958_v39 = vpack.c.bf16 %v2951_v25, %v2950_v42 }
0x1d84   :  { %v2935_v11 = vpop.xlane.xlu0 %2934 }
0x1d85   :  { %4637 = vrcp.f32 %v2935_v11 }
0x1d86   :  { %v2963_v14 = vpop.permute.xlu1 %2962  ;;  %4639 = vrcp.f32 %v2932_v23 }
0x1d87   :  { %v2980_v34 = vsel %vm6016_vm15, %v2963_v14, 0  ;;  %v4634_v54 = vpop.eup %4633 }
0x1d88   :  { %4286 = vmatpush3.bf16.msra.mxu1 %v2980_v34  ;;  %v4636_v32 = vpop.eup %4635  ;;  %v2953_v22 = vmul.f32 %v4634_v54, %v4618_v15 }
0x1d89   :  { %v2952_v50 = vmul.f32 %v4636_v32, %v4616_v35 }
0x1d8a   :  { %v2938_v52 = vpop.xlane.xlu0 %2937  ;;  %v3153_v63 = vpop.permute.xlu1 %3152 }
0x1d8b   :  { %4288 = vmatmul.mubr.msk.bf16.vlgmr.msra.gmra.mrb[92].mxu1 %vm1332_vm11, %v2957_v1  ;;  %4641 = vrcp.f32 %v2938_v52  ;;  %v2959_v19 = vpack.c.bf16 %v2953_v22, %v2952_v50 }
0x1d8c   :  { %4291 = vmatprep.mubr.msk.bf16.mxu1 %vm4735_vm2, %v4734_v8 }
0x1d8e   :  { %v3151_v35 = vpop.permute.xlu0 %3150 }
0x1d8f   :  { %v4638_v2 = vpop.eup %4637  ;;  %4334 = vmatprep.subr.bf16.mxu1 %v3151_v35 }
0x1d90   :  { %v4640_v44 = vpop.eup %4639  ;;  %v2955_v49 = vmul.f32 %v4638_v2, %v4622_v5  ;;  %4335 = vmatpush3.bf16.msra.mxu1 %v3151_v35 }
0x1d91   :  { %v2954_v46 = vmul.f32 %v4640_v44, %v4620_v24  ;;  %4336 = vmatprep.subr.bf16.mxu1 %v3153_v63 }
0x1d93   :  { %4292 = vmatmul.mubr.msk.bf16.gmra.mrb[96].mxu1 %vm1332_vm11, %v2958_v39  ;;  %v2960_v40 = vpack.c.bf16 %v2955_v49, %v2954_v46 }
0x1d94   :  { %4295 = vmatprep.mubr.msk.bf16.mxu1 %vm4735_vm2, %v4734_v8  ;;  %4337 = vmatpush3.bf16.msra.mxu1 %v3153_v63 }
0x1d95   :  { %v4642_v30 = vpop.eup %4641 }
0x1d96   :  { %v2956_v59 = vmul.f32 %v4642_v30, %v4624_v51 }
0x1d98   :  { %v2961_v48 = vpack.c.bf16 %v2956_v59, %v2956_v59 }
0x1d9b   :  { %4296 = vmatmul.mubr.msk.bf16.gmra.mrb[100].mxu1 %vm1332_vm11, %v2959_v19 }
0x1d9c   :  { %4299 = vmatprep.mubr.msk.bf16.mxu1 %vm4735_vm2, %v4734_v8 }
0x1da3   :  { %4300 = vmatmul.mubr.msk.bf16.gmra.mrb[104].mxu1 %vm1332_vm11, %v2960_v40 }
0x1da4   :  { %4303 = vmatprep.mubr.msk.bf16.mxu1 %vm4735_vm2, %v4734_v8 }
0x1dab   :  { %4304 = vmatmul.mubr.msk.bf16.gmra.mrb[108].mxu1 %vm1332_vm11, %v2961_v48 }
0x1e5e   :  { %v3016_v18 = vpop.f32.mrb[92].mxu1 }
0x1e5f   :  { %v4289_v15 = vpop.f32.mrb[93].mxu1  ;;  %v3054_v43 = vmul.f32 %v4934_v60, %v3016_v18 }
0x1e60   :  { %v3019_v26 = vpop.f32.mrb[94].mxu1 }
0x1e61   :  { %v3055_v61 = vmul.f32 %v4934_v60, %v3019_v26  ;;  %v4290_v24 = vpop.f32.mrb[95].mxu1 }
0x1e63   :  { %v4410_v36 = vpack.c.bf16 %v3055_v61, %v3054_v43 }
0x1e65   :  { %4411 = vmatpush3.bf16.msra.mxu0 %v4410_v36 }
0x1e66   :  { %v3024_v5 = vpop.f32.mrb[96].mxu1  ;;  %4412 = vmatprep.subr.bf16.mxu0 %v4743_v6 }
0x1e67   :  { %v4293_v4 = vpop.f32.mrb[97].mxu1  ;;  %v3056_v13 = vmul.f32 %v4997_v9, %v3024_v5 }
0x1e68   :  { %v3027_v51 = vpop.f32.mrb[98].mxu1  ;;  %v4471_v4 = vld [vmem:[%s5984_s5 + $0x20] sm:$0xff]  }
0x1e69   :  { %v3057_v21 = vmul.f32 %v4990_v0, %v3027_v51  ;;  %v4294_v20 = vpop.f32.mrb[99].mxu1  ;;  %v4472_v51 = vld [vmem:[%s5984_s5 + $0x28] sm:$0xff]   ;;  %4350 = vmatprep.subr.bf16.mxu1 %v4471_v4 }
0x1e6b   :  { %v4413_v62 = vpack.c.bf16 %v3057_v21, %v3056_v13 }
0x1e6d   :  { %4414 = vmatpush3.bf16.msra.mxu0 %v4413_v62 }
0x1e6e   :  { %v3032_v28 = vpop.f32.mrb[100].mxu1  ;;  %4415 = vmatprep.subr.bf16.mxu0 %v4743_v6 }
0x1e6f   :  { %v4297_v56 = vpop.f32.mrb[101].mxu1  ;;  %v3058_v33 = vmul.f32 %v4983_v58, %v3032_v28 }
0x1e70   :  { %v3035_v60 = vpop.f32.mrb[102].mxu1 }
0x1e71   :  { %v3059_v23 = vmul.f32 %v4979_v57, %v3035_v60  ;;  %v4298_v29 = vpop.f32.mrb[103].mxu1 }
0x1e73   :  { %v4416_v37 = vpack.c.bf16 %v3059_v23, %v3058_v33 }
0x1e75   :  { %4417 = vmatpush3.bf16.msra.mxu0 %v4416_v37  ;;  %v3753_v37 = vld [vmem:[%s5985_s6 + $0x19] ss:$0 sm:$0xff] }
0x1e76   :  { %v3040_v31 = vpop.f32.mrb[104].mxu1  ;;  %4418 = vmatprep.subr.bf16.mxu0 %v4743_v6 }
0x1e77   :  { %v4301_v9 = vpop.f32.mrb[105].mxu1  ;;  %v3060_v14 = vmul.f32 %v5007_v17, %v3040_v31 }
0x1e78   :  { %v3043_v0 = vpop.f32.mrb[106].mxu1 }
0x1e79   :  { %v3061_v53 = vmul.f32 %v5003_v12, %v3043_v0  ;;  %v4302_v34 = vpop.f32.mrb[107].mxu1 }
0x1e7a   :  { %v3754_v34 = vld [vmem:[%s5985_s6 + $0x1a] ss:$0 sm:$0xff] }
0x1e7b   :  { %v4419_v1 = vpack.c.bf16 %v3061_v53, %v3060_v14 }
0x1e7d   :  { %4420 = vmatpush3.bf16.msra.mxu0 %v4419_v1 }
0x1e7e   :  { %v3048_v55 = vpop.f32.mrb[108].mxu1  ;;  %4323 = vmatprep.subr.mxu0 %v4734_v8 }
0x1e7f   :  { %v3062_v57 = vmul.f32 %v5003_v12, %v3048_v55  ;;  %v4305_v58 = vpop.f32.mrb[109].mxu1 }
0x1e80   :  { %v3051_v10 = vpop.f32.mrb[110].mxu1 }
0x1e81   :  { %v4306_v11 = vpop.f32.mrb[111].mxu1  ;;  %4324 = vmatpush3.msra.mxu0 %v3062_v57 }
0x1e82   :  { %4326 = vmatmul.mubr.msk.f32.vlgmr.msra.gmra.mrb[62].mxu0 %vm886_vm13, %v5208_v7 }
0x1e83   :  { %4328 = vmatprep.mubr.msk.f32.mxu0 %vm4735_vm2, %v4734_v8 }
0x1e86   :  { %4329 = vmatmul.mubr.msk.f32.gmra.mrb[116].mxu0 %vm886_vm13, %v5218_v47  ;;  %v3748_v47 = vld [vmem:[%s5985_s6 + $0x14] ss:$0 sm:$0xff] }
0x1e87   :  { %4331 = vmatprep.mubr.msk.f32.mxu0 %vm4735_vm2, %v4734_v8  ;;  %vm6017_vm2 = vcmask 523264  }
0x1e88   :  { %vm6018_vm11 = vmmov %vm6017_vm2 }
0x1e8a   :  { %4332 = vmatmul.mubr.msk.f32.gmra.mrb[118].mxu0 %vm886_vm13, %v5228_v3  ;;  %vm3492_vm13 = vcmask 1046528  }
0x1f55   :  { %v3129_v12 = vpop.f32.mrb[62].mxu0 }
0x1f56   :  { %v4327_v17 = vpop.f32.mrb[63].mxu0 }
0x1f59   :  { %v3134_v6 = vpop.f32.mrb[116].mxu0 }
0x1f5a   :  { %v3143_v25 = vpack.c.bf16 %v3134_v6, %v3129_v12  ;;  %v4330_v42 = vpop.f32.mrb[117].mxu0  ;;  %v4473_v6 = vld [vmem:[%s5984_s5 + $0x30] sm:$0xff]  }
0x1f5b   :  { %v3756_v42 = vld [vmem:[%s5985_s6 + $0x15] ss:$0 sm:$0xff] }
0x1f5c   :  { %4338 = vmatprep.mubr.msk.bf16.mxu1 %vm393_vm14, %v3143_v25  ;;  %v4474_v25 = vld [vmem:[%s5984_s5 + $0x38] sm:$0xff]  }
0x1f5d   :  { %v3139_v7 = vpop.f32.mrb[118].mxu0 }
0x1f5e   :  { %v3144_v39 = vpack.c.bf16 %v3139_v7, %v3139_v7  ;;  %v4333_v54 = vpop.f32.mrb[119].mxu0 }
0x1f60   :  { %4339 = vmatmul.mubr.msk.bf16.vlgmr.msra.gmra.mrb[112].mxu1 %vm393_vm14, %v3144_v39 }
0x1f61   :  { %4351 = vmatpush3.bf16.msra.mxu1 %v4471_v4 }
0x1f62   :  { %4352 = vmatprep.subr.bf16.mxu1 %v4472_v51 }
0x1f65   :  { %4353 = vmatpush3.bf16.msra.mxu1 %v4472_v51 }
0x1f66   :  { %4354 = vmatprep.subr.bf16.mxu1 %v4473_v6 }
0x1f69   :  { %4355 = vmatpush3.bf16.msra.mxu1 %v4473_v6 }
0x1f6a   :  { %4356 = vmatprep.subr.bf16.mxu1 %v4474_v25 }
0x1f6d   :  { %4357 = vmatpush3.bf16.msra.mxu1 %v4474_v25 }
0x2033   :  { %v4340_v8 = vpop.f32.mrb[112].mxu1 }
0x2034   :  { %v3196_v32 = vpop.f32.mrb[113].mxu1  ;;  %v3205_v52 = vadd.f32 %v4340_v8, %v3748_v47 }
0x2035   :  { %v3197_v3 = vadd.f32 %v3748_v47, %v3196_v32  ;;  %v4341_v22 = vpop.f32.mrb[114].mxu1 }
0x2036   :  { %v3199_v50 = vpop.f32.mrb[115].mxu1  ;;  %v3212_v44 = vadd.f32 %v3205_v52, %v5749_v27 }
0x2037   :  { %v3210_v19 = vadd.f32 %v3197_v3, %v5743_v16  ;;  %v3200_v2 = vadd.f32 %v3748_v47, %v3199_v50 }
0x2038   :  { %v3221_v30 = vsel %vm1054_vm4, %v3212_v44, 0.0 }
0x2039   :  { %v3211_v49 = vadd.f32 %v3200_v2, %v5745_v41  ;;  %v3215_v46 = vsel %vm393_vm14, %v3210_v19, 0.0 }
0x203a   :  { %3216 = vadd.xlane.f32.xlu1 %v3215_v46 }
0x203b   :  { %v3218_v40 = vsel %vm393_vm14, %v3211_v49, 0.0 }
0x203c   :  { %3219 = vadd.xlane.f32.xlu0 %v3218_v40 }
0x203e   :  { %3222 = vadd.xlane.f32.xlu1 %v3221_v30 }
0x20c7   :  { %v3217_v59 = vpop.xlane.xlu1 %3216 }
0x20c8   :  { %v3224_v48 = vmul.f32 0.03125, %v3217_v59 }
0x20c9   :  { %v3220_v35 = vpop.xlane.xlu0 %3219 }
0x20ca   :  { %v3227_v63 = vsub.f32 %v3210_v19, %v3224_v48  ;;  %v3225_v18 = vmul.f32 0.03125, %v3220_v35 }
0x20cb   :  { %v3223_v16 = vpop.xlane.xlu1 %3222 }
0x20cc   :  { %v3228_v15 = vsub.f32 %v3211_v49, %v3225_v18  ;;  %v3226_v26 = vmul.f32 0.03125, %v3223_v16  ;;  %v3230_v27 = vmul.f32 %v3227_v63, %v3227_v63 }
0x20ce   :  { %v3229_v43 = vsub.f32 %v3212_v44, %v3226_v26  ;;  %v3233_v41 = vsel %vm393_vm14, %v3230_v27, 0.0  ;;  %v3231_v61 = vmul.f32 %v3228_v15, %v3228_v15  ;;  %v3768_v44 = vld [vmem:[%s5985_s6 + $0x16] ss:$0 sm:$0xff] }
0x20cf   :  { %3234 = vadd.xlane.f32.xlu0 %v3233_v41 }
0x20d0   :  { %v3236_v24 = vsel %vm393_vm14, %v3231_v61, 0.0  ;;  %v3232_v36 = vmul.f32 %v3229_v43, %v3229_v43 }
0x20d1   :  { %3237 = vadd.xlane.f32.xlu1 %v3236_v24 }
0x20d2   :  { %v3239_v5 = vsel %vm1054_vm4, %v3232_v36, 0.0 }
0x20d3   :  { %3240 = vadd.xlane.f32.xlu0 %v3239_v5 }
0x20e2   :  { %3275 = vrot.lane.b32.xlu1 %v5686_v38, %s4739_s23 }
0x20e9   :  { %3277 = vrot.lane.b32.xlu0 %v5692_v45, %s4739_s23  ;;  %s3595_s23 = sshll.u32 %s4748_s22, 4  ;;  %s3596_s23 = int_to_ptr.vmem [resolvable:$true] %s3595_s23 }
0x20ea   :  { %s4699_s24 = scalar_lea.vmem %s3596_s23, 256  ;;  %p4704_p3 = scmp.lt.s32.totalorder %s3596_s23, %s3596_s23 }
0x20eb   :  { %p4700_p2 = scmp.ne.s32.totalorder %s3596_s23, %s4699_s24  ;;  %p4705_p4 = scmp.lt.s32.totalorder %s4699_s24, %s4699_s24 }
0x20ed   :  { %p4706_p5 = por %p4705_p4, %p4704_p3 }
0x20ef   :  { %p4707_p6 = pnand %p4706_p5, %p4700_p2 }
0x215c   :  { %v3235_v13 = vpop.xlane.xlu0 %3234 }
0x215d   :  { %v3242_v21 = vmul.f32 0.03125, %v3235_v13 }
0x215e   :  { %v3238_v20 = vpop.xlane.xlu1 %3237 }
0x215f   :  { %v3245_v62 = vadd.f32 1e-05, %v3242_v21  ;;  %v3243_v38 = vmul.f32 0.03125, %v3238_v20 }
0x2160   :  { %v3241_v28 = vpop.xlane.xlu0 %3240 }
0x2161   :  { %4643 = vrsqrt.f32 %v3245_v62  ;;  %v3246_v45 = vadd.f32 1e-05, %v3243_v38  ;;  %v3244_v56 = vmul.f32 0.03125, %v3241_v28 }
0x2162   :  { %v3276_v60 = vpop.permute.xlu1 %3275 }
0x2163   :  { %4645 = vrsqrt.f32 %v3246_v45  ;;  %v3247_v33 = vadd.f32 1e-05, %v3244_v56  ;;  %4342 = vmatprep.subr.bf16.mxu0 %v3276_v60  ;;  %v3500_v56 = vld [vmem:[%s5986_s7] sm:$0xff] }
0x2164   :  { %4343 = vmatpush3.bf16.msra.mxu0 %v3276_v60  ;;  %v3278_v23 = vpop.permute.xlu0 %3277  ;;  %v3501_v60 = vld [vmem:[%s5986_s7 + $0x8] sm:$0xff] }
0x2165   :  { %4647 = vrsqrt.f32 %v3247_v33  ;;  %4344 = vmatprep.subr.bf16.mxu0 %v3278_v23  ;;  %v3502_v33 = vld [vmem:[%s5986_s7 + $0x10] sm:$0xff] }
0x2168   :  { %4345 = vmatpush3.bf16.msra.mxu0 %v3278_v23  ;;  %v4421_v23 = vpack.c.bf16 %v3501_v60, %v3500_v56 }
0x216a   :  { %4422 = vmatprep.subr.bf16.mxu0 %v4421_v23 }
0x216b   :  { %v4644_v29 = vpop.eup %4643 }
0x216c   :  { %v3251_v31 = vmul.f32 %v4644_v29, %v3227_v63  ;;  %v3503_v29 = vld [vmem:[%s5986_s7 + $0x18] sm:$0xff] }
0x216d   :  { %v4646_v9 = vpop.eup %4645 }
0x216e   :  { %v3252_v0 = vmul.f32 %v4646_v9, %v3228_v15  ;;  %v3258_v14 = vmul.f32 %v3753_v37, %v3251_v31 }
0x216f   :  { %v4648_v53 = vpop.eup %4647 }
0x2170   :  { %v3253_v1 = vmul.f32 %v4648_v53, %v3229_v43  ;;  %v3259_v55 = vmul.f32 %v3753_v37, %v3252_v0  ;;  %v3265_v58 = vadd.f32 %v3754_v34, %v3258_v14 }
0x2172   :  { %v3260_v57 = vmul.f32 %v3753_v37, %v3253_v1  ;;  %v3266_v10 = vadd.f32 %v3754_v34, %v3259_v55  ;;  %v4425_v37 = vpack.c.bf16 %v3503_v29, %v3502_v33 }
0x2174   :  { %v3267_v11 = vadd.f32 %v3754_v34, %v3260_v57  ;;  %v3268_v12 = vpack.c.bf16 %v3266_v10, %v3265_v58 }
0x2176   :  { %v3269_v17 = vpack.c.bf16 %v3267_v11, %v3267_v11  ;;  %4346 = vmatprep.mubr.msk.bf16.mxu0 %vm393_vm14, %v3268_v12 }
0x2178   :  { %4347 = vmatmul.mubr.msk.bf16.vlgmr.msra.gmra.mrb[120].mxu0 %vm393_vm14, %v3269_v17  ;;  %v3778_v17 = vld [vmem:[%s5985_s6 + $0x1c] ss:$0 sm:$0xff] }
0x2179   :  { %4424 = vmatpush3.bf16.msra.mxu0 %v4421_v23 }
0x217a   :  { %4426 = vmatprep.subr.bf16.mxu0 %v4425_v37 }
0x217d   :  { %4428 = vmatpush3.bf16.msra.mxu0 %v4425_v37 }
0x224b   :  { %v4348_v7 = vpop.f32.mrb[120].mxu0 }
0x224c   :  { %v3330_v39 = vadd.f32 %v4348_v7, %v3756_v42  ;;  %v3321_v54 = vpop.f32.mrb[121].mxu0 }
0x224d   :  { %v3322_v47 = vadd.f32 %v3756_v42, %v3321_v54  ;;  %v4349_v8 = vpop.f32.mrb[122].mxu0 }
0x224e   :  { %v3324_v32 = vpop.f32.mrb[123].mxu0  ;;  %v3337_v3 = vmax.f32 %v3330_v39, 0.0 }
0x224f   :  { %v3325_v52 = vadd.f32 %v3756_v42, %v3324_v32  ;;  %v3335_v22 = vmax.f32 %v3322_v47, 0.0 }
0x2250   :  { %v3339_v2 = vpack.c.bf16 %v3337_v3, %v3337_v3 }
0x2251   :  { %v3336_v50 = vmax.f32 %v3325_v52, 0.0 }
0x2253   :  { %v3338_v19 = vpack.c.bf16 %v3336_v50, %v3335_v22 }
0x2255   :  { %4358 = vmatprep.mubr.msk.bf16.mxu1 %vm6017_vm2, %v3338_v19 }
0x2256   :  { %4359 = vmatmul.mubr.msk.bf16.vlgmr.msra.gmra.mrb[116].mxu1 %vm6018_vm11, %v3339_v2 }
0x2329   :  { %v4360_v49 = vpop.f32.mrb[116].mxu1 }
0x232a   :  { %v3418_v46 = vpop.f32.mrb[117].mxu1  ;;  %v3427_v40 = vadd.f32 %v4360_v49, %v3768_v44 }
0x232b   :  { %v3419_v30 = vadd.f32 %v3768_v44, %v3418_v46  ;;  %v4361_v59 = vpop.f32.mrb[118].mxu1 }
0x232c   :  { %v3421_v48 = vpop.f32.mrb[119].mxu1  ;;  %v3434_v18 = vadd.f32 %v3427_v40, %v3267_v11 }
0x232d   :  { %v3432_v35 = vadd.f32 %v3419_v30, %v3265_v58  ;;  %v3422_v63 = vadd.f32 %v3768_v44, %v3421_v48  ;;  %v3779_v44 = vld [vmem:[%s5986_s7 + $0x20] ss:$0 sm:$0xff] }
0x232e   :  { %v3443_v27 = vsel %vm1054_vm4, %v3434_v18, 0.0 }
0x232f   :  { %v3433_v16 = vadd.f32 %v3422_v63, %v3266_v10  ;;  %v3437_v15 = vsel %vm393_vm14, %v3432_v35, 0.0  ;;  %v3777_v10 = vld [vmem:[%s5985_s6 + $0x1b] ss:$0 sm:$0xff] }
0x2330   :  { %3438 = vadd.xlane.f32.xlu1 %v3437_v15 }
0x2331   :  { %v3440_v26 = vsel %vm393_vm14, %v3433_v16, 0.0 }
0x2332   :  { %3441 = vadd.xlane.f32.xlu0 %v3440_v26 }
0x2334   :  { %3444 = vadd.xlane.f32.xlu1 %v3443_v27 }
0x23bd   :  { %v3439_v43 = vpop.xlane.xlu1 %3438 }
0x23be   :  { %v3446_v41 = vmul.f32 0.03125, %v3439_v43 }
0x23bf   :  { %v3442_v61 = vpop.xlane.xlu0 %3441 }
0x23c0   :  { %v3449_v24 = vsub.f32 %v3432_v35, %v3446_v41  ;;  %v3447_v36 = vmul.f32 0.03125, %v3442_v61 }
0x23c1   :  { %v3445_v5 = vpop.xlane.xlu1 %3444 }
0x23c2   :  { %v3450_v4 = vsub.f32 %v3433_v16, %v3447_v36  ;;  %v3448_v51 = vmul.f32 0.03125, %v3445_v5  ;;  %v3452_v13 = vmul.f32 %v3449_v24, %v3449_v24 }
0x23c4   :  { %v3451_v21 = vsub.f32 %v3434_v18, %v3448_v51  ;;  %v3455_v20 = vsel %vm393_vm14, %v3452_v13, 0.0  ;;  %v3453_v62 = vmul.f32 %v3450_v4, %v3450_v4 }
0x23c5   :  { %3456 = vadd.xlane.f32.xlu0 %v3455_v20 }
0x23c6   :  { %v3458_v38 = vsel %vm393_vm14, %v3453_v62, 0.0  ;;  %v3454_v28 = vmul.f32 %v3451_v21, %v3451_v21 }
0x23c7   :  { %3459 = vadd.xlane.f32.xlu1 %v3458_v38 }
0x23c8   :  { %v3461_v45 = vsel %vm1054_vm4, %v3454_v28, 0.0 }
0x23c9   :  { %3462 = vadd.xlane.f32.xlu0 %v3461_v45 }
0x2452   :  { %v3457_v31 = vpop.xlane.xlu0 %3456 }
0x2453   :  { %v3464_v9 = vmul.f32 0.03125, %v3457_v31 }
0x2454   :  { %v3460_v0 = vpop.xlane.xlu1 %3459 }
0x2455   :  { %v3467_v14 = vadd.f32 1e-05, %v3464_v9  ;;  %v3465_v53 = vmul.f32 0.03125, %v3460_v0 }
0x2456   :  { %v3463_v34 = vpop.xlane.xlu0 %3462 }
0x2457   :  { %4649 = vrsqrt.f32 %v3467_v14  ;;  %v3468_v1 = vadd.f32 1e-05, %v3465_v53  ;;  %v3466_v55 = vmul.f32 0.03125, %v3463_v34 }
0x2459   :  { %4651 = vrsqrt.f32 %v3468_v1  ;;  %v3469_v57 = vadd.f32 1e-05, %v3466_v55 }
0x245b   :  { %4653 = vrsqrt.f32 %v3469_v57 }
0x2461   :  { %v4650_v58 = vpop.eup %4649 }
0x2462   :  { %v3473_v11 = vmul.f32 %v4650_v58, %v3449_v24 }
0x2463   :  { %v4652_v12 = vpop.eup %4651 }
0x2464   :  { %v3474_v6 = vmul.f32 %v4652_v12, %v3450_v4  ;;  %v3480_v25 = vmul.f32 %v3777_v10, %v3473_v11 }
0x2465   :  { %v4654_v42 = vpop.eup %4653 }
0x2466   :  { %v3475_v7 = vmul.f32 %v4654_v42, %v3451_v21  ;;  %v3481_v39 = vmul.f32 %v3777_v10, %v3474_v6  ;;  %v3487_v54 = vadd.f32 %v3778_v17, %v3480_v25 }
0x2468   :  { %v3488_v47 = vadd.f32 %v3778_v17, %v3481_v39  ;;  %v3482_v8 = vmul.f32 %v3777_v10, %v3475_v7  ;;  %v3493_v32 = vrot.slane %v3487_v54, 1 }
0x246a   :  { %v3494_v52 = vrot.slane %v3488_v47, 1  ;;  %v3489_v3 = vadd.f32 %v3778_v17, %v3482_v8  ;;  %v3497_v50 = vrot.slane %v3488_v47, 2 }
0x246c   :  { %v3495_v22 = vsel %vm3492_vm13, %v3493_v32, %v3494_v52  ;;  %v3498_v19 = vrot.slane %v3489_v3, 2 }
0x246d   :  { %4370 = vmatprep.mubr.msk.f32.mxu0 %vm393_vm14, %v3495_v22 }
0x246e   :  { %v3499_v2 = vsel %vm74_vm8, %v3497_v50, %v3498_v19 }
0x246f   :  { %4371 = vmatmul.mubr.msk.f32.vlgmr.msra.gmra.mrb[124].mxu0 %vm393_vm14, %v3499_v2 }
0x2542   :  { %v4372_v49 = vpop.f32.mrb[124].mxu0 }
0x2543   :  { %v3585_v46 = vadd.f32 %v4372_v49, %v3779_v44  ;;  %v3579_v40 = vpop.f32.mrb[125].mxu0 }
0x2544   :  { %v3580_v30 = vadd.f32 %v3779_v44, %v3579_v40 }
0x2545   :  { %3589 = vst [vmem:[#allocation7 + $0x8] sm:$0xff] %v3585_v46 }
0x2546   :  { %3588 = vst [vmem:[#allocation7] sm:$0xff] %v3580_v30 }
0x2547   :  { %4710 = shalt.err (!%p4707_p6)
}
0x2548   :  { %s4711_s7 = scalar_lea.hbm %s5987_s8, 256 }
0x2549   :  { %p4712_p7 = scmp.ne.s32.totalorder %s5987_s8, %s4711_s7  ;;  %p4715_p8 = scmp.lt.u32.totalorder %s4711_s7, %s5987_s8 }
0x254b   :  { %p4717_p9 = pnand %p4715_p8, %p4712_p7 }
0x254d   :  { %4720 = shalt.err (!%p4717_p9)
}
0x254e   :  { %3601 = dma.vmem_to_hbm [thread:$0]  %s3596_s23, 256, %s5987_s8, [#allocation4], %s4729_s1, %s4729_s1, %s4730_s27  }
0x254f   :  { %4725 = dma.done.wait [#allocation4], 256  }
0x2550   :  { %4726 = vsyncadd [#allocation4], 4294967040 }
0x2551   :  { %3605 = vsyncpa [#allocation3], 1 }
0x2552   :  { %3606 = vsyncpa [#allocation6], 1 }
0x2553   :  { %3607 = vsyncpa [#allocation4], 1 }

</bundles_post_ra>
